<compile_context>
chip_gen: v6e
topology: v6e:2x2x1
jax: 0.10.0
libtpu: 0.0.40
codegen_flags: <defaults>
</compile_context>

<pallas_src>
import functools

import jax
import jax.numpy as jnp
from jax import lax
from jax.experimental import pallas as pl
from jax.experimental.pallas import tpu as pltpu

K = 7          # conv kernel size fixed by the module (Conv2d(2, 1, 7, padding=3))
P = K // 2     # padding = 3
NACC = 4       # partial accumulators for the 49-tap MAC loop


def _spatial_attn_kernel(x_ref, w_ref, row_ref, col_ref, out_ref, *, H, W):
    # x_ref:   (1, C, HW)  VMEM   one batch element, lane-dense
    # w_ref:   (2, K*K)    SMEM   conv1 weight; row 0 -> avg map, row 1 -> max map
    # row_ref: (1, HW)     VMEM   row index of each flattened spatial position
    # col_ref: (1, HW)     VMEM   col index of each flattened spatial position
    # out_ref: (1, C, HW)  VMEM
    C = x_ref.shape[1]
    HW = H * W

    x2 = x_ref[0]                                            # (C, HW)

    # channel-wise mean / max (cross-sublane reduces)
    avg = jnp.sum(x2, axis=0, keepdims=True) * (1.0 / C)     # (1, HW)
    mx = jnp.max(x2, axis=0, keepdims=True)                  # (1, HW)

    # boundary-validity masks for SAME zero padding, built once (hoisted).
    row_idx = row_ref[...]                                   # (1, HW) int32
    col_idx = col_ref[...]
    row_ok = {}
    col_ok = {}
    for d in range(1, P + 1):
        row_ok[d] = row_idx < (H - d)
        row_ok[-d] = row_idx >= d
        col_ok[d] = col_idx < (W - d)
        col_ok[-d] = col_idx >= d

    # hoist all conv-weight scalar reads (SMEM) out of the tap loop.
    wa = [w_ref[0, t] for t in range(K * K)]
    wm = [w_ref[1, t] for t in range(K * K)]

    # 7x7 conv over the two (1, HW) maps: 49 taps, each = lane-roll + masked FMA.
    accs = [jnp.zeros((1, HW), jnp.float32) for _ in range(NACC)]
    t = 0
    for di in range(K):
        dr = di - P
        for dj in range(K):
            dc = dj - P
            s = dr * W + dc                 # flat source offset in the HW axis
            shift = (-s) % HW               # rolled[k] == map[k + s]
            if shift == 0:
                a_sh, m_sh = avg, mx
            else:
                a_sh = pltpu.roll(avg, shift, 1)
                m_sh = pltpu.roll(mx, shift, 1)
            contrib = wa[t] * a_sh + wm[t] * m_sh
            if dr == 0 and dc == 0:
                masked = contrib
            elif dr == 0:
                masked = jnp.where(col_ok[dc], contrib, 0.0)
            elif dc == 0:
                masked = jnp.where(row_ok[dr], contrib, 0.0)
            else:
                masked = jnp.where(row_ok[dr] & col_ok[dc], contrib, 0.0)
            accs[t % NACC] = accs[t % NACC] + masked
            t += 1

    conv = (accs[0] + accs[1]) + (accs[2] + accs[3])          # (1, HW)
    gate = jax.nn.sigmoid(conv)                               # EUP
    out_ref[0] = (x2 * gate).astype(out_ref.dtype)            # lane-dense store


@jax.jit
def spatial_attention_pallas(x, conv_w):
    """x: (B, C, H, W) f32; conv_w: (1, 2, K, K) f32 (Conv2d(2,1,7,pad=3,bias=False))."""
    B, C, H, W = x.shape
    HW = H * W
    x_flat = x.reshape(B, C, HW)                    # lane-dense view (free, contiguous)
    w_flat = conv_w.reshape(2, K * K).astype(jnp.float32)

    lin = jnp.arange(HW, dtype=jnp.int32)
    row_idx = (lin // W).reshape(1, HW)
    col_idx = (lin % W).reshape(1, HW)

    kernel = functools.partial(_spatial_attn_kernel, H=H, W=W)
    out_flat = pl.pallas_call(
        kernel,
        out_shape=jax.ShapeDtypeStruct((B, C, HW), x.dtype),
        grid=(B,),
        in_specs=[
            pl.BlockSpec((1, C, HW), lambda b: (b, 0, 0)),
            pl.BlockSpec(memory_space=pltpu.MemorySpace.SMEM),
            pl.BlockSpec((1, HW), lambda b: (0, 0)),
            pl.BlockSpec((1, HW), lambda b: (0, 0)),
        ],
        out_specs=pl.BlockSpec((1, C, HW), lambda b: (b, 0, 0)),
        compiler_params=pltpu.CompilerParams(
            dimension_semantics=("parallel",)),
    )(x_flat, w_flat, row_idx, col_idx)
    return out_flat.reshape(B, C, H, W)


def spatial_attention_reference(x, conv_w):
    """Pure-JAX reference matching PyTorch SpatialAttentionModule.forward."""
    avg = jnp.mean(x, axis=1, keepdims=True)
    mx = jnp.max(x, axis=1, keepdims=True)
    cat = jnp.concatenate([avg, mx], axis=1)        # (B, 2, H, W) -- avg first, then max
    conv = lax.conv_general_dilated(
        cat, conv_w, (1, 1), 'SAME',
        dimension_numbers=('NCHW', 'OIHW', 'NCHW'),
        precision=lax.Precision.HIGHEST)
    return x * jax.nn.sigmoid(conv)


if __name__ == "__main__":
    B, C, H, W = 2, 8, 16, 16
    key = jax.random.PRNGKey(0)
    kx, kw = jax.random.split(key)
    x = jax.random.normal(kx, (B, C, H, W), dtype=jnp.float32)
    conv_w = 0.1 * jax.random.normal(kw, (1, 2, K, K), dtype=jnp.float32)

    out = spatial_attention_pallas(x, conv_w)
    out = jax.block_until_ready(out)

    ref = spatial_attention_reference(x, conv_w)
    assert out.shape == x.shape
    max_err = float(jnp.max(jnp.abs(out - ref)))
    assert jnp.allclose(out, ref, rtol=1e-4, atol=1e-4), max_err
    print("KERNEL_OK")
</pallas_src>

<mosaic_0001>
module attributes {stable_mosaic.version = 11 : i64} {
  func.func @_spatial_attn_kernel(%arg0: i32, %arg1: memref<1x8x256xf32, #tpu.memory_space<vmem>>, %arg2: memref<2x49xf32, #tpu.memory_space<smem>>, %arg3: memref<1x256xi32, #tpu.memory_space<vmem>>, %arg4: memref<1x256xi32, #tpu.memory_space<vmem>>, %arg5: memref<1x8x256xf32, #tpu.memory_space<vmem>>) attributes {dimension_semantics = [#tpu.dimension_semantics<parallel>], iteration_bounds = array<i64: 2>, scalar_prefetch = 0 : i64, scratch_operands = 0 : i64, tpu.core_type = #tpu.core_type<tc>, window_params = [{transform_indices = @transform_0, window_bounds = array<i64: 1, 8, 256>}, {transform_indices = @transform_1, window_bounds = array<i64: 2, 49>}, {pipeline_mode = #tpu.pipeline_mode<synchronous>, transform_indices = @transform_2, window_bounds = array<i64: 1, 256>}, {pipeline_mode = #tpu.pipeline_mode<synchronous>, transform_indices = @transform_3, window_bounds = array<i64: 1, 256>}, {transform_indices = @transform_4, window_bounds = array<i64: 1, 8, 256>}]} {
    %c0 = arith.constant 0 : index
    %c0_0 = arith.constant 0 : index
    %c0_1 = arith.constant 0 : index
    %0 = vector.load %arg1[%c0, %c0_0, %c0_1] : memref<1x8x256xf32, #tpu.memory_space<vmem>>, vector<1x8x256xf32>
    %1 = vector.shape_cast %0 : vector<1x8x256xf32> to vector<8x256xf32>
    %cst = arith.constant dense<0.000000e+00> : vector<256xf32>
    %2 = vector.multi_reduction <add>, %1, %cst [0] : vector<8x256xf32> to vector<256xf32>
    %3 = vector.shape_cast %2 : vector<256xf32> to vector<1x256xf32>
    %cst_2 = arith.constant 1.250000e-01 : f32
    %4 = vector.broadcast %cst_2 : f32 to vector<1x256xf32>
    %5 = arith.mulf %3, %4 : vector<1x256xf32>
    %cst_3 = arith.constant dense<0xFF800000> : vector<256xf32>
    %6 = vector.multi_reduction <maximumf>, %1, %cst_3 [0] : vector<8x256xf32> to vector<256xf32>
    %7 = vector.shape_cast %6 : vector<256xf32> to vector<1x256xf32>
    %c0_4 = arith.constant 0 : index
    %c0_5 = arith.constant 0 : index
    %8 = vector.load %arg3[%c0_4, %c0_5] : memref<1x256xi32, #tpu.memory_space<vmem>>, vector<1x256xi32>
    %c0_6 = arith.constant 0 : index
    %c0_7 = arith.constant 0 : index
    %9 = vector.load %arg4[%c0_6, %c0_7] : memref<1x256xi32, #tpu.memory_space<vmem>>, vector<1x256xi32>
    %c15_i32 = arith.constant 15 : i32
    %10 = vector.broadcast %c15_i32 : i32 to vector<1x256xi32>
    %11 = arith.cmpi slt, %8, %10 : vector<1x256xi32>
    %c1_i32 = arith.constant 1 : i32
    %12 = vector.broadcast %c1_i32 : i32 to vector<1x256xi32>
    %13 = arith.cmpi sge, %8, %12 : vector<1x256xi32>
    %c15_i32_8 = arith.constant 15 : i32
    %14 = vector.broadcast %c15_i32_8 : i32 to vector<1x256xi32>
    %15 = arith.cmpi slt, %9, %14 : vector<1x256xi32>
    %c1_i32_9 = arith.constant 1 : i32
    %16 = vector.broadcast %c1_i32_9 : i32 to vector<1x256xi32>
    %17 = arith.cmpi sge, %9, %16 : vector<1x256xi32>
    %c14_i32 = arith.constant 14 : i32
    %18 = vector.broadcast %c14_i32 : i32 to vector<1x256xi32>
    %19 = arith.cmpi slt, %8, %18 : vector<1x256xi32>
    %c2_i32 = arith.constant 2 : i32
    %20 = vector.broadcast %c2_i32 : i32 to vector<1x256xi32>
    %21 = arith.cmpi sge, %8, %20 : vector<1x256xi32>
    %c14_i32_10 = arith.constant 14 : i32
    %22 = vector.broadcast %c14_i32_10 : i32 to vector<1x256xi32>
    %23 = arith.cmpi slt, %9, %22 : vector<1x256xi32>
    %c2_i32_11 = arith.constant 2 : i32
    %24 = vector.broadcast %c2_i32_11 : i32 to vector<1x256xi32>
    %25 = arith.cmpi sge, %9, %24 : vector<1x256xi32>
    %c13_i32 = arith.constant 13 : i32
    %26 = vector.broadcast %c13_i32 : i32 to vector<1x256xi32>
    %27 = arith.cmpi slt, %8, %26 : vector<1x256xi32>
    %c3_i32 = arith.constant 3 : i32
    %28 = vector.broadcast %c3_i32 : i32 to vector<1x256xi32>
    %29 = arith.cmpi sge, %8, %28 : vector<1x256xi32>
    %c13_i32_12 = arith.constant 13 : i32
    %30 = vector.broadcast %c13_i32_12 : i32 to vector<1x256xi32>
    %31 = arith.cmpi slt, %9, %30 : vector<1x256xi32>
    %c3_i32_13 = arith.constant 3 : i32
    %32 = vector.broadcast %c3_i32_13 : i32 to vector<1x256xi32>
    %33 = arith.cmpi sge, %9, %32 : vector<1x256xi32>
    %c0_14 = arith.constant 0 : index
    %c0_15 = arith.constant 0 : index
    %34 = memref.load %arg2[%c0_14, %c0_15] : memref<2x49xf32, #tpu.memory_space<smem>>
    %c0_16 = arith.constant 0 : index
    %c1 = arith.constant 1 : index
    %35 = memref.load %arg2[%c0_16, %c1] : memref<2x49xf32, #tpu.memory_space<smem>>
    %c0_17 = arith.constant 0 : index
    %c2 = arith.constant 2 : index
    %36 = memref.load %arg2[%c0_17, %c2] : memref<2x49xf32, #tpu.memory_space<smem>>
    %c0_18 = arith.constant 0 : index
    %c3 = arith.constant 3 : index
    %37 = memref.load %arg2[%c0_18, %c3] : memref<2x49xf32, #tpu.memory_space<smem>>
    %c0_19 = arith.constant 0 : index
    %c4 = arith.constant 4 : index
    %38 = memref.load %arg2[%c0_19, %c4] : memref<2x49xf32, #tpu.memory_space<smem>>
    %c0_20 = arith.constant 0 : index
    %c5 = arith.constant 5 : index
    %39 = memref.load %arg2[%c0_20, %c5] : memref<2x49xf32, #tpu.memory_space<smem>>
    %c0_21 = arith.constant 0 : index
    %c6 = arith.constant 6 : index
    %40 = memref.load %arg2[%c0_21, %c6] : memref<2x49xf32, #tpu.memory_space<smem>>
    %c0_22 = arith.constant 0 : index
    %c7 = arith.constant 7 : index
    %41 = memref.load %arg2[%c0_22, %c7] : memref<2x49xf32, #tpu.memory_space<smem>>
    %c0_23 = arith.constant 0 : index
    %c8 = arith.constant 8 : index
    %42 = memref.load %arg2[%c0_23, %c8] : memref<2x49xf32, #tpu.memory_space<smem>>
    %c0_24 = arith.constant 0 : index
    %c9 = arith.constant 9 : index
    %43 = memref.load %arg2[%c0_24, %c9] : memref<2x49xf32, #tpu.memory_space<smem>>
    %c0_25 = arith.constant 0 : index
    %c10 = arith.constant 10 : index
    %44 = memref.load %arg2[%c0_25, %c10] : memref<2x49xf32, #tpu.memory_space<smem>>
    %c0_26 = arith.constant 0 : index
    %c11 = arith.constant 11 : index
    %45 = memref.load %arg2[%c0_26, %c11] : memref<2x49xf32, #tpu.memory_space<smem>>
    %c0_27 = arith.constant 0 : index
    %c12 = arith.constant 12 : index
    %46 = memref.load %arg2[%c0_27, %c12] : memref<2x49xf32, #tpu.memory_space<smem>>
    %c0_28 = arith.constant 0 : index
    %c13 = arith.constant 13 : index
    %47 = memref.load %arg2[%c0_28, %c13] : memref<2x49xf32, #tpu.memory_space<smem>>
    %c0_29 = arith.constant 0 : index
    %c14 = arith.constant 14 : index
    %48 = memref.load %arg2[%c0_29, %c14] : memref<2x49xf32, #tpu.memory_space<smem>>
    %c0_30 = arith.constant 0 : index
    %c15 = arith.constant 15 : index
    %49 = memref.load %arg2[%c0_30, %c15] : memref<2x49xf32, #tpu.memory_space<smem>>
    %c0_31 = arith.constant 0 : index
    %c16 = arith.constant 16 : index
    %50 = memref.load %arg2[%c0_31, %c16] : memref<2x49xf32, #tpu.memory_space<smem>>
    %c0_32 = arith.constant 0 : index
    %c17 = arith.constant 17 : index
    %51 = memref.load %arg2[%c0_32, %c17] : memref<2x49xf32, #tpu.memory_space<smem>>
    %c0_33 = arith.constant 0 : index
    %c18 = arith.constant 18 : index
    %52 = memref.load %arg2[%c0_33, %c18] : memref<2x49xf32, #tpu.memory_space<smem>>
    %c0_34 = arith.constant 0 : index
    %c19 = arith.constant 19 : index
    %53 = memref.load %arg2[%c0_34, %c19] : memref<2x49xf32, #tpu.memory_space<smem>>
    %c0_35 = arith.constant 0 : index
    %c20 = arith.constant 20 : index
    %54 = memref.load %arg2[%c0_35, %c20] : memref<2x49xf32, #tpu.memory_space<smem>>
    %c0_36 = arith.constant 0 : index
    %c21 = arith.constant 21 : index
    %55 = memref.load %arg2[%c0_36, %c21] : memref<2x49xf32, #tpu.memory_space<smem>>
    %c0_37 = arith.constant 0 : index
    %c22 = arith.constant 22 : index
    %56 = memref.load %arg2[%c0_37, %c22] : memref<2x49xf32, #tpu.memory_space<smem>>
    %c0_38 = arith.constant 0 : index
    %c23 = arith.constant 23 : index
    %57 = memref.load %arg2[%c0_38, %c23] : memref<2x49xf32, #tpu.memory_space<smem>>
    %c0_39 = arith.constant 0 : index
    %c24 = arith.constant 24 : index
    %58 = memref.load %arg2[%c0_39, %c24] : memref<2x49xf32, #tpu.memory_space<smem>>
    %c0_40 = arith.constant 0 : index
    %c25 = arith.constant 25 : index
    %59 = memref.load %arg2[%c0_40, %c25] : memref<2x49xf32, #tpu.memory_space<smem>>
    %c0_41 = arith.constant 0 : index
    %c26 = arith.constant 26 : index
    %60 = memref.load %arg2[%c0_41, %c26] : memref<2x49xf32, #tpu.memory_space<smem>>
    %c0_42 = arith.constant 0 : index
    %c27 = arith.constant 27 : index
    %61 = memref.load %arg2[%c0_42, %c27] : memref<2x49xf32, #tpu.memory_space<smem>>
    %c0_43 = arith.constant 0 : index
    %c28 = arith.constant 28 : index
    %62 = memref.load %arg2[%c0_43, %c28] : memref<2x49xf32, #tpu.memory_space<smem>>
    %c0_44 = arith.constant 0 : index
    %c29 = arith.constant 29 : index
    %63 = memref.load %arg2[%c0_44, %c29] : memref<2x49xf32, #tpu.memory_space<smem>>
    %c0_45 = arith.constant 0 : index
    %c30 = arith.constant 30 : index
    %64 = memref.load %arg2[%c0_45, %c30] : memref<2x49xf32, #tpu.memory_space<smem>>
    %c0_46 = arith.constant 0 : index
    %c31 = arith.constant 31 : index
    %65 = memref.load %arg2[%c0_46, %c31] : memref<2x49xf32, #tpu.memory_space<smem>>
    %c0_47 = arith.constant 0 : index
    %c32 = arith.constant 32 : index
    %66 = memref.load %arg2[%c0_47, %c32] : memref<2x49xf32, #tpu.memory_space<smem>>
    %c0_48 = arith.constant 0 : index
    %c33 = arith.constant 33 : index
    %67 = memref.load %arg2[%c0_48, %c33] : memref<2x49xf32, #tpu.memory_space<smem>>
    %c0_49 = arith.constant 0 : index
    %c34 = arith.constant 34 : index
    %68 = memref.load %arg2[%c0_49, %c34] : memref<2x49xf32, #tpu.memory_space<smem>>
    %c0_50 = arith.constant 0 : index
    %c35 = arith.constant 35 : index
    %69 = memref.load %arg2[%c0_50, %c35] : memref<2x49xf32, #tpu.memory_space<smem>>
    %c0_51 = arith.constant 0 : index
    %c36 = arith.constant 36 : index
    %70 = memref.load %arg2[%c0_51, %c36] : memref<2x49xf32, #tpu.memory_space<smem>>
    %c0_52 = arith.constant 0 : index
    %c37 = arith.constant 37 : index
    %71 = memref.load %arg2[%c0_52, %c37] : memref<2x49xf32, #tpu.memory_space<smem>>
    %c0_53 = arith.constant 0 : index
    %c38 = arith.constant 38 : index
    %72 = memref.load %arg2[%c0_53, %c38] : memref<2x49xf32, #tpu.memory_space<smem>>
    %c0_54 = arith.constant 0 : index
    %c39 = arith.constant 39 : index
    %73 = memref.load %arg2[%c0_54, %c39] : memref<2x49xf32, #tpu.memory_space<smem>>
    %c0_55 = arith.constant 0 : index
    %c40 = arith.constant 40 : index
    %74 = memref.load %arg2[%c0_55, %c40] : memref<2x49xf32, #tpu.memory_space<smem>>
    %c0_56 = arith.constant 0 : index
    %c41 = arith.constant 41 : index
    %75 = memref.load %arg2[%c0_56, %c41] : memref<2x49xf32, #tpu.memory_space<smem>>
    %c0_57 = arith.constant 0 : index
    %c42 = arith.constant 42 : index
    %76 = memref.load %arg2[%c0_57, %c42] : memref<2x49xf32, #tpu.memory_space<smem>>
    %c0_58 = arith.constant 0 : index
    %c43 = arith.constant 43 : index
    %77 = memref.load %arg2[%c0_58, %c43] : memref<2x49xf32, #tpu.memory_space<smem>>
    %c0_59 = arith.constant 0 : index
    %c44 = arith.constant 44 : index
    %78 = memref.load %arg2[%c0_59, %c44] : memref<2x49xf32, #tpu.memory_space<smem>>
    %c0_60 = arith.constant 0 : index
    %c45 = arith.constant 45 : index
    %79 = memref.load %arg2[%c0_60, %c45] : memref<2x49xf32, #tpu.memory_space<smem>>
    %c0_61 = arith.constant 0 : index
    %c46 = arith.constant 46 : index
    %80 = memref.load %arg2[%c0_61, %c46] : memref<2x49xf32, #tpu.memory_space<smem>>
    %c0_62 = arith.constant 0 : index
    %c47 = arith.constant 47 : index
    %81 = memref.load %arg2[%c0_62, %c47] : memref<2x49xf32, #tpu.memory_space<smem>>
    %c0_63 = arith.constant 0 : index
    %c48 = arith.constant 48 : index
    %82 = memref.load %arg2[%c0_63, %c48] : memref<2x49xf32, #tpu.memory_space<smem>>
    %c1_64 = arith.constant 1 : index
    %c0_65 = arith.constant 0 : index
    %83 = memref.load %arg2[%c1_64, %c0_65] : memref<2x49xf32, #tpu.memory_space<smem>>
    %c1_66 = arith.constant 1 : index
    %c1_67 = arith.constant 1 : index
    %84 = memref.load %arg2[%c1_66, %c1_67] : memref<2x49xf32, #tpu.memory_space<smem>>
    %c1_68 = arith.constant 1 : index
    %c2_69 = arith.constant 2 : index
    %85 = memref.load %arg2[%c1_68, %c2_69] : memref<2x49xf32, #tpu.memory_space<smem>>
    %c1_70 = arith.constant 1 : index
    %c3_71 = arith.constant 3 : index
    %86 = memref.load %arg2[%c1_70, %c3_71] : memref<2x49xf32, #tpu.memory_space<smem>>
    %c1_72 = arith.constant 1 : index
    %c4_73 = arith.constant 4 : index
    %87 = memref.load %arg2[%c1_72, %c4_73] : memref<2x49xf32, #tpu.memory_space<smem>>
    %c1_74 = arith.constant 1 : index
    %c5_75 = arith.constant 5 : index
    %88 = memref.load %arg2[%c1_74, %c5_75] : memref<2x49xf32, #tpu.memory_space<smem>>
    %c1_76 = arith.constant 1 : index
    %c6_77 = arith.constant 6 : index
    %89 = memref.load %arg2[%c1_76, %c6_77] : memref<2x49xf32, #tpu.memory_space<smem>>
    %c1_78 = arith.constant 1 : index
    %c7_79 = arith.constant 7 : index
    %90 = memref.load %arg2[%c1_78, %c7_79] : memref<2x49xf32, #tpu.memory_space<smem>>
    %c1_80 = arith.constant 1 : index
    %c8_81 = arith.constant 8 : index
    %91 = memref.load %arg2[%c1_80, %c8_81] : memref<2x49xf32, #tpu.memory_space<smem>>
    %c1_82 = arith.constant 1 : index
    %c9_83 = arith.constant 9 : index
    %92 = memref.load %arg2[%c1_82, %c9_83] : memref<2x49xf32, #tpu.memory_space<smem>>
    %c1_84 = arith.constant 1 : index
    %c10_85 = arith.constant 10 : index
    %93 = memref.load %arg2[%c1_84, %c10_85] : memref<2x49xf32, #tpu.memory_space<smem>>
    %c1_86 = arith.constant 1 : index
    %c11_87 = arith.constant 11 : index
    %94 = memref.load %arg2[%c1_86, %c11_87] : memref<2x49xf32, #tpu.memory_space<smem>>
    %c1_88 = arith.constant 1 : index
    %c12_89 = arith.constant 12 : index
    %95 = memref.load %arg2[%c1_88, %c12_89] : memref<2x49xf32, #tpu.memory_space<smem>>
    %c1_90 = arith.constant 1 : index
    %c13_91 = arith.constant 13 : index
    %96 = memref.load %arg2[%c1_90, %c13_91] : memref<2x49xf32, #tpu.memory_space<smem>>
    %c1_92 = arith.constant 1 : index
    %c14_93 = arith.constant 14 : index
    %97 = memref.load %arg2[%c1_92, %c14_93] : memref<2x49xf32, #tpu.memory_space<smem>>
    %c1_94 = arith.constant 1 : index
    %c15_95 = arith.constant 15 : index
    %98 = memref.load %arg2[%c1_94, %c15_95] : memref<2x49xf32, #tpu.memory_space<smem>>
    %c1_96 = arith.constant 1 : index
    %c16_97 = arith.constant 16 : index
    %99 = memref.load %arg2[%c1_96, %c16_97] : memref<2x49xf32, #tpu.memory_space<smem>>
    %c1_98 = arith.constant 1 : index
    %c17_99 = arith.constant 17 : index
    %100 = memref.load %arg2[%c1_98, %c17_99] : memref<2x49xf32, #tpu.memory_space<smem>>
    %c1_100 = arith.constant 1 : index
    %c18_101 = arith.constant 18 : index
    %101 = memref.load %arg2[%c1_100, %c18_101] : memref<2x49xf32, #tpu.memory_space<smem>>
    %c1_102 = arith.constant 1 : index
    %c19_103 = arith.constant 19 : index
    %102 = memref.load %arg2[%c1_102, %c19_103] : memref<2x49xf32, #tpu.memory_space<smem>>
    %c1_104 = arith.constant 1 : index
    %c20_105 = arith.constant 20 : index
    %103 = memref.load %arg2[%c1_104, %c20_105] : memref<2x49xf32, #tpu.memory_space<smem>>
    %c1_106 = arith.constant 1 : index
    %c21_107 = arith.constant 21 : index
    %104 = memref.load %arg2[%c1_106, %c21_107] : memref<2x49xf32, #tpu.memory_space<smem>>
    %c1_108 = arith.constant 1 : index
    %c22_109 = arith.constant 22 : index
    %105 = memref.load %arg2[%c1_108, %c22_109] : memref<2x49xf32, #tpu.memory_space<smem>>
    %c1_110 = arith.constant 1 : index
    %c23_111 = arith.constant 23 : index
    %106 = memref.load %arg2[%c1_110, %c23_111] : memref<2x49xf32, #tpu.memory_space<smem>>
    %c1_112 = arith.constant 1 : index
    %c24_113 = arith.constant 24 : index
    %107 = memref.load %arg2[%c1_112, %c24_113] : memref<2x49xf32, #tpu.memory_space<smem>>
    %c1_114 = arith.constant 1 : index
    %c25_115 = arith.constant 25 : index
    %108 = memref.load %arg2[%c1_114, %c25_115] : memref<2x49xf32, #tpu.memory_space<smem>>
    %c1_116 = arith.constant 1 : index
    %c26_117 = arith.constant 26 : index
    %109 = memref.load %arg2[%c1_116, %c26_117] : memref<2x49xf32, #tpu.memory_space<smem>>
    %c1_118 = arith.constant 1 : index
    %c27_119 = arith.constant 27 : index
    %110 = memref.load %arg2[%c1_118, %c27_119] : memref<2x49xf32, #tpu.memory_space<smem>>
    %c1_120 = arith.constant 1 : index
    %c28_121 = arith.constant 28 : index
    %111 = memref.load %arg2[%c1_120, %c28_121] : memref<2x49xf32, #tpu.memory_space<smem>>
    %c1_122 = arith.constant 1 : index
    %c29_123 = arith.constant 29 : index
    %112 = memref.load %arg2[%c1_122, %c29_123] : memref<2x49xf32, #tpu.memory_space<smem>>
    %c1_124 = arith.constant 1 : index
    %c30_125 = arith.constant 30 : index
    %113 = memref.load %arg2[%c1_124, %c30_125] : memref<2x49xf32, #tpu.memory_space<smem>>
    %c1_126 = arith.constant 1 : index
    %c31_127 = arith.constant 31 : index
    %114 = memref.load %arg2[%c1_126, %c31_127] : memref<2x49xf32, #tpu.memory_space<smem>>
    %c1_128 = arith.constant 1 : index
    %c32_129 = arith.constant 32 : index
    %115 = memref.load %arg2[%c1_128, %c32_129] : memref<2x49xf32, #tpu.memory_space<smem>>
    %c1_130 = arith.constant 1 : index
    %c33_131 = arith.constant 33 : index
    %116 = memref.load %arg2[%c1_130, %c33_131] : memref<2x49xf32, #tpu.memory_space<smem>>
    %c1_132 = arith.constant 1 : index
    %c34_133 = arith.constant 34 : index
    %117 = memref.load %arg2[%c1_132, %c34_133] : memref<2x49xf32, #tpu.memory_space<smem>>
    %c1_134 = arith.constant 1 : index
    %c35_135 = arith.constant 35 : index
    %118 = memref.load %arg2[%c1_134, %c35_135] : memref<2x49xf32, #tpu.memory_space<smem>>
    %c1_136 = arith.constant 1 : index
    %c36_137 = arith.constant 36 : index
    %119 = memref.load %arg2[%c1_136, %c36_137] : memref<2x49xf32, #tpu.memory_space<smem>>
    %c1_138 = arith.constant 1 : index
    %c37_139 = arith.constant 37 : index
    %120 = memref.load %arg2[%c1_138, %c37_139] : memref<2x49xf32, #tpu.memory_space<smem>>
    %c1_140 = arith.constant 1 : index
    %c38_141 = arith.constant 38 : index
    %121 = memref.load %arg2[%c1_140, %c38_141] : memref<2x49xf32, #tpu.memory_space<smem>>
    %c1_142 = arith.constant 1 : index
    %c39_143 = arith.constant 39 : index
    %122 = memref.load %arg2[%c1_142, %c39_143] : memref<2x49xf32, #tpu.memory_space<smem>>
    %c1_144 = arith.constant 1 : index
    %c40_145 = arith.constant 40 : index
    %123 = memref.load %arg2[%c1_144, %c40_145] : memref<2x49xf32, #tpu.memory_space<smem>>
    %c1_146 = arith.constant 1 : index
    %c41_147 = arith.constant 41 : index
    %124 = memref.load %arg2[%c1_146, %c41_147] : memref<2x49xf32, #tpu.memory_space<smem>>
    %c1_148 = arith.constant 1 : index
    %c42_149 = arith.constant 42 : index
    %125 = memref.load %arg2[%c1_148, %c42_149] : memref<2x49xf32, #tpu.memory_space<smem>>
    %c1_150 = arith.constant 1 : index
    %c43_151 = arith.constant 43 : index
    %126 = memref.load %arg2[%c1_150, %c43_151] : memref<2x49xf32, #tpu.memory_space<smem>>
    %c1_152 = arith.constant 1 : index
    %c44_153 = arith.constant 44 : index
    %127 = memref.load %arg2[%c1_152, %c44_153] : memref<2x49xf32, #tpu.memory_space<smem>>
    %c1_154 = arith.constant 1 : index
    %c45_155 = arith.constant 45 : index
    %128 = memref.load %arg2[%c1_154, %c45_155] : memref<2x49xf32, #tpu.memory_space<smem>>
    %c1_156 = arith.constant 1 : index
    %c46_157 = arith.constant 46 : index
    %129 = memref.load %arg2[%c1_156, %c46_157] : memref<2x49xf32, #tpu.memory_space<smem>>
    %c1_158 = arith.constant 1 : index
    %c47_159 = arith.constant 47 : index
    %130 = memref.load %arg2[%c1_158, %c47_159] : memref<2x49xf32, #tpu.memory_space<smem>>
    %c1_160 = arith.constant 1 : index
    %c48_161 = arith.constant 48 : index
    %131 = memref.load %arg2[%c1_160, %c48_161] : memref<2x49xf32, #tpu.memory_space<smem>>
    %cst_162 = arith.constant 0.000000e+00 : f32
    %132 = vector.broadcast %cst_162 : f32 to vector<1x256xf32>
    %cst_163 = arith.constant 0.000000e+00 : f32
    %133 = vector.broadcast %cst_163 : f32 to vector<1x256xf32>
    %cst_164 = arith.constant 0.000000e+00 : f32
    %134 = vector.broadcast %cst_164 : f32 to vector<1x256xf32>
    %cst_165 = arith.constant 0.000000e+00 : f32
    %135 = vector.broadcast %cst_165 : f32 to vector<1x256xf32>
    %c51_i32 = arith.constant 51 : i32
    %136 = tpu.dynamic_rotate %5 by %c51_i32 dim 1 : vector<1x256xf32>, i32 -> vector<1x256xf32>
    %c51_i32_166 = arith.constant 51 : i32
    %137 = tpu.dynamic_rotate %7 by %c51_i32_166 dim 1 : vector<1x256xf32>, i32 -> vector<1x256xf32>
    %138 = vector.broadcast %34 : f32 to vector<1x256xf32>
    %139 = arith.mulf %138, %136 : vector<1x256xf32>
    %140 = vector.broadcast %83 : f32 to vector<1x256xf32>
    %141 = arith.mulf %140, %137 : vector<1x256xf32>
    %142 = arith.addf %139, %141 : vector<1x256xf32>
    %143 = arith.andi %29, %33 : vector<1x256xi1>
    %cst_167 = arith.constant 0.000000e+00 : f32
    %144 = vector.broadcast %cst_167 : f32 to vector<1x256xf32>
    %145 = arith.select %143, %142, %144 : vector<1x256xi1>, vector<1x256xf32>
    %146 = arith.addf %132, %145 : vector<1x256xf32>
    %c50_i32 = arith.constant 50 : i32
    %147 = tpu.dynamic_rotate %5 by %c50_i32 dim 1 : vector<1x256xf32>, i32 -> vector<1x256xf32>
    %c50_i32_168 = arith.constant 50 : i32
    %148 = tpu.dynamic_rotate %7 by %c50_i32_168 dim 1 : vector<1x256xf32>, i32 -> vector<1x256xf32>
    %149 = vector.broadcast %35 : f32 to vector<1x256xf32>
    %150 = arith.mulf %149, %147 : vector<1x256xf32>
    %151 = vector.broadcast %84 : f32 to vector<1x256xf32>
    %152 = arith.mulf %151, %148 : vector<1x256xf32>
    %153 = arith.addf %150, %152 : vector<1x256xf32>
    %154 = arith.andi %29, %25 : vector<1x256xi1>
    %cst_169 = arith.constant 0.000000e+00 : f32
    %155 = vector.broadcast %cst_169 : f32 to vector<1x256xf32>
    %156 = arith.select %154, %153, %155 : vector<1x256xi1>, vector<1x256xf32>
    %157 = arith.addf %133, %156 : vector<1x256xf32>
    %c49_i32 = arith.constant 49 : i32
    %158 = tpu.dynamic_rotate %5 by %c49_i32 dim 1 : vector<1x256xf32>, i32 -> vector<1x256xf32>
    %c49_i32_170 = arith.constant 49 : i32
    %159 = tpu.dynamic_rotate %7 by %c49_i32_170 dim 1 : vector<1x256xf32>, i32 -> vector<1x256xf32>
    %160 = vector.broadcast %36 : f32 to vector<1x256xf32>
    %161 = arith.mulf %160, %158 : vector<1x256xf32>
    %162 = vector.broadcast %85 : f32 to vector<1x256xf32>
    %163 = arith.mulf %162, %159 : vector<1x256xf32>
    %164 = arith.addf %161, %163 : vector<1x256xf32>
    %165 = arith.andi %29, %17 : vector<1x256xi1>
    %cst_171 = arith.constant 0.000000e+00 : f32
    %166 = vector.broadcast %cst_171 : f32 to vector<1x256xf32>
    %167 = arith.select %165, %164, %166 : vector<1x256xi1>, vector<1x256xf32>
    %168 = arith.addf %134, %167 : vector<1x256xf32>
    %c48_i32 = arith.constant 48 : i32
    %169 = tpu.dynamic_rotate %5 by %c48_i32 dim 1 : vector<1x256xf32>, i32 -> vector<1x256xf32>
    %c48_i32_172 = arith.constant 48 : i32
    %170 = tpu.dynamic_rotate %7 by %c48_i32_172 dim 1 : vector<1x256xf32>, i32 -> vector<1x256xf32>
    %171 = vector.broadcast %37 : f32 to vector<1x256xf32>
    %172 = arith.mulf %171, %169 : vector<1x256xf32>
    %173 = vector.broadcast %86 : f32 to vector<1x256xf32>
    %174 = arith.mulf %173, %170 : vector<1x256xf32>
    %175 = arith.addf %172, %174 : vector<1x256xf32>
    %cst_173 = arith.constant 0.000000e+00 : f32
    %176 = vector.broadcast %cst_173 : f32 to vector<1x256xf32>
    %177 = arith.select %29, %175, %176 : vector<1x256xi1>, vector<1x256xf32>
    %178 = arith.addf %135, %177 : vector<1x256xf32>
    %c47_i32 = arith.constant 47 : i32
    %179 = tpu.dynamic_rotate %5 by %c47_i32 dim 1 : vector<1x256xf32>, i32 -> vector<1x256xf32>
    %c47_i32_174 = arith.constant 47 : i32
    %180 = tpu.dynamic_rotate %7 by %c47_i32_174 dim 1 : vector<1x256xf32>, i32 -> vector<1x256xf32>
    %181 = vector.broadcast %38 : f32 to vector<1x256xf32>
    %182 = arith.mulf %181, %179 : vector<1x256xf32>
    %183 = vector.broadcast %87 : f32 to vector<1x256xf32>
    %184 = arith.mulf %183, %180 : vector<1x256xf32>
    %185 = arith.addf %182, %184 : vector<1x256xf32>
    %186 = arith.andi %29, %15 : vector<1x256xi1>
    %cst_175 = arith.constant 0.000000e+00 : f32
    %187 = vector.broadcast %cst_175 : f32 to vector<1x256xf32>
    %188 = arith.select %186, %185, %187 : vector<1x256xi1>, vector<1x256xf32>
    %189 = arith.addf %146, %188 : vector<1x256xf32>
    %c46_i32 = arith.constant 46 : i32
    %190 = tpu.dynamic_rotate %5 by %c46_i32 dim 1 : vector<1x256xf32>, i32 -> vector<1x256xf32>
    %c46_i32_176 = arith.constant 46 : i32
    %191 = tpu.dynamic_rotate %7 by %c46_i32_176 dim 1 : vector<1x256xf32>, i32 -> vector<1x256xf32>
    %192 = vector.broadcast %39 : f32 to vector<1x256xf32>
    %193 = arith.mulf %192, %190 : vector<1x256xf32>
    %194 = vector.broadcast %88 : f32 to vector<1x256xf32>
    %195 = arith.mulf %194, %191 : vector<1x256xf32>
    %196 = arith.addf %193, %195 : vector<1x256xf32>
    %197 = arith.andi %29, %23 : vector<1x256xi1>
    %cst_177 = arith.constant 0.000000e+00 : f32
    %198 = vector.broadcast %cst_177 : f32 to vector<1x256xf32>
    %199 = arith.select %197, %196, %198 : vector<1x256xi1>, vector<1x256xf32>
    %200 = arith.addf %157, %199 : vector<1x256xf32>
    %c45_i32 = arith.constant 45 : i32
    %201 = tpu.dynamic_rotate %5 by %c45_i32 dim 1 : vector<1x256xf32>, i32 -> vector<1x256xf32>
    %c45_i32_178 = arith.constant 45 : i32
    %202 = tpu.dynamic_rotate %7 by %c45_i32_178 dim 1 : vector<1x256xf32>, i32 -> vector<1x256xf32>
    %203 = vector.broadcast %40 : f32 to vector<1x256xf32>
    %204 = arith.mulf %203, %201 : vector<1x256xf32>
    %205 = vector.broadcast %89 : f32 to vector<1x256xf32>
    %206 = arith.mulf %205, %202 : vector<1x256xf32>
    %207 = arith.addf %204, %206 : vector<1x256xf32>
    %208 = arith.andi %29, %31 : vector<1x256xi1>
    %cst_179 = arith.constant 0.000000e+00 : f32
    %209 = vector.broadcast %cst_179 : f32 to vector<1x256xf32>
    %210 = arith.select %208, %207, %209 : vector<1x256xi1>, vector<1x256xf32>
    %211 = arith.addf %168, %210 : vector<1x256xf32>
    %c35_i32 = arith.constant 35 : i32
    %212 = tpu.dynamic_rotate %5 by %c35_i32 dim 1 : vector<1x256xf32>, i32 -> vector<1x256xf32>
    %c35_i32_180 = arith.constant 35 : i32
    %213 = tpu.dynamic_rotate %7 by %c35_i32_180 dim 1 : vector<1x256xf32>, i32 -> vector<1x256xf32>
    %214 = vector.broadcast %41 : f32 to vector<1x256xf32>
    %215 = arith.mulf %214, %212 : vector<1x256xf32>
    %216 = vector.broadcast %90 : f32 to vector<1x256xf32>
    %217 = arith.mulf %216, %213 : vector<1x256xf32>
    %218 = arith.addf %215, %217 : vector<1x256xf32>
    %219 = arith.andi %21, %33 : vector<1x256xi1>
    %cst_181 = arith.constant 0.000000e+00 : f32
    %220 = vector.broadcast %cst_181 : f32 to vector<1x256xf32>
    %221 = arith.select %219, %218, %220 : vector<1x256xi1>, vector<1x256xf32>
    %222 = arith.addf %178, %221 : vector<1x256xf32>
    %c34_i32 = arith.constant 34 : i32
    %223 = tpu.dynamic_rotate %5 by %c34_i32 dim 1 : vector<1x256xf32>, i32 -> vector<1x256xf32>
    %c34_i32_182 = arith.constant 34 : i32
    %224 = tpu.dynamic_rotate %7 by %c34_i32_182 dim 1 : vector<1x256xf32>, i32 -> vector<1x256xf32>
    %225 = vector.broadcast %42 : f32 to vector<1x256xf32>
    %226 = arith.mulf %225, %223 : vector<1x256xf32>
    %227 = vector.broadcast %91 : f32 to vector<1x256xf32>
    %228 = arith.mulf %227, %224 : vector<1x256xf32>
    %229 = arith.addf %226, %228 : vector<1x256xf32>
    %230 = arith.andi %21, %25 : vector<1x256xi1>
    %cst_183 = arith.constant 0.000000e+00 : f32
    %231 = vector.broadcast %cst_183 : f32 to vector<1x256xf32>
    %232 = arith.select %230, %229, %231 : vector<1x256xi1>, vector<1x256xf32>
    %233 = arith.addf %189, %232 : vector<1x256xf32>
    %c33_i32 = arith.constant 33 : i32
    %234 = tpu.dynamic_rotate %5 by %c33_i32 dim 1 : vector<1x256xf32>, i32 -> vector<1x256xf32>
    %c33_i32_184 = arith.constant 33 : i32
    %235 = tpu.dynamic_rotate %7 by %c33_i32_184 dim 1 : vector<1x256xf32>, i32 -> vector<1x256xf32>
    %236 = vector.broadcast %43 : f32 to vector<1x256xf32>
    %237 = arith.mulf %236, %234 : vector<1x256xf32>
    %238 = vector.broadcast %92 : f32 to vector<1x256xf32>
    %239 = arith.mulf %238, %235 : vector<1x256xf32>
    %240 = arith.addf %237, %239 : vector<1x256xf32>
    %241 = arith.andi %21, %17 : vector<1x256xi1>
    %cst_185 = arith.constant 0.000000e+00 : f32
    %242 = vector.broadcast %cst_185 : f32 to vector<1x256xf32>
    %243 = arith.select %241, %240, %242 : vector<1x256xi1>, vector<1x256xf32>
    %244 = arith.addf %200, %243 : vector<1x256xf32>
    %c32_i32 = arith.constant 32 : i32
    %245 = tpu.dynamic_rotate %5 by %c32_i32 dim 1 : vector<1x256xf32>, i32 -> vector<1x256xf32>
    %c32_i32_186 = arith.constant 32 : i32
    %246 = tpu.dynamic_rotate %7 by %c32_i32_186 dim 1 : vector<1x256xf32>, i32 -> vector<1x256xf32>
    %247 = vector.broadcast %44 : f32 to vector<1x256xf32>
    %248 = arith.mulf %247, %245 : vector<1x256xf32>
    %249 = vector.broadcast %93 : f32 to vector<1x256xf32>
    %250 = arith.mulf %249, %246 : vector<1x256xf32>
    %251 = arith.addf %248, %250 : vector<1x256xf32>
    %cst_187 = arith.constant 0.000000e+00 : f32
    %252 = vector.broadcast %cst_187 : f32 to vector<1x256xf32>
    %253 = arith.select %21, %251, %252 : vector<1x256xi1>, vector<1x256xf32>
    %254 = arith.addf %211, %253 : vector<1x256xf32>
    %c31_i32 = arith.constant 31 : i32
    %255 = tpu.dynamic_rotate %5 by %c31_i32 dim 1 : vector<1x256xf32>, i32 -> vector<1x256xf32>
    %c31_i32_188 = arith.constant 31 : i32
    %256 = tpu.dynamic_rotate %7 by %c31_i32_188 dim 1 : vector<1x256xf32>, i32 -> vector<1x256xf32>
    %257 = vector.broadcast %45 : f32 to vector<1x256xf32>
    %258 = arith.mulf %257, %255 : vector<1x256xf32>
    %259 = vector.broadcast %94 : f32 to vector<1x256xf32>
    %260 = arith.mulf %259, %256 : vector<1x256xf32>
    %261 = arith.addf %258, %260 : vector<1x256xf32>
    %262 = arith.andi %21, %15 : vector<1x256xi1>
    %cst_189 = arith.constant 0.000000e+00 : f32
    %263 = vector.broadcast %cst_189 : f32 to vector<1x256xf32>
    %264 = arith.select %262, %261, %263 : vector<1x256xi1>, vector<1x256xf32>
    %265 = arith.addf %222, %264 : vector<1x256xf32>
    %c30_i32 = arith.constant 30 : i32
    %266 = tpu.dynamic_rotate %5 by %c30_i32 dim 1 : vector<1x256xf32>, i32 -> vector<1x256xf32>
    %c30_i32_190 = arith.constant 30 : i32
    %267 = tpu.dynamic_rotate %7 by %c30_i32_190 dim 1 : vector<1x256xf32>, i32 -> vector<1x256xf32>
    %268 = vector.broadcast %46 : f32 to vector<1x256xf32>
    %269 = arith.mulf %268, %266 : vector<1x256xf32>
    %270 = vector.broadcast %95 : f32 to vector<1x256xf32>
    %271 = arith.mulf %270, %267 : vector<1x256xf32>
    %272 = arith.addf %269, %271 : vector<1x256xf32>
    %273 = arith.andi %21, %23 : vector<1x256xi1>
    %cst_191 = arith.constant 0.000000e+00 : f32
    %274 = vector.broadcast %cst_191 : f32 to vector<1x256xf32>
    %275 = arith.select %273, %272, %274 : vector<1x256xi1>, vector<1x256xf32>
    %276 = arith.addf %233, %275 : vector<1x256xf32>
    %c29_i32 = arith.constant 29 : i32
    %277 = tpu.dynamic_rotate %5 by %c29_i32 dim 1 : vector<1x256xf32>, i32 -> vector<1x256xf32>
    %c29_i32_192 = arith.constant 29 : i32
    %278 = tpu.dynamic_rotate %7 by %c29_i32_192 dim 1 : vector<1x256xf32>, i32 -> vector<1x256xf32>
    %279 = vector.broadcast %47 : f32 to vector<1x256xf32>
    %280 = arith.mulf %279, %277 : vector<1x256xf32>
    %281 = vector.broadcast %96 : f32 to vector<1x256xf32>
    %282 = arith.mulf %281, %278 : vector<1x256xf32>
    %283 = arith.addf %280, %282 : vector<1x256xf32>
    %284 = arith.andi %21, %31 : vector<1x256xi1>
    %cst_193 = arith.constant 0.000000e+00 : f32
    %285 = vector.broadcast %cst_193 : f32 to vector<1x256xf32>
    %286 = arith.select %284, %283, %285 : vector<1x256xi1>, vector<1x256xf32>
    %287 = arith.addf %244, %286 : vector<1x256xf32>
    %c19_i32 = arith.constant 19 : i32
    %288 = tpu.dynamic_rotate %5 by %c19_i32 dim 1 : vector<1x256xf32>, i32 -> vector<1x256xf32>
    %c19_i32_194 = arith.constant 19 : i32
    %289 = tpu.dynamic_rotate %7 by %c19_i32_194 dim 1 : vector<1x256xf32>, i32 -> vector<1x256xf32>
    %290 = vector.broadcast %48 : f32 to vector<1x256xf32>
    %291 = arith.mulf %290, %288 : vector<1x256xf32>
    %292 = vector.broadcast %97 : f32 to vector<1x256xf32>
    %293 = arith.mulf %292, %289 : vector<1x256xf32>
    %294 = arith.addf %291, %293 : vector<1x256xf32>
    %295 = arith.andi %13, %33 : vector<1x256xi1>
    %cst_195 = arith.constant 0.000000e+00 : f32
    %296 = vector.broadcast %cst_195 : f32 to vector<1x256xf32>
    %297 = arith.select %295, %294, %296 : vector<1x256xi1>, vector<1x256xf32>
    %298 = arith.addf %254, %297 : vector<1x256xf32>
    %c18_i32 = arith.constant 18 : i32
    %299 = tpu.dynamic_rotate %5 by %c18_i32 dim 1 : vector<1x256xf32>, i32 -> vector<1x256xf32>
    %c18_i32_196 = arith.constant 18 : i32
    %300 = tpu.dynamic_rotate %7 by %c18_i32_196 dim 1 : vector<1x256xf32>, i32 -> vector<1x256xf32>
    %301 = vector.broadcast %49 : f32 to vector<1x256xf32>
    %302 = arith.mulf %301, %299 : vector<1x256xf32>
    %303 = vector.broadcast %98 : f32 to vector<1x256xf32>
    %304 = arith.mulf %303, %300 : vector<1x256xf32>
    %305 = arith.addf %302, %304 : vector<1x256xf32>
    %306 = arith.andi %13, %25 : vector<1x256xi1>
    %cst_197 = arith.constant 0.000000e+00 : f32
    %307 = vector.broadcast %cst_197 : f32 to vector<1x256xf32>
    %308 = arith.select %306, %305, %307 : vector<1x256xi1>, vector<1x256xf32>
    %309 = arith.addf %265, %308 : vector<1x256xf32>
    %c17_i32 = arith.constant 17 : i32
    %310 = tpu.dynamic_rotate %5 by %c17_i32 dim 1 : vector<1x256xf32>, i32 -> vector<1x256xf32>
    %c17_i32_198 = arith.constant 17 : i32
    %311 = tpu.dynamic_rotate %7 by %c17_i32_198 dim 1 : vector<1x256xf32>, i32 -> vector<1x256xf32>
    %312 = vector.broadcast %50 : f32 to vector<1x256xf32>
    %313 = arith.mulf %312, %310 : vector<1x256xf32>
    %314 = vector.broadcast %99 : f32 to vector<1x256xf32>
    %315 = arith.mulf %314, %311 : vector<1x256xf32>
    %316 = arith.addf %313, %315 : vector<1x256xf32>
    %317 = arith.andi %13, %17 : vector<1x256xi1>
    %cst_199 = arith.constant 0.000000e+00 : f32
    %318 = vector.broadcast %cst_199 : f32 to vector<1x256xf32>
    %319 = arith.select %317, %316, %318 : vector<1x256xi1>, vector<1x256xf32>
    %320 = arith.addf %276, %319 : vector<1x256xf32>
    %c16_i32 = arith.constant 16 : i32
    %321 = tpu.dynamic_rotate %5 by %c16_i32 dim 1 : vector<1x256xf32>, i32 -> vector<1x256xf32>
    %c16_i32_200 = arith.constant 16 : i32
    %322 = tpu.dynamic_rotate %7 by %c16_i32_200 dim 1 : vector<1x256xf32>, i32 -> vector<1x256xf32>
    %323 = vector.broadcast %51 : f32 to vector<1x256xf32>
    %324 = arith.mulf %323, %321 : vector<1x256xf32>
    %325 = vector.broadcast %100 : f32 to vector<1x256xf32>
    %326 = arith.mulf %325, %322 : vector<1x256xf32>
    %327 = arith.addf %324, %326 : vector<1x256xf32>
    %cst_201 = arith.constant 0.000000e+00 : f32
    %328 = vector.broadcast %cst_201 : f32 to vector<1x256xf32>
    %329 = arith.select %13, %327, %328 : vector<1x256xi1>, vector<1x256xf32>
    %330 = arith.addf %287, %329 : vector<1x256xf32>
    %c15_i32_202 = arith.constant 15 : i32
    %331 = tpu.dynamic_rotate %5 by %c15_i32_202 dim 1 : vector<1x256xf32>, i32 -> vector<1x256xf32>
    %c15_i32_203 = arith.constant 15 : i32
    %332 = tpu.dynamic_rotate %7 by %c15_i32_203 dim 1 : vector<1x256xf32>, i32 -> vector<1x256xf32>
    %333 = vector.broadcast %52 : f32 to vector<1x256xf32>
    %334 = arith.mulf %333, %331 : vector<1x256xf32>
    %335 = vector.broadcast %101 : f32 to vector<1x256xf32>
    %336 = arith.mulf %335, %332 : vector<1x256xf32>
    %337 = arith.addf %334, %336 : vector<1x256xf32>
    %338 = arith.andi %13, %15 : vector<1x256xi1>
    %cst_204 = arith.constant 0.000000e+00 : f32
    %339 = vector.broadcast %cst_204 : f32 to vector<1x256xf32>
    %340 = arith.select %338, %337, %339 : vector<1x256xi1>, vector<1x256xf32>
    %341 = arith.addf %298, %340 : vector<1x256xf32>
    %c14_i32_205 = arith.constant 14 : i32
    %342 = tpu.dynamic_rotate %5 by %c14_i32_205 dim 1 : vector<1x256xf32>, i32 -> vector<1x256xf32>
    %c14_i32_206 = arith.constant 14 : i32
    %343 = tpu.dynamic_rotate %7 by %c14_i32_206 dim 1 : vector<1x256xf32>, i32 -> vector<1x256xf32>
    %344 = vector.broadcast %53 : f32 to vector<1x256xf32>
    %345 = arith.mulf %344, %342 : vector<1x256xf32>
    %346 = vector.broadcast %102 : f32 to vector<1x256xf32>
    %347 = arith.mulf %346, %343 : vector<1x256xf32>
    %348 = arith.addf %345, %347 : vector<1x256xf32>
    %349 = arith.andi %13, %23 : vector<1x256xi1>
    %cst_207 = arith.constant 0.000000e+00 : f32
    %350 = vector.broadcast %cst_207 : f32 to vector<1x256xf32>
    %351 = arith.select %349, %348, %350 : vector<1x256xi1>, vector<1x256xf32>
    %352 = arith.addf %309, %351 : vector<1x256xf32>
    %c13_i32_208 = arith.constant 13 : i32
    %353 = tpu.dynamic_rotate %5 by %c13_i32_208 dim 1 : vector<1x256xf32>, i32 -> vector<1x256xf32>
    %c13_i32_209 = arith.constant 13 : i32
    %354 = tpu.dynamic_rotate %7 by %c13_i32_209 dim 1 : vector<1x256xf32>, i32 -> vector<1x256xf32>
    %355 = vector.broadcast %54 : f32 to vector<1x256xf32>
    %356 = arith.mulf %355, %353 : vector<1x256xf32>
    %357 = vector.broadcast %103 : f32 to vector<1x256xf32>
    %358 = arith.mulf %357, %354 : vector<1x256xf32>
    %359 = arith.addf %356, %358 : vector<1x256xf32>
    %360 = arith.andi %13, %31 : vector<1x256xi1>
    %cst_210 = arith.constant 0.000000e+00 : f32
    %361 = vector.broadcast %cst_210 : f32 to vector<1x256xf32>
    %362 = arith.select %360, %359, %361 : vector<1x256xi1>, vector<1x256xf32>
    %363 = arith.addf %320, %362 : vector<1x256xf32>
    %c3_i32_211 = arith.constant 3 : i32
    %364 = tpu.dynamic_rotate %5 by %c3_i32_211 dim 1 : vector<1x256xf32>, i32 -> vector<1x256xf32>
    %c3_i32_212 = arith.constant 3 : i32
    %365 = tpu.dynamic_rotate %7 by %c3_i32_212 dim 1 : vector<1x256xf32>, i32 -> vector<1x256xf32>
    %366 = vector.broadcast %55 : f32 to vector<1x256xf32>
    %367 = arith.mulf %366, %364 : vector<1x256xf32>
    %368 = vector.broadcast %104 : f32 to vector<1x256xf32>
    %369 = arith.mulf %368, %365 : vector<1x256xf32>
    %370 = arith.addf %367, %369 : vector<1x256xf32>
    %cst_213 = arith.constant 0.000000e+00 : f32
    %371 = vector.broadcast %cst_213 : f32 to vector<1x256xf32>
    %372 = arith.select %33, %370, %371 : vector<1x256xi1>, vector<1x256xf32>
    %373 = arith.addf %330, %372 : vector<1x256xf32>
    %c2_i32_214 = arith.constant 2 : i32
    %374 = tpu.dynamic_rotate %5 by %c2_i32_214 dim 1 : vector<1x256xf32>, i32 -> vector<1x256xf32>
    %c2_i32_215 = arith.constant 2 : i32
    %375 = tpu.dynamic_rotate %7 by %c2_i32_215 dim 1 : vector<1x256xf32>, i32 -> vector<1x256xf32>
    %376 = vector.broadcast %56 : f32 to vector<1x256xf32>
    %377 = arith.mulf %376, %374 : vector<1x256xf32>
    %378 = vector.broadcast %105 : f32 to vector<1x256xf32>
    %379 = arith.mulf %378, %375 : vector<1x256xf32>
    %380 = arith.addf %377, %379 : vector<1x256xf32>
    %cst_216 = arith.constant 0.000000e+00 : f32
    %381 = vector.broadcast %cst_216 : f32 to vector<1x256xf32>
    %382 = arith.select %25, %380, %381 : vector<1x256xi1>, vector<1x256xf32>
    %383 = arith.addf %341, %382 : vector<1x256xf32>
    %c1_i32_217 = arith.constant 1 : i32
    %384 = tpu.dynamic_rotate %5 by %c1_i32_217 dim 1 : vector<1x256xf32>, i32 -> vector<1x256xf32>
    %c1_i32_218 = arith.constant 1 : i32
    %385 = tpu.dynamic_rotate %7 by %c1_i32_218 dim 1 : vector<1x256xf32>, i32 -> vector<1x256xf32>
    %386 = vector.broadcast %57 : f32 to vector<1x256xf32>
    %387 = arith.mulf %386, %384 : vector<1x256xf32>
    %388 = vector.broadcast %106 : f32 to vector<1x256xf32>
    %389 = arith.mulf %388, %385 : vector<1x256xf32>
    %390 = arith.addf %387, %389 : vector<1x256xf32>
    %cst_219 = arith.constant 0.000000e+00 : f32
    %391 = vector.broadcast %cst_219 : f32 to vector<1x256xf32>
    %392 = arith.select %17, %390, %391 : vector<1x256xi1>, vector<1x256xf32>
    %393 = arith.addf %352, %392 : vector<1x256xf32>
    %394 = vector.broadcast %58 : f32 to vector<1x256xf32>
    %395 = arith.mulf %394, %5 : vector<1x256xf32>
    %396 = vector.broadcast %107 : f32 to vector<1x256xf32>
    %397 = arith.mulf %396, %7 : vector<1x256xf32>
    %398 = arith.addf %395, %397 : vector<1x256xf32>
    %399 = arith.addf %363, %398 : vector<1x256xf32>
    %c255_i32 = arith.constant 255 : i32
    %400 = tpu.dynamic_rotate %5 by %c255_i32 dim 1 : vector<1x256xf32>, i32 -> vector<1x256xf32>
    %c255_i32_220 = arith.constant 255 : i32
    %401 = tpu.dynamic_rotate %7 by %c255_i32_220 dim 1 : vector<1x256xf32>, i32 -> vector<1x256xf32>
    %402 = vector.broadcast %59 : f32 to vector<1x256xf32>
    %403 = arith.mulf %402, %400 : vector<1x256xf32>
    %404 = vector.broadcast %108 : f32 to vector<1x256xf32>
    %405 = arith.mulf %404, %401 : vector<1x256xf32>
    %406 = arith.addf %403, %405 : vector<1x256xf32>
    %cst_221 = arith.constant 0.000000e+00 : f32
    %407 = vector.broadcast %cst_221 : f32 to vector<1x256xf32>
    %408 = arith.select %15, %406, %407 : vector<1x256xi1>, vector<1x256xf32>
    %409 = arith.addf %373, %408 : vector<1x256xf32>
    %c254_i32 = arith.constant 254 : i32
    %410 = tpu.dynamic_rotate %5 by %c254_i32 dim 1 : vector<1x256xf32>, i32 -> vector<1x256xf32>
    %c254_i32_222 = arith.constant 254 : i32
    %411 = tpu.dynamic_rotate %7 by %c254_i32_222 dim 1 : vector<1x256xf32>, i32 -> vector<1x256xf32>
    %412 = vector.broadcast %60 : f32 to vector<1x256xf32>
    %413 = arith.mulf %412, %410 : vector<1x256xf32>
    %414 = vector.broadcast %109 : f32 to vector<1x256xf32>
    %415 = arith.mulf %414, %411 : vector<1x256xf32>
    %416 = arith.addf %413, %415 : vector<1x256xf32>
    %cst_223 = arith.constant 0.000000e+00 : f32
    %417 = vector.broadcast %cst_223 : f32 to vector<1x256xf32>
    %418 = arith.select %23, %416, %417 : vector<1x256xi1>, vector<1x256xf32>
    %419 = arith.addf %383, %418 : vector<1x256xf32>
    %c253_i32 = arith.constant 253 : i32
    %420 = tpu.dynamic_rotate %5 by %c253_i32 dim 1 : vector<1x256xf32>, i32 -> vector<1x256xf32>
    %c253_i32_224 = arith.constant 253 : i32
    %421 = tpu.dynamic_rotate %7 by %c253_i32_224 dim 1 : vector<1x256xf32>, i32 -> vector<1x256xf32>
    %422 = vector.broadcast %61 : f32 to vector<1x256xf32>
    %423 = arith.mulf %422, %420 : vector<1x256xf32>
    %424 = vector.broadcast %110 : f32 to vector<1x256xf32>
    %425 = arith.mulf %424, %421 : vector<1x256xf32>
    %426 = arith.addf %423, %425 : vector<1x256xf32>
    %cst_225 = arith.constant 0.000000e+00 : f32
    %427 = vector.broadcast %cst_225 : f32 to vector<1x256xf32>
    %428 = arith.select %31, %426, %427 : vector<1x256xi1>, vector<1x256xf32>
    %429 = arith.addf %393, %428 : vector<1x256xf32>
    %c243_i32 = arith.constant 243 : i32
    %430 = tpu.dynamic_rotate %5 by %c243_i32 dim 1 : vector<1x256xf32>, i32 -> vector<1x256xf32>
    %c243_i32_226 = arith.constant 243 : i32
    %431 = tpu.dynamic_rotate %7 by %c243_i32_226 dim 1 : vector<1x256xf32>, i32 -> vector<1x256xf32>
    %432 = vector.broadcast %62 : f32 to vector<1x256xf32>
    %433 = arith.mulf %432, %430 : vector<1x256xf32>
    %434 = vector.broadcast %111 : f32 to vector<1x256xf32>
    %435 = arith.mulf %434, %431 : vector<1x256xf32>
    %436 = arith.addf %433, %435 : vector<1x256xf32>
    %437 = arith.andi %11, %33 : vector<1x256xi1>
    %cst_227 = arith.constant 0.000000e+00 : f32
    %438 = vector.broadcast %cst_227 : f32 to vector<1x256xf32>
    %439 = arith.select %437, %436, %438 : vector<1x256xi1>, vector<1x256xf32>
    %440 = arith.addf %399, %439 : vector<1x256xf32>
    %c242_i32 = arith.constant 242 : i32
    %441 = tpu.dynamic_rotate %5 by %c242_i32 dim 1 : vector<1x256xf32>, i32 -> vector<1x256xf32>
    %c242_i32_228 = arith.constant 242 : i32
    %442 = tpu.dynamic_rotate %7 by %c242_i32_228 dim 1 : vector<1x256xf32>, i32 -> vector<1x256xf32>
    %443 = vector.broadcast %63 : f32 to vector<1x256xf32>
    %444 = arith.mulf %443, %441 : vector<1x256xf32>
    %445 = vector.broadcast %112 : f32 to vector<1x256xf32>
    %446 = arith.mulf %445, %442 : vector<1x256xf32>
    %447 = arith.addf %444, %446 : vector<1x256xf32>
    %448 = arith.andi %11, %25 : vector<1x256xi1>
    %cst_229 = arith.constant 0.000000e+00 : f32
    %449 = vector.broadcast %cst_229 : f32 to vector<1x256xf32>
    %450 = arith.select %448, %447, %449 : vector<1x256xi1>, vector<1x256xf32>
    %451 = arith.addf %409, %450 : vector<1x256xf32>
    %c241_i32 = arith.constant 241 : i32
    %452 = tpu.dynamic_rotate %5 by %c241_i32 dim 1 : vector<1x256xf32>, i32 -> vector<1x256xf32>
    %c241_i32_230 = arith.constant 241 : i32
    %453 = tpu.dynamic_rotate %7 by %c241_i32_230 dim 1 : vector<1x256xf32>, i32 -> vector<1x256xf32>
    %454 = vector.broadcast %64 : f32 to vector<1x256xf32>
    %455 = arith.mulf %454, %452 : vector<1x256xf32>
    %456 = vector.broadcast %113 : f32 to vector<1x256xf32>
    %457 = arith.mulf %456, %453 : vector<1x256xf32>
    %458 = arith.addf %455, %457 : vector<1x256xf32>
    %459 = arith.andi %11, %17 : vector<1x256xi1>
    %cst_231 = arith.constant 0.000000e+00 : f32
    %460 = vector.broadcast %cst_231 : f32 to vector<1x256xf32>
    %461 = arith.select %459, %458, %460 : vector<1x256xi1>, vector<1x256xf32>
    %462 = arith.addf %419, %461 : vector<1x256xf32>
    %c240_i32 = arith.constant 240 : i32
    %463 = tpu.dynamic_rotate %5 by %c240_i32 dim 1 : vector<1x256xf32>, i32 -> vector<1x256xf32>
    %c240_i32_232 = arith.constant 240 : i32
    %464 = tpu.dynamic_rotate %7 by %c240_i32_232 dim 1 : vector<1x256xf32>, i32 -> vector<1x256xf32>
    %465 = vector.broadcast %65 : f32 to vector<1x256xf32>
    %466 = arith.mulf %465, %463 : vector<1x256xf32>
    %467 = vector.broadcast %114 : f32 to vector<1x256xf32>
    %468 = arith.mulf %467, %464 : vector<1x256xf32>
    %469 = arith.addf %466, %468 : vector<1x256xf32>
    %cst_233 = arith.constant 0.000000e+00 : f32
    %470 = vector.broadcast %cst_233 : f32 to vector<1x256xf32>
    %471 = arith.select %11, %469, %470 : vector<1x256xi1>, vector<1x256xf32>
    %472 = arith.addf %429, %471 : vector<1x256xf32>
    %c239_i32 = arith.constant 239 : i32
    %473 = tpu.dynamic_rotate %5 by %c239_i32 dim 1 : vector<1x256xf32>, i32 -> vector<1x256xf32>
    %c239_i32_234 = arith.constant 239 : i32
    %474 = tpu.dynamic_rotate %7 by %c239_i32_234 dim 1 : vector<1x256xf32>, i32 -> vector<1x256xf32>
    %475 = vector.broadcast %66 : f32 to vector<1x256xf32>
    %476 = arith.mulf %475, %473 : vector<1x256xf32>
    %477 = vector.broadcast %115 : f32 to vector<1x256xf32>
    %478 = arith.mulf %477, %474 : vector<1x256xf32>
    %479 = arith.addf %476, %478 : vector<1x256xf32>
    %480 = arith.andi %11, %15 : vector<1x256xi1>
    %cst_235 = arith.constant 0.000000e+00 : f32
    %481 = vector.broadcast %cst_235 : f32 to vector<1x256xf32>
    %482 = arith.select %480, %479, %481 : vector<1x256xi1>, vector<1x256xf32>
    %483 = arith.addf %440, %482 : vector<1x256xf32>
    %c238_i32 = arith.constant 238 : i32
    %484 = tpu.dynamic_rotate %5 by %c238_i32 dim 1 : vector<1x256xf32>, i32 -> vector<1x256xf32>
    %c238_i32_236 = arith.constant 238 : i32
    %485 = tpu.dynamic_rotate %7 by %c238_i32_236 dim 1 : vector<1x256xf32>, i32 -> vector<1x256xf32>
    %486 = vector.broadcast %67 : f32 to vector<1x256xf32>
    %487 = arith.mulf %486, %484 : vector<1x256xf32>
    %488 = vector.broadcast %116 : f32 to vector<1x256xf32>
    %489 = arith.mulf %488, %485 : vector<1x256xf32>
    %490 = arith.addf %487, %489 : vector<1x256xf32>
    %491 = arith.andi %11, %23 : vector<1x256xi1>
    %cst_237 = arith.constant 0.000000e+00 : f32
    %492 = vector.broadcast %cst_237 : f32 to vector<1x256xf32>
    %493 = arith.select %491, %490, %492 : vector<1x256xi1>, vector<1x256xf32>
    %494 = arith.addf %451, %493 : vector<1x256xf32>
    %c237_i32 = arith.constant 237 : i32
    %495 = tpu.dynamic_rotate %5 by %c237_i32 dim 1 : vector<1x256xf32>, i32 -> vector<1x256xf32>
    %c237_i32_238 = arith.constant 237 : i32
    %496 = tpu.dynamic_rotate %7 by %c237_i32_238 dim 1 : vector<1x256xf32>, i32 -> vector<1x256xf32>
    %497 = vector.broadcast %68 : f32 to vector<1x256xf32>
    %498 = arith.mulf %497, %495 : vector<1x256xf32>
    %499 = vector.broadcast %117 : f32 to vector<1x256xf32>
    %500 = arith.mulf %499, %496 : vector<1x256xf32>
    %501 = arith.addf %498, %500 : vector<1x256xf32>
    %502 = arith.andi %11, %31 : vector<1x256xi1>
    %cst_239 = arith.constant 0.000000e+00 : f32
    %503 = vector.broadcast %cst_239 : f32 to vector<1x256xf32>
    %504 = arith.select %502, %501, %503 : vector<1x256xi1>, vector<1x256xf32>
    %505 = arith.addf %462, %504 : vector<1x256xf32>
    %c227_i32 = arith.constant 227 : i32
    %506 = tpu.dynamic_rotate %5 by %c227_i32 dim 1 : vector<1x256xf32>, i32 -> vector<1x256xf32>
    %c227_i32_240 = arith.constant 227 : i32
    %507 = tpu.dynamic_rotate %7 by %c227_i32_240 dim 1 : vector<1x256xf32>, i32 -> vector<1x256xf32>
    %508 = vector.broadcast %69 : f32 to vector<1x256xf32>
    %509 = arith.mulf %508, %506 : vector<1x256xf32>
    %510 = vector.broadcast %118 : f32 to vector<1x256xf32>
    %511 = arith.mulf %510, %507 : vector<1x256xf32>
    %512 = arith.addf %509, %511 : vector<1x256xf32>
    %513 = arith.andi %19, %33 : vector<1x256xi1>
    %cst_241 = arith.constant 0.000000e+00 : f32
    %514 = vector.broadcast %cst_241 : f32 to vector<1x256xf32>
    %515 = arith.select %513, %512, %514 : vector<1x256xi1>, vector<1x256xf32>
    %516 = arith.addf %472, %515 : vector<1x256xf32>
    %c226_i32 = arith.constant 226 : i32
    %517 = tpu.dynamic_rotate %5 by %c226_i32 dim 1 : vector<1x256xf32>, i32 -> vector<1x256xf32>
    %c226_i32_242 = arith.constant 226 : i32
    %518 = tpu.dynamic_rotate %7 by %c226_i32_242 dim 1 : vector<1x256xf32>, i32 -> vector<1x256xf32>
    %519 = vector.broadcast %70 : f32 to vector<1x256xf32>
    %520 = arith.mulf %519, %517 : vector<1x256xf32>
    %521 = vector.broadcast %119 : f32 to vector<1x256xf32>
    %522 = arith.mulf %521, %518 : vector<1x256xf32>
    %523 = arith.addf %520, %522 : vector<1x256xf32>
    %524 = arith.andi %19, %25 : vector<1x256xi1>
    %cst_243 = arith.constant 0.000000e+00 : f32
    %525 = vector.broadcast %cst_243 : f32 to vector<1x256xf32>
    %526 = arith.select %524, %523, %525 : vector<1x256xi1>, vector<1x256xf32>
    %527 = arith.addf %483, %526 : vector<1x256xf32>
    %c225_i32 = arith.constant 225 : i32
    %528 = tpu.dynamic_rotate %5 by %c225_i32 dim 1 : vector<1x256xf32>, i32 -> vector<1x256xf32>
    %c225_i32_244 = arith.constant 225 : i32
    %529 = tpu.dynamic_rotate %7 by %c225_i32_244 dim 1 : vector<1x256xf32>, i32 -> vector<1x256xf32>
    %530 = vector.broadcast %71 : f32 to vector<1x256xf32>
    %531 = arith.mulf %530, %528 : vector<1x256xf32>
    %532 = vector.broadcast %120 : f32 to vector<1x256xf32>
    %533 = arith.mulf %532, %529 : vector<1x256xf32>
    %534 = arith.addf %531, %533 : vector<1x256xf32>
    %535 = arith.andi %19, %17 : vector<1x256xi1>
    %cst_245 = arith.constant 0.000000e+00 : f32
    %536 = vector.broadcast %cst_245 : f32 to vector<1x256xf32>
    %537 = arith.select %535, %534, %536 : vector<1x256xi1>, vector<1x256xf32>
    %538 = arith.addf %494, %537 : vector<1x256xf32>
    %c224_i32 = arith.constant 224 : i32
    %539 = tpu.dynamic_rotate %5 by %c224_i32 dim 1 : vector<1x256xf32>, i32 -> vector<1x256xf32>
    %c224_i32_246 = arith.constant 224 : i32
    %540 = tpu.dynamic_rotate %7 by %c224_i32_246 dim 1 : vector<1x256xf32>, i32 -> vector<1x256xf32>
    %541 = vector.broadcast %72 : f32 to vector<1x256xf32>
    %542 = arith.mulf %541, %539 : vector<1x256xf32>
    %543 = vector.broadcast %121 : f32 to vector<1x256xf32>
    %544 = arith.mulf %543, %540 : vector<1x256xf32>
    %545 = arith.addf %542, %544 : vector<1x256xf32>
    %cst_247 = arith.constant 0.000000e+00 : f32
    %546 = vector.broadcast %cst_247 : f32 to vector<1x256xf32>
    %547 = arith.select %19, %545, %546 : vector<1x256xi1>, vector<1x256xf32>
    %548 = arith.addf %505, %547 : vector<1x256xf32>
    %c223_i32 = arith.constant 223 : i32
    %549 = tpu.dynamic_rotate %5 by %c223_i32 dim 1 : vector<1x256xf32>, i32 -> vector<1x256xf32>
    %c223_i32_248 = arith.constant 223 : i32
    %550 = tpu.dynamic_rotate %7 by %c223_i32_248 dim 1 : vector<1x256xf32>, i32 -> vector<1x256xf32>
    %551 = vector.broadcast %73 : f32 to vector<1x256xf32>
    %552 = arith.mulf %551, %549 : vector<1x256xf32>
    %553 = vector.broadcast %122 : f32 to vector<1x256xf32>
    %554 = arith.mulf %553, %550 : vector<1x256xf32>
    %555 = arith.addf %552, %554 : vector<1x256xf32>
    %556 = arith.andi %19, %15 : vector<1x256xi1>
    %cst_249 = arith.constant 0.000000e+00 : f32
    %557 = vector.broadcast %cst_249 : f32 to vector<1x256xf32>
    %558 = arith.select %556, %555, %557 : vector<1x256xi1>, vector<1x256xf32>
    %559 = arith.addf %516, %558 : vector<1x256xf32>
    %c222_i32 = arith.constant 222 : i32
    %560 = tpu.dynamic_rotate %5 by %c222_i32 dim 1 : vector<1x256xf32>, i32 -> vector<1x256xf32>
    %c222_i32_250 = arith.constant 222 : i32
    %561 = tpu.dynamic_rotate %7 by %c222_i32_250 dim 1 : vector<1x256xf32>, i32 -> vector<1x256xf32>
    %562 = vector.broadcast %74 : f32 to vector<1x256xf32>
    %563 = arith.mulf %562, %560 : vector<1x256xf32>
    %564 = vector.broadcast %123 : f32 to vector<1x256xf32>
    %565 = arith.mulf %564, %561 : vector<1x256xf32>
    %566 = arith.addf %563, %565 : vector<1x256xf32>
    %567 = arith.andi %19, %23 : vector<1x256xi1>
    %cst_251 = arith.constant 0.000000e+00 : f32
    %568 = vector.broadcast %cst_251 : f32 to vector<1x256xf32>
    %569 = arith.select %567, %566, %568 : vector<1x256xi1>, vector<1x256xf32>
    %570 = arith.addf %527, %569 : vector<1x256xf32>
    %c221_i32 = arith.constant 221 : i32
    %571 = tpu.dynamic_rotate %5 by %c221_i32 dim 1 : vector<1x256xf32>, i32 -> vector<1x256xf32>
    %c221_i32_252 = arith.constant 221 : i32
    %572 = tpu.dynamic_rotate %7 by %c221_i32_252 dim 1 : vector<1x256xf32>, i32 -> vector<1x256xf32>
    %573 = vector.broadcast %75 : f32 to vector<1x256xf32>
    %574 = arith.mulf %573, %571 : vector<1x256xf32>
    %575 = vector.broadcast %124 : f32 to vector<1x256xf32>
    %576 = arith.mulf %575, %572 : vector<1x256xf32>
    %577 = arith.addf %574, %576 : vector<1x256xf32>
    %578 = arith.andi %19, %31 : vector<1x256xi1>
    %cst_253 = arith.constant 0.000000e+00 : f32
    %579 = vector.broadcast %cst_253 : f32 to vector<1x256xf32>
    %580 = arith.select %578, %577, %579 : vector<1x256xi1>, vector<1x256xf32>
    %581 = arith.addf %538, %580 : vector<1x256xf32>
    %c211_i32 = arith.constant 211 : i32
    %582 = tpu.dynamic_rotate %5 by %c211_i32 dim 1 : vector<1x256xf32>, i32 -> vector<1x256xf32>
    %c211_i32_254 = arith.constant 211 : i32
    %583 = tpu.dynamic_rotate %7 by %c211_i32_254 dim 1 : vector<1x256xf32>, i32 -> vector<1x256xf32>
    %584 = vector.broadcast %76 : f32 to vector<1x256xf32>
    %585 = arith.mulf %584, %582 : vector<1x256xf32>
    %586 = vector.broadcast %125 : f32 to vector<1x256xf32>
    %587 = arith.mulf %586, %583 : vector<1x256xf32>
    %588 = arith.addf %585, %587 : vector<1x256xf32>
    %589 = arith.andi %27, %33 : vector<1x256xi1>
    %cst_255 = arith.constant 0.000000e+00 : f32
    %590 = vector.broadcast %cst_255 : f32 to vector<1x256xf32>
    %591 = arith.select %589, %588, %590 : vector<1x256xi1>, vector<1x256xf32>
    %592 = arith.addf %548, %591 : vector<1x256xf32>
    %c210_i32 = arith.constant 210 : i32
    %593 = tpu.dynamic_rotate %5 by %c210_i32 dim 1 : vector<1x256xf32>, i32 -> vector<1x256xf32>
    %c210_i32_256 = arith.constant 210 : i32
    %594 = tpu.dynamic_rotate %7 by %c210_i32_256 dim 1 : vector<1x256xf32>, i32 -> vector<1x256xf32>
    %595 = vector.broadcast %77 : f32 to vector<1x256xf32>
    %596 = arith.mulf %595, %593 : vector<1x256xf32>
    %597 = vector.broadcast %126 : f32 to vector<1x256xf32>
    %598 = arith.mulf %597, %594 : vector<1x256xf32>
    %599 = arith.addf %596, %598 : vector<1x256xf32>
    %600 = arith.andi %27, %25 : vector<1x256xi1>
    %cst_257 = arith.constant 0.000000e+00 : f32
    %601 = vector.broadcast %cst_257 : f32 to vector<1x256xf32>
    %602 = arith.select %600, %599, %601 : vector<1x256xi1>, vector<1x256xf32>
    %603 = arith.addf %559, %602 : vector<1x256xf32>
    %c209_i32 = arith.constant 209 : i32
    %604 = tpu.dynamic_rotate %5 by %c209_i32 dim 1 : vector<1x256xf32>, i32 -> vector<1x256xf32>
    %c209_i32_258 = arith.constant 209 : i32
    %605 = tpu.dynamic_rotate %7 by %c209_i32_258 dim 1 : vector<1x256xf32>, i32 -> vector<1x256xf32>
    %606 = vector.broadcast %78 : f32 to vector<1x256xf32>
    %607 = arith.mulf %606, %604 : vector<1x256xf32>
    %608 = vector.broadcast %127 : f32 to vector<1x256xf32>
    %609 = arith.mulf %608, %605 : vector<1x256xf32>
    %610 = arith.addf %607, %609 : vector<1x256xf32>
    %611 = arith.andi %27, %17 : vector<1x256xi1>
    %cst_259 = arith.constant 0.000000e+00 : f32
    %612 = vector.broadcast %cst_259 : f32 to vector<1x256xf32>
    %613 = arith.select %611, %610, %612 : vector<1x256xi1>, vector<1x256xf32>
    %614 = arith.addf %570, %613 : vector<1x256xf32>
    %c208_i32 = arith.constant 208 : i32
    %615 = tpu.dynamic_rotate %5 by %c208_i32 dim 1 : vector<1x256xf32>, i32 -> vector<1x256xf32>
    %c208_i32_260 = arith.constant 208 : i32
    %616 = tpu.dynamic_rotate %7 by %c208_i32_260 dim 1 : vector<1x256xf32>, i32 -> vector<1x256xf32>
    %617 = vector.broadcast %79 : f32 to vector<1x256xf32>
    %618 = arith.mulf %617, %615 : vector<1x256xf32>
    %619 = vector.broadcast %128 : f32 to vector<1x256xf32>
    %620 = arith.mulf %619, %616 : vector<1x256xf32>
    %621 = arith.addf %618, %620 : vector<1x256xf32>
    %cst_261 = arith.constant 0.000000e+00 : f32
    %622 = vector.broadcast %cst_261 : f32 to vector<1x256xf32>
    %623 = arith.select %27, %621, %622 : vector<1x256xi1>, vector<1x256xf32>
    %624 = arith.addf %581, %623 : vector<1x256xf32>
    %c207_i32 = arith.constant 207 : i32
    %625 = tpu.dynamic_rotate %5 by %c207_i32 dim 1 : vector<1x256xf32>, i32 -> vector<1x256xf32>
    %c207_i32_262 = arith.constant 207 : i32
    %626 = tpu.dynamic_rotate %7 by %c207_i32_262 dim 1 : vector<1x256xf32>, i32 -> vector<1x256xf32>
    %627 = vector.broadcast %80 : f32 to vector<1x256xf32>
    %628 = arith.mulf %627, %625 : vector<1x256xf32>
    %629 = vector.broadcast %129 : f32 to vector<1x256xf32>
    %630 = arith.mulf %629, %626 : vector<1x256xf32>
    %631 = arith.addf %628, %630 : vector<1x256xf32>
    %632 = arith.andi %27, %15 : vector<1x256xi1>
    %cst_263 = arith.constant 0.000000e+00 : f32
    %633 = vector.broadcast %cst_263 : f32 to vector<1x256xf32>
    %634 = arith.select %632, %631, %633 : vector<1x256xi1>, vector<1x256xf32>
    %635 = arith.addf %592, %634 : vector<1x256xf32>
    %c206_i32 = arith.constant 206 : i32
    %636 = tpu.dynamic_rotate %5 by %c206_i32 dim 1 : vector<1x256xf32>, i32 -> vector<1x256xf32>
    %c206_i32_264 = arith.constant 206 : i32
    %637 = tpu.dynamic_rotate %7 by %c206_i32_264 dim 1 : vector<1x256xf32>, i32 -> vector<1x256xf32>
    %638 = vector.broadcast %81 : f32 to vector<1x256xf32>
    %639 = arith.mulf %638, %636 : vector<1x256xf32>
    %640 = vector.broadcast %130 : f32 to vector<1x256xf32>
    %641 = arith.mulf %640, %637 : vector<1x256xf32>
    %642 = arith.addf %639, %641 : vector<1x256xf32>
    %643 = arith.andi %27, %23 : vector<1x256xi1>
    %cst_265 = arith.constant 0.000000e+00 : f32
    %644 = vector.broadcast %cst_265 : f32 to vector<1x256xf32>
    %645 = arith.select %643, %642, %644 : vector<1x256xi1>, vector<1x256xf32>
    %646 = arith.addf %603, %645 : vector<1x256xf32>
    %c205_i32 = arith.constant 205 : i32
    %647 = tpu.dynamic_rotate %5 by %c205_i32 dim 1 : vector<1x256xf32>, i32 -> vector<1x256xf32>
    %c205_i32_266 = arith.constant 205 : i32
    %648 = tpu.dynamic_rotate %7 by %c205_i32_266 dim 1 : vector<1x256xf32>, i32 -> vector<1x256xf32>
    %649 = vector.broadcast %82 : f32 to vector<1x256xf32>
    %650 = arith.mulf %649, %647 : vector<1x256xf32>
    %651 = vector.broadcast %131 : f32 to vector<1x256xf32>
    %652 = arith.mulf %651, %648 : vector<1x256xf32>
    %653 = arith.addf %650, %652 : vector<1x256xf32>
    %654 = arith.andi %27, %31 : vector<1x256xi1>
    %cst_267 = arith.constant 0.000000e+00 : f32
    %655 = vector.broadcast %cst_267 : f32 to vector<1x256xf32>
    %656 = arith.select %654, %653, %655 : vector<1x256xi1>, vector<1x256xf32>
    %657 = arith.addf %614, %656 : vector<1x256xf32>
    %658 = arith.addf %657, %624 : vector<1x256xf32>
    %659 = arith.addf %635, %646 : vector<1x256xf32>
    %660 = arith.addf %658, %659 : vector<1x256xf32>
    %661 = arith.negf %660 : vector<1x256xf32>
    %662 = math.exp %661 : vector<1x256xf32>
    %cst_268 = arith.constant 1.000000e+00 : f32
    %663 = vector.broadcast %cst_268 : f32 to vector<1x256xf32>
    %664 = arith.addf %663, %662 : vector<1x256xf32>
    %665 = arith.divf %663, %664 : vector<1x256xf32>
    %666 = vector.broadcast %665 : vector<1x256xf32> to vector<8x256xf32>
    %667 = arith.mulf %1, %666 : vector<8x256xf32>
    %c0_269 = arith.constant 0 : index
    %c0_270 = arith.constant 0 : index
    %c0_271 = arith.constant 0 : index
    %668 = vector.load %arg5[%c0_269, %c0_270, %c0_271] : memref<1x8x256xf32, #tpu.memory_space<vmem>>, vector<1x8x256xf32>
    %669 = vector.shape_cast %668 : vector<1x8x256xf32> to vector<8x256xf32>
    %670 = vector.shape_cast %667 : vector<8x256xf32> to vector<1x8x256xf32>
    tpu.vector_store %arg5[%c0_269, %c0_270, %c0_271], %670 {strides = array<i32>} : memref<1x8x256xf32, #tpu.memory_space<vmem>>, vector<1x8x256xf32>,
    return
  }
  func.func @transform_0(%arg0: i32) -> (i32, i32, i32) {
    %c0_i32 = arith.constant 0 : i32
    %c0_i32_0 = arith.constant 0 : i32
    %c0_i32_1 = arith.constant 0 : i32
    return %arg0, %c0_i32, %c0_i32_0 : i32, i32, i32
  }
  func.func @transform_1(%arg0: i32) -> (i32, i32) {
    %c0_i32 = arith.constant 0 : i32
    %c0_i32_0 = arith.constant 0 : i32
    %c0_i32_1 = arith.constant 0 : i32
    return %c0_i32, %c0_i32_0 : i32, i32
  }
  func.func @transform_2(%arg0: i32) -> (i32, i32) {
    %c0_i32 = arith.constant 0 : i32
    %c0_i32_0 = arith.constant 0 : i32
    %c0_i32_1 = arith.constant 0 : i32
    return %c0_i32, %c0_i32_0 : i32, i32
  }
  func.func @transform_3(%arg0: i32) -> (i32, i32) {
    %c0_i32 = arith.constant 0 : i32
    %c0_i32_0 = arith.constant 0 : i32
    %c0_i32_1 = arith.constant 0 : i32
    return %c0_i32, %c0_i32_0 : i32, i32
  }
  func.func @transform_4(%arg0: i32) -> (i32, i32, i32) {
    %c0_i32 = arith.constant 0 : i32
    %c0_i32_0 = arith.constant 0 : i32
    %c0_i32_1 = arith.constant 0 : i32
    return %arg0, %c0_i32, %c0_i32_0 : i32, i32, i32
  }
}

</mosaic_0001>

<bundles_post_ra>
// kernel: spatial_attention_pallas.1
= control target key start
LH: loop header
LB: loop body
LE: loop exit
PB: predicated region body
PF: predicated region fallthrough
CT: control target
= control target key end

     0   :  { %s4957_s0 = inlined_call_operand.vmem [shape: f32[2,8,256], index: 0, kind: input, shape index: {}]   ;;  %s4958_s1 = inlined_call_operand.vmem [shape: f32[2,49], index: 1, kind: input, shape index: {}]   ;;  %s4959_s2 = inlined_call_operand.vmem [shape: s32[1,256], index: 2, kind: input, shape index: {}]   ;;  %s4960_s3 = inlined_call_operand.vmem [shape: s32[1,256], index: 3, kind: input, shape index: {}]   ;;  %s4961_s4 = inlined_call_operand.vmem [shape: f32[2,8,256], index: 4, kind: output, shape index: {}]  }
   0x1   :  { %5013 = sst [smem:[#allocation41_spill]] %s4957_s0 }
   0x2   :  { %5014 = sst [smem:[#allocation42_spill]] %s4958_s1 }
   0x3   :  { %5015 = sst [smem:[#allocation43_spill]] %s4959_s2 }
   0x4   :  { %5016 = sst [smem:[#allocation44_spill]] %s4960_s3 }
   0x5   :  { %5017 = sst [smem:[#allocation45_spill]] %s4961_s4 }
   0x6   :  { %9 = vsyncpa [#allocation3], 0  ;;  %s2766_s15 = smov 0  }
   0x7 LB: > { %5018 = sst [smem:[#allocation5_spill]] %s2689_s15  ;;  %s2476_s16 = sadd.s32 4294967295, %s2689_s15   ;;  %s2689_s15 = sphi %s2766_s15, %s15_s15  }
   0x8   : > { %p2478_p0 = scmp.ge.s32.totalorder %s2689_s15, 1  ;;  %p135_p1 = scmp.lt.s32.totalorder %s2689_s15, 3 }
   0x9   : > { %s5019_s1 = sld [smem:[#allocation42_spill]]  ;;  %p2597_p3 = scmp.eq.s32.totalorder %s2476_s16, 0 }
   0xa   : > { %p2777_p2 = pnand %p2478_p0, %p135_p1 }
   0xc   : > { %p2593_p4 = pneg %p2777_p2 }
   0xe   : > { %p2594_p5 = pnand %p2597_p3, %p2593_p4 }
   0xf   : > { %s148_s19 = sshll.u32 %s5019_s1, 4  ;;  %s149_s19 = int_to_ptr.vmem [resolvable:$true] %s148_s19 }
  0x10   : > { %s2664_s21 = scalar_lea.vmem %s149_s19, 32  ;;  %p2666_p7 = pneg %p2594_p5 }
  0x11   : > { %p2665_p6 = scmp.ne.s32.totalorder %s149_s19, %s2664_s21  ;;  %p2672_p10 = scmp.lt.s32.totalorder %s149_s19, %s149_s19 }
  0x12   : > { %p2673_p11 = scmp.lt.s32.totalorder %s2664_s21, %s2664_s21 }
  0x13   : > { %p2667_p8 = pnand %p2666_p7, %p2665_p6 }
  0x14   : > { %p2674_p12 = por %p2673_p11, %p2672_p10 }
  0x15   : > { %p2668_p9 = pneg %p2667_p8 }
  0x17   : > { %p2675_p13 = pnand %p2674_p12, %p2668_p9 }
  0x19   : > { %2678 = shalt.err (!%p2675_p13)
}
  0x1a   : > { %s2691_s22 = smov [#allocation2]   ;;  %175 = sbr.rel (%p2777_p2) target bundleno = 618 (0x26a), region = 36 }
  0x1b   : > { %2596 = dma.vmem_to_smem (!%p2594_p5), %s149_s19, 32, %s2691_s22, [#allocation3]  }
  0x1f   : > { %2684 = dma.done.wait (%p2597_p3), [#allocation3], 32  }
  0x20   : > { %2686 = vsyncadd (%p2597_p3), [#allocation3], 4294967264 }
  0x21   : > { %181 = sfence }
  0x22   : > { %p202_p0 = scmp.lt.s32.totalorder %s2476_s16, 1  ;;  %s5022_s0 = sld [smem:[#allocation41_spill]] }
  0x23   : > { %s2692_s27 = smov 50   ;;  %s2693_s28 = smov 51  }
  0x24   : > { %s5239_s16 = smov (!%p202_p0, %s2476_s16), 1  ;;  %s2694_s29 = smov 49  }
  0x25   : > { %5021 = sst [smem:[#allocation6_spill]] %s5239_s16  ;;  %s4966_s23 = sshll.u32 %s5239_s16, 4 }
  0x26   : > { %s2695_s30 = smov 48   ;;  %s2696_s5 = smov 47  }
  0x27   : > { %s2697_s6 = smov 46   ;;  %s2698_s7 = smov 45  }
  0x28   : > { %s2796_s26 = scalar_lea.vmem %s5022_s0, %s4966_s23  ;;  %s2699_s8 = smov 35  }
  0x29   : > { %5023 = sst [smem:[#allocation7_spill]] %s2796_s26  ;;  %v212_v0 = vld [vmem:[%s2796_s26] sm:$0xff]  ;;  %v213_v1 = vld [vmem:[%s2796_s26 + $0x8] sm:$0xff]  ;;  %s2700_s9 = smov 34  }
  0x2a   : > { %v214_v2 = vrot.slane %v212_v0, 4  ;;  %v220_v3 = vrot.slane %v213_v1, 4  ;;  %s2701_s10 = smov 33   ;;  %s2702_s11 = smov 32  }
  0x2b   : > { %s2703_s12 = smov 31   ;;  %s2704_s13 = smov 30  }
  0x2c   : > { %v229_v4 = vmax.f32 %v212_v0, %v214_v2  ;;  %v235_v5 = vmax.f32 %v213_v1, %v220_v3  ;;  %v215_v6 = vadd.f32 %v214_v2, %v212_v0  ;;  %v221_v7 = vadd.f32 %v220_v3, %v213_v1  ;;  %s2705_s14 = smov 29   ;;  %s2706_s17 = smov 19  }
  0x2d   : > { %s2707_s18 = smov 18   ;;  %s2708_s19 = smov 17  }
  0x2e   : > { %v230_v8 = vrot.slane %v229_v4, 2  ;;  %v236_v9 = vrot.slane %v235_v5, 2  ;;  %v216_v10 = vrot.slane %v215_v6, 2  ;;  %v222_v11 = vrot.slane %v221_v7, 2  ;;  %s2709_s20 = smov 16   ;;  %s2710_s21 = smov 15  }
  0x2f   : > { %s2711_s22 = smov 14   ;;  %s2712_s24 = smov 13  }
  0x30   : > { %v231_v12 = vmax.f32 %v229_v4, %v230_v8  ;;  %v237_v13 = vmax.f32 %v235_v5, %v236_v9  ;;  %v217_v14 = vadd.f32 %v216_v10, %v215_v6  ;;  %v223_v18 = vadd.f32 %v222_v11, %v221_v7  ;;  %s2713_s25 = smov 3   ;;  %s3088_s23 = sld [smem:[#allocation2 + $0x8a]] }
  0x31   : > { %s3090_s0 = sld [smem:[#allocation2 + $0xb]]  ;;  %s2722_s1 = smov 113  }
  0x32   : > { %v232_v15 = vrot.slane %v231_v12, 1  ;;  %v238_v16 = vrot.slane %v237_v13, 1  ;;  %v218_v17 = vrot.slane %v217_v14, 1  ;;  %v224_v22 = vrot.slane %v223_v18, 1  ;;  %s3106_s15 = sld [smem:[#allocation2 + $0xc]] }
  0x33   : > { %s3116_s4 = sld [smem:[#allocation2 + $0x8c]] }
  0x34   : > { %v2800_v19 = vmax.f32 %v231_v12, %v232_v15  ;;  %v2804_v20 = vmax.f32 %v237_v13, %v238_v16  ;;  %v219_v21 = vadd.f32 %v218_v17, %v217_v14  ;;  %v225_v24 = vadd.f32 %v224_v22, %v223_v18  ;;  %s3205_s26 = sld [smem:[#allocation2 + $0x10]] }
  0x35   : > { %v356_v18 = vlaneseq  ;;  %s3209_s16 = sld [smem:[#allocation2 + $0x90]] }
  0x36   : > { %403 = vrot.lane.b32.xlu0 %v2800_v19, %s2692_s27  ;;  %361 = vrot.lane.b32.xlu1 %v2800_v19, %s2693_s28  ;;  %v2808_v23 = vmul.f32 0.125, %v219_v21  ;;  %v2812_v25 = vmul.f32 0.125, %v225_v24  ;;  %s5053_s2 = sld [smem:[#allocation43_spill]] }
  0x37   : > { %v3077_v24 = vand.u32 127, %v356_v18  ;;  %s5055_s3 = sld [smem:[#allocation44_spill]] }
  0x39   : > { %vm358_vm0 = vcmp.lt.s32.totalorder %v3077_v24, 51  ;;  %vm400_vm1 = vcmp.lt.s32.totalorder %v3077_v24, 50  ;;  %vm442_vm2 = vcmp.lt.s32.totalorder %v3077_v24, 49  ;;  %vm484_vm3 = vcmp.lt.s32.totalorder %v3077_v24, 48 }
  0x3a   : > { %445 = vrot.lane.b32.xlu0 %v2800_v19, %s2694_s29  ;;  %363 = vrot.lane.b32.xlu1 %v2804_v20, %s2693_s28  ;;  %vm525_vm4 = vcmp.lt.s32.totalorder %v3077_v24, 47  ;;  %vm567_vm7 = vcmp.lt.s32.totalorder %v3077_v24, 46  ;;  %vm609_vm9 = vcmp.lt.s32.totalorder %v3077_v24, 45  ;;  %vm651_vm11 = vcmp.lt.s32.totalorder %v3077_v24, 35 }
  0x3b   : > { %5052 = sst [smem:[#allocation36_spill]] %s3209_s16  ;;  %vm735_vm12 = vcmp.lt.s32.totalorder %v3077_v24, 33 }
  0x3c   : > { %s3760_s16 = sld [smem:[#allocation2 + $0x9c]] }
  0x3e   : > { %405 = vrot.lane.b32.xlu1 %v2804_v20, %s2692_s27  ;;  %352 = vrot.lane.b32.xlu0 %v2808_v23, %s2693_s28 }
  0x42   : > { %447 = vrot.lane.b32.xlu1 %v2804_v20, %s2694_s29  ;;  %354 = vrot.lane.b32.xlu0 %v2812_v25, %s2693_s28  ;;  %s2715_s28 = smov 1  }
  0x46   : > { %398 = vrot.lane.b32.xlu1 %v2812_v25, %s2692_s27  ;;  %396 = vrot.lane.b32.xlu0 %v2808_v23, %s2692_s27  ;;  %s2714_s27 = smov 2  }
  0x4a   : > { %440 = vrot.lane.b32.xlu1 %v2812_v25, %s2694_s29  ;;  %438 = vrot.lane.b32.xlu0 %v2808_v23, %s2694_s29  ;;  %s2716_s29 = smov 127  }
  0x4e   : > { %482 = vrot.lane.b32.xlu1 %v2812_v25, %s2695_s30  ;;  %480 = vrot.lane.b32.xlu0 %v2808_v23, %s2695_s30 }
  0x52   : > { %489 = vrot.lane.b32.xlu1 %v2804_v20, %s2695_s30  ;;  %487 = vrot.lane.b32.xlu0 %v2800_v19, %s2695_s30  ;;  %s2717_s30 = smov 126  }
  0x56   : > { %523 = vrot.lane.b32.xlu1 %v2812_v25, %s2696_s5  ;;  %521 = vrot.lane.b32.xlu0 %v2808_v23, %s2696_s5 }
  0x5a   : > { %530 = vrot.lane.b32.xlu1 %v2804_v20, %s2696_s5  ;;  %528 = vrot.lane.b32.xlu0 %v2800_v19, %s2696_s5  ;;  %s2718_s5 = smov 125  }
  0x5e   : > { %565 = vrot.lane.b32.xlu1 %v2812_v25, %s2697_s6  ;;  %563 = vrot.lane.b32.xlu0 %v2808_v23, %s2697_s6 }
  0x62   : > { %572 = vrot.lane.b32.xlu1 %v2804_v20, %s2697_s6  ;;  %570 = vrot.lane.b32.xlu0 %v2800_v19, %s2697_s6  ;;  %s3010_s6 = sld [smem:[#allocation2 + $0x80]] }
  0x66   : > { %607 = vrot.lane.b32.xlu1 %v2812_v25, %s2698_s7  ;;  %605 = vrot.lane.b32.xlu0 %v2808_v23, %s2698_s7 }
  0x6a   : > { %614 = vrot.lane.b32.xlu1 %v2804_v20, %s2698_s7  ;;  %612 = vrot.lane.b32.xlu0 %v2800_v19, %s2698_s7  ;;  %s3016_s7 = sld [smem:[#allocation2 + $0x81]] }
  0x6e   : > { %649 = vrot.lane.b32.xlu1 %v2812_v25, %s2699_s8  ;;  %647 = vrot.lane.b32.xlu0 %v2808_v23, %s2699_s8 }
  0x72   : > { %656 = vrot.lane.b32.xlu1 %v2804_v20, %s2699_s8  ;;  %654 = vrot.lane.b32.xlu0 %v2800_v19, %s2699_s8  ;;  %s3018_s8 = sld [smem:[#allocation2 + $0x82]] }
  0x76   : > { %691 = vrot.lane.b32.xlu1 %v2812_v25, %s2700_s9  ;;  %689 = vrot.lane.b32.xlu0 %v2808_v23, %s2700_s9 }
  0x7a   : > { %698 = vrot.lane.b32.xlu1 %v2804_v20, %s2700_s9  ;;  %696 = vrot.lane.b32.xlu0 %v2800_v19, %s2700_s9  ;;  %s3021_s9 = sld [smem:[#allocation2]] }
  0x7e   : > { %733 = vrot.lane.b32.xlu1 %v2812_v25, %s2701_s10  ;;  %731 = vrot.lane.b32.xlu0 %v2808_v23, %s2701_s10 }
  0x82   : > { %740 = vrot.lane.b32.xlu1 %v2804_v20, %s2701_s10  ;;  %738 = vrot.lane.b32.xlu0 %v2800_v19, %s2701_s10  ;;  %s3024_s10 = sld [smem:[#allocation2 + $0x1]] }
  0x86   : > { %775 = vrot.lane.b32.xlu1 %v2812_v25, %s2702_s11  ;;  %773 = vrot.lane.b32.xlu0 %v2808_v23, %s2702_s11 }
  0x8a   : > { %782 = vrot.lane.b32.xlu1 %v2804_v20, %s2702_s11  ;;  %780 = vrot.lane.b32.xlu0 %v2800_v19, %s2702_s11  ;;  %s3030_s11 = sld [smem:[#allocation2 + $0x2]] }
  0x8e   : > { %816 = vrot.lane.b32.xlu1 %v2812_v25, %s2703_s12  ;;  %814 = vrot.lane.b32.xlu0 %v2808_v23, %s2703_s12 }
  0x92   : > { %823 = vrot.lane.b32.xlu1 %v2804_v20, %s2703_s12  ;;  %821 = vrot.lane.b32.xlu0 %v2800_v19, %s2703_s12  ;;  %s3032_s12 = sld [smem:[#allocation2 + $0x3]] }
  0x96   : > { %858 = vrot.lane.b32.xlu1 %v2812_v25, %s2704_s13  ;;  %856 = vrot.lane.b32.xlu0 %v2808_v23, %s2704_s13 }
  0x9a   : > { %865 = vrot.lane.b32.xlu1 %v2804_v20, %s2704_s13  ;;  %863 = vrot.lane.b32.xlu0 %v2800_v19, %s2704_s13  ;;  %s2719_s13 = smov 115  }
  0x9e   : > { %900 = vrot.lane.b32.xlu1 %v2812_v25, %s2705_s14  ;;  %898 = vrot.lane.b32.xlu0 %v2808_v23, %s2705_s14 }
  0xa2   : > { %907 = vrot.lane.b32.xlu1 %v2804_v20, %s2705_s14  ;;  %905 = vrot.lane.b32.xlu0 %v2800_v19, %s2705_s14  ;;  %s3035_s14 = sld [smem:[#allocation2 + $0x83]] }
  0xa6   : > { %942 = vrot.lane.b32.xlu1 %v2812_v25, %s2706_s17  ;;  %940 = vrot.lane.b32.xlu0 %v2808_v23, %s2706_s17 }
  0xa8   : > { %v2866_v26 = vpop.permute.xlu0 %403  ;;  %v2868_v27 = vpop.permute.xlu1 %361 }
  0xaa   : > { %949 = vrot.lane.b32.xlu1 %v2804_v20, %s2706_s17  ;;  %947 = vrot.lane.b32.xlu0 %v2800_v19, %s2706_s17  ;;  %s3038_s17 = sld [smem:[#allocation2 + $0x4]] }
  0xac   : > { %v2872_v28 = vpop.permute.xlu0 %445  ;;  %v2874_v29 = vpop.permute.xlu1 %363 }
  0xae   : > { %984 = vrot.lane.b32.xlu1 %v2812_v25, %s2707_s18  ;;  %982 = vrot.lane.b32.xlu0 %v2808_v23, %s2707_s18 }
  0xb0   : > { %v2878_v30 = vpop.permute.xlu1 %405  ;;  %v2880_v31 = vpop.permute.xlu0 %352 }
  0xb2   : > { %991 = vrot.lane.b32.xlu1 %v2804_v20, %s2707_s18  ;;  %989 = vrot.lane.b32.xlu0 %v2800_v19, %s2707_s18  ;;  %s3044_s18 = sld [smem:[#allocation2 + $0x84]] }
  0xb4   : > { %v2884_v32 = vpop.permute.xlu1 %447  ;;  %v2886_v33 = vpop.permute.xlu0 %354 }
  0xb6   : > { %1026 = vrot.lane.b32.xlu1 %v2812_v25, %s2708_s19  ;;  %1024 = vrot.lane.b32.xlu0 %v2808_v23, %s2708_s19 }
  0xb8   : > { %v2890_v34 = vpop.permute.xlu1 %398  ;;  %v2892_v35 = vpop.permute.xlu0 %396 }
  0xba   : > { %1033 = vrot.lane.b32.xlu1 %v2804_v20, %s2708_s19  ;;  %1031 = vrot.lane.b32.xlu0 %v2800_v19, %s2708_s19  ;;  %s3046_s19 = sld [smem:[#allocation2 + $0x5]] }
  0xbc   : > { %v2896_v36 = vpop.permute.xlu1 %440  ;;  %v2898_v37 = vpop.permute.xlu0 %438 }
  0xbe   : > { %1068 = vrot.lane.b32.xlu1 %v2812_v25, %s2709_s20  ;;  %1066 = vrot.lane.b32.xlu0 %v2808_v23, %s2709_s20 }
  0xc0   : > { %v2902_v38 = vpop.permute.xlu1 %482  ;;  %v2904_v39 = vpop.permute.xlu0 %480  ;;  %5036 = sst [smem:[#allocation20_spill]] %s3046_s19 }
  0xc1   : > { %s3242_s19 = sld [smem:[#allocation2 + $0x12]] }
  0xc2   : > { %1075 = vrot.lane.b32.xlu1 %v2804_v20, %s2709_s20  ;;  %1073 = vrot.lane.b32.xlu0 %v2800_v19, %s2709_s20  ;;  %s3049_s20 = sld [smem:[#allocation2 + $0x85]] }
  0xc4   : > { %v2908_v40 = vpop.permute.xlu1 %489  ;;  %v2910_v41 = vpop.permute.xlu0 %487 }
  0xc6   : > { %1109 = vrot.lane.b32.xlu1 %v2812_v25, %s2710_s21  ;;  %1107 = vrot.lane.b32.xlu0 %v2808_v23, %s2710_s21 }
  0xc8   : > { %v2914_v42 = vpop.permute.xlu1 %523  ;;  %v2916_v43 = vpop.permute.xlu0 %521 }
  0xca   : > { %1116 = vrot.lane.b32.xlu1 %v2804_v20, %s2710_s21  ;;  %1114 = vrot.lane.b32.xlu0 %v2800_v19, %s2710_s21  ;;  %s3052_s21 = sld [smem:[#allocation2 + $0x6]] }
  0xcc   : > { %v2920_v44 = vpop.permute.xlu1 %530  ;;  %v2922_v45 = vpop.permute.xlu0 %528 }
  0xce   : > { %1151 = vrot.lane.b32.xlu1 %v2812_v25, %s2711_s22  ;;  %1149 = vrot.lane.b32.xlu0 %v2808_v23, %s2711_s22 }
  0xd0   : > { %v2926_v46 = vpop.permute.xlu1 %565  ;;  %v2928_v47 = vpop.permute.xlu0 %563  ;;  %5037 = sst [smem:[#allocation21_spill]] %s3052_s21 }
  0xd1   : > { %s3230_s21 = sld [smem:[#allocation2 + $0x91]] }
  0xd2   : > { %1158 = vrot.lane.b32.xlu1 %v2804_v20, %s2711_s22  ;;  %1156 = vrot.lane.b32.xlu0 %v2800_v19, %s2711_s22  ;;  %s3058_s22 = sld [smem:[#allocation2 + $0x86]] }
  0xd4   : > { %v2932_v48 = vpop.permute.xlu1 %572  ;;  %v2934_v49 = vpop.permute.xlu0 %570 }
  0xd6   : > { %1193 = vrot.lane.b32.xlu1 %v2812_v25, %s2712_s24  ;;  %1191 = vrot.lane.b32.xlu0 %v2808_v23, %s2712_s24 }
  0xd8   : > { %v2938_v50 = vpop.permute.xlu1 %607  ;;  %v2940_v51 = vpop.permute.xlu0 %605  ;;  %5040 = sst [smem:[#allocation24_spill]] %s3058_s22  ;;  %s2724_s22 = smov 111  }
  0xda   : > { %1200 = vrot.lane.b32.xlu1 %v2804_v20, %s2712_s24  ;;  %1198 = vrot.lane.b32.xlu0 %v2800_v19, %s2712_s24  ;;  %s3060_s24 = sld [smem:[#allocation2 + $0x7]] }
  0xdc   : > { %v2944_v52 = vpop.permute.xlu1 %614  ;;  %v2946_v53 = vpop.permute.xlu0 %612 }
  0xde   : > { %1235 = vrot.lane.b32.xlu1 %v2812_v25, %s2713_s25  ;;  %1233 = vrot.lane.b32.xlu0 %v2808_v23, %s2713_s25 }
  0xe0   : > { %v2950_v54 = vpop.permute.xlu1 %649  ;;  %v2952_v55 = vpop.permute.xlu0 %647  ;;  %5041 = sst [smem:[#allocation25_spill]] %s3060_s24 }
  0xe2   : > { %1242 = vrot.lane.b32.xlu1 %v2804_v20, %s2713_s25  ;;  %1240 = vrot.lane.b32.xlu0 %v2800_v19, %s2713_s25  ;;  %s2720_s25 = smov 114  }
  0xe4   : > { %v2956_v56 = vpop.permute.xlu1 %656  ;;  %v2958_v57 = vpop.permute.xlu0 %654 }
  0xe6   : > { %1276 = vrot.lane.b32.xlu1 %v2812_v25, %s2714_s27  ;;  %1274 = vrot.lane.b32.xlu0 %v2808_v23, %s2714_s27 }
  0xe8   : > { %v2962_v58 = vpop.permute.xlu1 %691  ;;  %v2964_v59 = vpop.permute.xlu0 %689 }
  0xe9   : > { %5024 = vst [vmem:[#allocation8_spill] sm:$0xff] %v2962_v58  ;;  %5025 = vst [vmem:[#allocation9_spill] sm:$0xff] %v2964_v59  ;;  %v402_v59 = vsel %vm400_vm1, %v2890_v34, %v2892_v35 }
  0xea   : > { %1283 = vrot.lane.b32.xlu1 %v2804_v20, %s2714_s27  ;;  %1281 = vrot.lane.b32.xlu0 %v2800_v19, %s2714_s27  ;;  %s3063_s27 = sld [smem:[#allocation2 + $0x87]] }
  0xec   : > { %v2968_v60 = vpop.permute.xlu1 %698  ;;  %v2970_v61 = vpop.permute.xlu0 %696 }
  0xee   : > { %1317 = vrot.lane.b32.xlu1 %v2812_v25, %s2715_s28  ;;  %1315 = vrot.lane.b32.xlu0 %v2808_v23, %s2715_s28 }
  0xf0   : > { %v2974_v62 = vpop.permute.xlu1 %733  ;;  %v2976_v63 = vpop.permute.xlu0 %731  ;;  %5042 = sst [smem:[#allocation26_spill]] %s3063_s27 }
  0xf2   : > { %1324 = vrot.lane.b32.xlu1 %v2804_v20, %s2715_s28  ;;  %1322 = vrot.lane.b32.xlu0 %v2800_v19, %s2715_s28  ;;  %s3066_s28 = sld [smem:[#allocation2 + $0x8]] }
  0xf4   : > { %v2980_v0 = vpop.permute.xlu1 %740  ;;  %v2982_v1 = vpop.permute.xlu0 %738 }
  0xf6   : > { %1385 = vrot.lane.b32.xlu1 %v2812_v25, %s2716_s29  ;;  %1383 = vrot.lane.b32.xlu0 %v2808_v23, %s2716_s29 }
  0xf8   : > { %v2986_v2 = vpop.permute.xlu1 %775  ;;  %v2988_v3 = vpop.permute.xlu0 %773 }
  0xfa   : > { %1392 = vrot.lane.b32.xlu1 %v2804_v20, %s2716_s29  ;;  %1390 = vrot.lane.b32.xlu0 %v2800_v19, %s2716_s29  ;;  %s3072_s29 = sld [smem:[#allocation2 + $0x88]] }
  0xfc   : > { %v2992_v4 = vpop.permute.xlu1 %782  ;;  %v2994_v5 = vpop.permute.xlu0 %780 }
  0xfe   : > { %1426 = vrot.lane.b32.xlu1 %v2812_v25, %s2717_s30  ;;  %1424 = vrot.lane.b32.xlu0 %v2808_v23, %s2717_s30 }
 0x100   : > { %v2998_v6 = vpop.permute.xlu1 %816  ;;  %v3000_v7 = vpop.permute.xlu0 %814 }
 0x101   : > { %5026 = vst [vmem:[#allocation10_spill] sm:$0xff] %v2998_v6  ;;  %5027 = vst [vmem:[#allocation11_spill] sm:$0xff] %v3000_v7  ;;  %v451_v7 = vstv %s3030_s11  ;;  %s3197_s11 = sld [smem:[#allocation2 + $0x8f]] }
 0x102   : > { %1433 = vrot.lane.b32.xlu1 %v2804_v20, %s2717_s30  ;;  %1431 = vrot.lane.b32.xlu0 %v2800_v19, %s2717_s30  ;;  %s3074_s30 = sld [smem:[#allocation2 + $0x9]] }
 0x104   : > { %v3004_v8 = vpop.permute.xlu1 %823  ;;  %v3006_v9 = vpop.permute.xlu0 %821 }
 0x105   : > { %5028 = vst [vmem:[#allocation12_spill] sm:$0xff] %v3004_v8  ;;  %5029 = vst [vmem:[#allocation13_spill] sm:$0xff] %v3006_v9  ;;  %v359_v8 = vsel %vm358_vm0, %v2880_v31, %v2886_v33  ;;  %v449_v9 = vsel %vm442_vm2, %v2872_v28, %v2884_v32 }
 0x106   : > { %1467 = vrot.lane.b32.xlu1 %v2812_v25, %s2718_s5  ;;  %1465 = vrot.lane.b32.xlu0 %v2808_v23, %s2718_s5 }
 0x108   : > { %v3012_v10 = vpop.permute.xlu1 %858  ;;  %v3014_v11 = vpop.permute.xlu0 %856 }
 0x109   : > { %5030 = vst [vmem:[#allocation14_spill] sm:$0xff] %v3012_v10  ;;  %5031 = vst [vmem:[#allocation15_spill] sm:$0xff] %v3014_v11  ;;  %v412_v10 = vstv %s3016_s7  ;;  %v454_v11 = vstv %s3018_s8  ;;  %s3132_s7 = sld [smem:[#allocation2 + $0x8d]] }
 0x10a   : > { %1474 = vrot.lane.b32.xlu1 %v2804_v20, %s2718_s5  ;;  %1472 = vrot.lane.b32.xlu0 %v2800_v19, %s2718_s5  ;;  %s3079_s5 = sld [smem:[#allocation2 + $0x89]] }
 0x10b   : > { %s3174_s8 = sld [smem:[#allocation2 + $0x8e]] }
 0x10c   : > { %v3026_v12 = vpop.permute.xlu1 %865  ;;  %v3028_v13 = vpop.permute.xlu0 %863 }
 0x10d   : > { %5032 = vst [vmem:[#allocation16_spill] sm:$0xff] %v3026_v12  ;;  %5033 = vst [vmem:[#allocation17_spill] sm:$0xff] %v3028_v13  ;;  %v2721_v13 = vmov 1966171168  }
 0x10e   : > { %1508 = vrot.lane.b32.xlu1 %v2812_v25, %s2719_s13  ;;  %1506 = vrot.lane.b32.xlu0 %v2808_v23, %s2719_s13  ;;  %v380_v12 = vunpack.c.l.s4 %v2721_v13 }
 0x110   : > { %v3040_v14 = vpop.permute.xlu1 %900  ;;  %v3042_v15 = vpop.permute.xlu0 %898  ;;  %v381_v13 = vunpack.c.0.s8 %v380_v12 }
 0x111   : > { %5034 = vst [vmem:[#allocation18_spill] sm:$0xff] %v3040_v14  ;;  %5035 = vst [vmem:[#allocation19_spill] sm:$0xff] %v3042_v15  ;;  %v367_v15 = vstv %s3021_s9  ;;  %s3193_s9 = sld [smem:[#allocation2 + $0xf]] }
 0x112   : > { %1515 = vrot.lane.b32.xlu1 %v2804_v20, %s2719_s13  ;;  %1513 = vrot.lane.b32.xlu0 %v2800_v19, %s2719_s13  ;;  %s3082_s13 = sld [smem:[#allocation2 + $0xa]] }
 0x114   : > { %v3054_v16 = vpop.permute.xlu1 %907  ;;  %v3056_v17 = vpop.permute.xlu0 %905 }
 0x115   : > { %5038 = vst [vmem:[#allocation22_spill] sm:$0xff] %v3054_v16  ;;  %5039 = vst [vmem:[#allocation23_spill] sm:$0xff] %v3056_v17  ;;  %v360_v16 = vsel %vm358_vm0, %v2886_v33, %v2880_v31  ;;  %v365_v31 = vsel %vm358_vm0, %v2868_v27, %v2874_v29  ;;  %v366_v33 = vsel %vm358_vm0, %v2874_v29, %v2868_v27  ;;  %vm777_vm0 = vcmp.lt.s32.totalorder %v3077_v24, 32 }
 0x116   : > { %1550 = vrot.lane.b32.xlu1 %v2812_v25, %s2720_s25  ;;  %1548 = vrot.lane.b32.xlu0 %v2808_v23, %s2720_s25  ;;  %v450_v27 = vsel %vm442_vm2, %v2884_v32, %v2872_v28  ;;  %v443_v29 = vsel %vm442_vm2, %v2898_v37, %v2896_v36  ;;  %v368_v28 = vmul.f32 %v367_v15, %v360_v16 }
 0x118   : > { %v3068_v21 = vpop.permute.xlu1 %942  ;;  %v3070_v22 = vpop.permute.xlu0 %940 }
 0x119   : > { %5043 = vst [vmem:[#allocation27_spill] sm:$0xff] %v3068_v21  ;;  %5044 = vst [vmem:[#allocation28_spill] sm:$0xff] %v3070_v22 }
 0x11a   : > { %1557 = vrot.lane.b32.xlu1 %v2804_v20, %s2720_s25  ;;  %1555 = vrot.lane.b32.xlu0 %v2800_v19, %s2720_s25  ;;  %s3098_s25 = sld [smem:[#allocation2 + $0x8b]] }
 0x11c   : > { %v3084_v21 = vpop.permute.xlu1 %949  ;;  %v3086_v22 = vpop.permute.xlu0 %947 }
 0x11d   : > { %5045 = vst [vmem:[#allocation29_spill] sm:$0xff] %v3084_v21  ;;  %5046 = vst [vmem:[#allocation30_spill] sm:$0xff] %v3086_v22  ;;  %v3096_v21 = vshrl.u32 %v356_v18, 7  ;;  %v370_v22 = vstv %s3010_s6  ;;  %v409_v18 = vstv %s3024_s10  ;;  %s3122_s6 = sld [smem:[#allocation2 + $0xd]]  ;;  %s4991_s10 = smov 112  }
 0x11e   : > { %1592 = vrot.lane.b32.xlu1 %v2812_v25, %s2722_s1  ;;  %1590 = vrot.lane.b32.xlu0 %v2808_v23, %s2722_s1  ;;  %v410_v32 = vmul.f32 %v409_v18, %v402_v59  ;;  %v371_v17 = vmul.f32 %v370_v22, %v366_v33  ;;  %v453_v59 = vmul.f32 %v451_v7, %v443_v29 }
 0x11f   : > { %5047 = vst [vmem:[#allocation31_spill] sm:$0xff] %v3096_v21 }
 0x120   : > { %v3108_v14 = vpop.permute.xlu1 %984  ;;  %v3110_v12 = vpop.permute.xlu0 %982 }
 0x121   : > { %5048 = vst [vmem:[#allocation32_spill] sm:$0xff] %v3108_v14  ;;  %5049 = vst [vmem:[#allocation33_spill] sm:$0xff] %v3110_v12  ;;  %v3127_v14 = vsub.s32 %v381_v13, %v3096_v21  ;;  %v401_v13 = vsel %vm400_vm1, %v2892_v35, %v2890_v34  ;;  %v407_v34 = vsel %vm400_vm1, %v2866_v26, %v2878_v30  ;;  %v663_v21 = vstv %s3063_s27  ;;  %s3220_s27 = sld [smem:[#allocation2 + $0x11]] }
 0x122   : > { %1599 = vrot.lane.b32.xlu1 %v2804_v20, %s2722_s1  ;;  %1597 = vrot.lane.b32.xlu0 %v2800_v19, %s2722_s1  ;;  %s3152_s1 = sld [smem:[#allocation2 + $0xe]]  ;;  %v408_v35 = vsel %vm400_vm1, %v2878_v30, %v2866_v26  ;;  %v444_v26 = vsel %vm442_vm2, %v2896_v36, %v2898_v37  ;;  %v369_v30 = vmul.f32 %v367_v15, %v359_v8  ;;  %v660_v37 = vstv %s3060_s24  ;;  %s5054_s24 = smov 112  }
 0x123   : > { %v411_v6 = vmul.f32 %v409_v18, %v401_v13  ;;  %v372_v36 = vmul.f32 %v370_v22, %v365_v31  ;;  %v414_v16 = vmul.f32 %v412_v10, %v407_v34  ;;  %v452_v8 = vmul.f32 %v451_v7, %v444_v26  ;;  %v3214_v22 = vld [vmem:[%s5053_s2] sm:$0x3]  ;;  %s3721_s2 = sld [smem:[#allocation2 + $0x9b]] }
 0x124   : > { %v3154_v58 = vpop.permute.xlu1 %991  ;;  %v3156_v12 = vpop.permute.xlu0 %989  ;;  %v455_v18 = vmul.f32 %v454_v11, %v450_v27  ;;  %v456_v13 = vmul.f32 %v454_v11, %v449_v9  ;;  %v3225_v7 = vld [vmem:[%s5055_s3] sm:$0x3]  ;;  %v373_v9 = vadd.f32 %v371_v17, %v368_v28  ;;  %v747_v27 = vstv %s3079_s5  ;;  %s3418_s3 = sld [smem:[#allocation2 + $0x18]]  ;;  %s2727_s5 = smov 99  }
 0x125   : > { %5050 = vst [vmem:[#allocation34_spill] sm:$0xff] %v3154_v58  ;;  %5051 = vst [vmem:[#allocation35_spill] sm:$0xff] %v3156_v12  ;;  %v413_v58 = vmul.f32 %v412_v10, %v408_v35  ;;  %v374_v10 = vadd.f32 %v372_v36, %v369_v30  ;;  %v416_v34 = vadd.f32 %v414_v16, %v411_v6  ;;  %v744_v35 = vstv %s3074_s30  ;;  %s3566_s30 = sld [smem:[#allocation2 + $0x95]] }
 0x126   : > { %1634 = vrot.lane.b32.xlu1 %v2812_v25, %s4991_s10  ;;  %1632 = vrot.lane.b32.xlu0 %v2808_v23, %s4991_s10  ;;  %v789_v26 = vstv %s3088_s23  ;;  %v457_v17 = vadd.f32 %v455_v18, %v452_v8  ;;  %v458_v28 = vadd.f32 %v456_v13, %v453_v59  ;;  %vm251_vm5 = vcmp.ge.s32.totalorder %v3214_v22, 3  ;;  %s3339_s10 = sld [smem:[#allocation2 + $0x93]] }
 0x127   : > { %v415_v11 = vadd.f32 %v413_v58, %v410_v32  ;;  %vm253_vm6 = vcmp.ge.s32.totalorder %v3225_v7, 3  ;;  %v378_v8 = vcombine.low %v373_v9, %v374_v10  ;;  %vm249_vm8 = vcmp.ge.s32.totalorder %v3225_v7, 2  ;;  %s3630_s23 = sld [smem:[#allocation2 + $0x17]] }
 0x128   : > { %v3203_v12 = vpop.permute.xlu1 %1026  ;;  %v3207_v15 = vpop.permute.xlu0 %1024  ;;  %v491_v18 = vsel %vm484_vm3, %v2910_v41, %v2908_v40  ;;  %v492_v13 = vsel %vm484_vm3, %v2908_v40, %v2910_v41  ;;  %vm245_vm10 = vcmp.ge.s32.totalorder %v3225_v7, 1  ;;  %v462_v32 = vcombine.low %v457_v17, %v458_v28  ;;  %vm3372_vm13 = vmand %vm251_vm5, %vm253_vm6 }
 0x129   : > { %v420_v59 = vcombine.low %v415_v11, %v416_v34  ;;  %v485_v40 = vsel %vm484_vm3, %v2904_v39, %v2902_v38  ;;  %v486_v41 = vsel %vm484_vm3, %v2902_v38, %v2904_v39  ;;  %v5056_v34 = vstv %s3035_s14  ;;  %s3310_s14 = sld [smem:[#allocation2 + $0x92]]  ;;  %vm3394_vm14 = vmand %vm251_vm5, %vm249_vm8 }
 0x12a   : > { %1641 = vrot.lane.b32.xlu1 %v2804_v20, %s5054_s24  ;;  %1639 = vrot.lane.b32.xlu0 %v2800_v19, %s5054_s24  ;;  %v497_v16 = vmul.f32 %v5056_v34, %v492_v13  ;;  %v5057_v58 = vmov %v5056_v34  ;;  %v3288_v28 = vrot.slane %v378_v8, %v3127_v14  ;;  %v5058_v39 = vstv %s3032_s12  ;;  %s3326_s12 = sld [smem:[#allocation2 + $0x13]]  ;;  %s2725_s24 = smov 110   ;;  %vm3424_vm15 = vmand %vm251_vm5, %vm245_vm10 }
 0x12b   : > { %v498_v9 = vmul.f32 %v5057_v58, %v491_v18  ;;  %v3291_v33 = vrot.slane %v420_v59, %v3127_v14  ;;  %v494_v10 = vmul.f32 %v5058_v39, %v486_v41  ;;  %v5059_v13 = vmov %v5058_v39 }
 0x12c   : > { %v3236_v31 = vpop.permute.xlu1 %1033  ;;  %v3240_v30 = vpop.permute.xlu0 %1031  ;;  %v495_v34 = vmul.f32 %v5059_v13, %v485_v40  ;;  %v532_v58 = vsel %vm525_vm4, %v2922_v45, %v2920_v44  ;;  %v533_v8 = vsel %vm525_vm4, %v2920_v44, %v2922_v45  ;;  %v3313_v18 = vrot.slane %v462_v32, %v3127_v14 }
 0x12d   : > { %v574_v40 = vsel %vm567_vm7, %v2934_v49, %v2932_v48  ;;  %v575_v41 = vsel %vm567_vm7, %v2932_v48, %v2934_v49  ;;  %v499_v39 = vadd.f32 %v497_v16, %v494_v10  ;;  %v526_v13 = vsel %vm525_vm4, %v2916_v43, %v2914_v42 }
 0x12e   : > { %1675 = vrot.lane.b32.xlu1 %v2812_v25, %s2724_s22  ;;  %1673 = vrot.lane.b32.xlu0 %v2808_v23, %s2724_s22  ;;  %v500_v32 = vadd.f32 %v498_v9, %v495_v34  ;;  %v527_v17 = vsel %vm525_vm4, %v2914_v42, %v2916_v43  ;;  %v5060_v48 = vstv %s3044_s18  ;;  %v568_v10 = vsel %vm567_vm7, %v2928_v47, %v2926_v46  ;;  %s5062_s18 = sld [smem:[#allocation20_spill]] }
 0x12f   : > { %v538_v49 = vmul.f32 %v5060_v48, %v533_v8  ;;  %v5061_v16 = vmov %v5060_v48  ;;  %v569_v42 = vsel %vm567_vm7, %v2926_v46, %v2928_v47  ;;  %v392_v43 = vrot.slane %v3288_v28, %v3127_v14 }
 0x130   : > { %v3266_v36 = vpop.permute.xlu1 %1068  ;;  %v3278_v11 = vpop.permute.xlu0 %1066  ;;  %v539_v9 = vmul.f32 %v5061_v16, %v532_v58  ;;  %v434_v34 = vrot.slane %v3291_v33, %v3127_v14  ;;  %v5063_v58 = vstv %s3049_s20  ;;  %v5068_v47 = vstv %s3038_s17  ;;  %s5072_s17 = sld [smem:[#allocation24_spill]] }
 0x131   : > { %v580_v8 = vmul.f32 %v5063_v58, %v575_v41  ;;  %v5064_v48 = vmov %v5063_v58  ;;  %v535_v33 = vmul.f32 %v5068_v47, %v527_v17  ;;  %v5069_v28 = vmov %v5068_v47  ;;  %s3406_s20 = sld [smem:[#allocation2 + $0x94]] }
 0x132   : > { %1682 = vrot.lane.b32.xlu1 %v2804_v20, %s2724_s22  ;;  %1680 = vrot.lane.b32.xlu0 %v2800_v19, %s2724_s22  ;;  %v581_v16 = vmul.f32 %v5064_v48, %v574_v40  ;;  %s3366_s22 = sld [smem:[#allocation2 + $0x14]]  ;;  %v536_v41 = vmul.f32 %v5069_v28, %v526_v13  ;;  %v616_v40 = vsel %vm609_vm9, %v2946_v53, %v2944_v52  ;;  %vm693_vm1 = vcmp.lt.s32.totalorder %v3077_v24, 34 }
 0x133   : > { %v617_v58 = vsel %vm609_vm9, %v2944_v52, %v2946_v53  ;;  %v476_v13 = vrot.slane %v3313_v18, %v3127_v14  ;;  %v503_v47 = vcombine.low %v499_v39, %v500_v32  ;;  %v540_v53 = vadd.f32 %v538_v49, %v535_v33 }
 0x134   : > { %v3308_v59 = vpop.permute.xlu1 %1075  ;;  %v3323_v44 = vpop.permute.xlu0 %1073  ;;  %v5073_v28 = vstv %s5062_s18  ;;  %v541_v38 = vadd.f32 %v539_v9, %v536_v41  ;;  %v610_v18 = vsel %vm609_vm9, %v2940_v51, %v2938_v50  ;;  %v611_v39 = vsel %vm609_vm9, %v2938_v50, %v2940_v51  ;;  %s5076_s18 = sld [smem:[#allocation21_spill]] }
 0x135   : > { %v577_v45 = vmul.f32 %v5073_v28, %v569_v42  ;;  %v5074_v29 = vmov %v5073_v28  ;;  %v3437_v33 = vsel %vm3372_vm13, %v392_v43, 0.0  ;;  %v3441_v41 = vsel %vm3394_vm14, %v434_v34, 0.0 }
 0x136   : > { %1717 = vrot.lane.b32.xlu1 %v2812_v25, %s2725_s24  ;;  %1715 = vrot.lane.b32.xlu0 %v2808_v23, %s2725_s24  ;;  %v578_v52 = vmul.f32 %v5074_v29, %v568_v10  ;;  %v5079_v9 = vstv %s5072_s17  ;;  %v3459_v34 = vsel %vm3424_vm15, %v476_v13, 0.0  ;;  %v545_v46 = vcombine.low %v540_v53, %v541_v38  ;;  %s3574_s17 = sld [smem:[#allocation2 + $0x16]] }
 0x137   : > { %5075 = sst [smem:[#allocation24_spill]] %s3406_s20  ;;  %v582_v32 = vadd.f32 %v580_v8, %v577_v45  ;;  %v622_v50 = vmul.f32 %v5079_v9, %v617_v58  ;;  %v5080_v51 = vmov %v5079_v9  ;;  %v658_v17 = vsel %vm651_vm11, %v2958_v57, %v2956_v56 }
 0x138   : > { %v3364_v6 = vpop.permute.xlu1 %1109  ;;  %5065 = sst [smem:[#allocation20_spill]] %s3366_s22  ;;  %v3388_v48 = vpop.permute.xlu0 %1107  ;;  %v583_v49 = vadd.f32 %v581_v16, %v578_v52  ;;  %v623_v10 = vmul.f32 %v5080_v51, %v616_v40  ;;  %v3448_v16 = vrot.slane %v503_v47, %v3127_v14  ;;  %v659_v47 = vsel %vm651_vm11, %v2956_v56, %v2958_v57 }
 0x139   : > { %vm244_vm2 = vcmp.lt.s32.totalorder %v3225_v7, 15  ;;  %vm248_vm3 = vcmp.lt.s32.totalorder %v3225_v7, 14  ;;  %v652_v56 = vsel %vm651_vm11, %v2952_v55, %v2950_v54  ;;  %v653_v57 = vsel %vm651_vm11, %v2950_v54, %v2952_v55  ;;  %s3493_s22 = sld [smem:[#allocation2 + $0x98]] }
 0x13a   : > { %1724 = vrot.lane.b32.xlu1 %v2804_v20, %s2725_s24  ;;  %1722 = vrot.lane.b32.xlu0 %v2800_v19, %s2725_s24  ;;  %v5081_v40 = vstv %s5076_s18  ;;  %s2726_s24 = smov 109   ;;  %v742_v29 = vsel %vm735_vm12, %v2982_v1, %v2980_v0  ;;  %v517_v54 = vrot.slane %v3448_v16, %v3127_v14  ;;  %v664_v55 = vmul.f32 %v663_v21, %v659_v47  ;;  %s3583_s18 = sld [smem:[#allocation2 + $0x96]]  ;;  %vm3624_vm13 = vmand %vm251_vm5, %vm248_vm3 }
 0x13b   : > { %v619_v58 = vmul.f32 %v5081_v40, %v611_v39  ;;  %v5082_v52 = vmov %v5081_v40  ;;  %vm252_vm4 = vcmp.lt.s32.totalorder %v3225_v7, 13  ;;  %v661_v40 = vmul.f32 %v660_v37, %v653_v57  ;;  %s3707_s20 = sld [smem:[#allocation2 + $0x1b]] }
 0x13c   : > { %v3433_v42 = vpop.permute.xlu1 %1116  ;;  %v3444_v45 = vpop.permute.xlu0 %1114  ;;  %v620_v9 = vmul.f32 %v5082_v52, %v610_v18  ;;  %v587_v18 = vcombine.low %v582_v32, %v583_v49  ;;  %v743_v32 = vsel %vm735_vm12, %v2980_v0, %v2982_v1  ;;  %v736_v0 = vsel %vm735_vm12, %v2976_v63, %v2974_v62  ;;  %vm3666_vm14 = vmand %vm251_vm5, %vm252_vm4 }
 0x13d   : > { %v624_v13 = vadd.f32 %v622_v50, %v619_v58  ;;  %v665_v50 = vmul.f32 %v663_v21, %v658_v17  ;;  %v737_v1 = vsel %vm735_vm12, %v2974_v62, %v2976_v63  ;;  %v1356_v21 = vstv %s3418_s3  ;;  %vm3608_vm12 = vmand %vm251_vm5, %vm244_vm2  ;;  %s3658_s3 = sld [smem:[#allocation2 + $0x19]] }
 0x13e   : > { %1759 = vrot.lane.b32.xlu1 %v2812_v25, %s2726_s24  ;;  %1757 = vrot.lane.b32.xlu0 %v2808_v23, %s2726_s24  ;;  %v625_v38 = vadd.f32 %v623_v10, %v620_v9  ;;  %v3504_v10 = vrot.slane %v545_v46, %v3127_v14  ;;  %v662_v58 = vmul.f32 %v660_v37, %v652_v56  ;;  %vm247_vm7 = vcmp.ge.s32.totalorder %v3214_v22, 2 }
 0x13f   : > { %v748_v52 = vmul.f32 %v747_v27, %v743_v32  ;;  %v749_v9 = vmul.f32 %v747_v27, %v742_v29  ;;  %v3528_v17 = vrot.slane %v587_v18, %v3127_v14  ;;  %v784_v63 = vsel %vm777_vm0, %v2994_v5, %v2992_v4  ;;  %vm3727_vm15 = vmand %vm247_vm7, %vm253_vm6 }
 0x140   : > { %v3471_v53 = vpop.permute.xlu1 %1151  ;;  %v3491_v49 = vpop.permute.xlu0 %1149  ;;  %v629_v62 = vcombine.low %v624_v13, %v625_v38  ;;  %v785_v37 = vsel %vm777_vm0, %v2992_v4, %v2994_v5  ;;  %v666_v27 = vadd.f32 %v664_v55, %v661_v40  ;;  %v667_v56 = vadd.f32 %v665_v50, %v662_v58 }
 0x141   : > { %v745_v18 = vmul.f32 %v744_v35, %v737_v1  ;;  %v746_v13 = vmul.f32 %v744_v35, %v736_v0  ;;  %v700_v4 = vsel %vm693_vm1, %v2970_v61, %v2968_v60  ;;  %v701_v5 = vsel %vm693_vm1, %v2968_v60, %v2970_v61  ;;  %v5086_v0 = vld [vmem:[#allocation8_spill] sm:$0xff]  ;;  %v5087_v1 = vld [vmem:[#allocation9_spill] sm:$0xff] }
 0x142   : > { %1766 = vrot.lane.b32.xlu1 %v2804_v20, %s2726_s24  ;;  %1764 = vrot.lane.b32.xlu0 %v2800_v19, %s2726_s24  ;;  %s3546_s24 = sld [smem:[#allocation2 + $0x15]]  ;;  %v778_v35 = vsel %vm777_vm0, %v2988_v3, %v2986_v2  ;;  %v779_v38 = vsel %vm777_vm0, %v2986_v2, %v2988_v3  ;;  %v790_v61 = vmul.f32 %v789_v26, %v785_v37  ;;  %vm818_vm9 = vcmp.lt.s32.totalorder %v3077_v24, 31 }
 0x143   : > { %v750_v57 = vadd.f32 %v748_v52, %v745_v18  ;;  %v751_v60 = vadd.f32 %v749_v9, %v746_v13  ;;  %v791_v29 = vmul.f32 %v789_v26, %v784_v63  ;;  %v559_v2 = vrot.slane %v3504_v10, %v3127_v14 }
 0x144   : > { %v3525_v46 = vpop.permute.xlu1 %1158  ;;  %v3538_v47 = vpop.permute.xlu0 %1156  ;;  %v636_v3 = vrot.slane %v629_v62, %v3127_v14  ;;  %v1358_v26 = vmul.f32 %v1356_v21, %v2812_v25  ;;  %v1359_v50 = vstv %s3493_s22  ;;  %v694_v10 = vsel %vm693_vm1, %v5087_v1, %v5086_v0  ;;  %s3679_s22 = sld [smem:[#allocation2 + $0x1a]] }
 0x145   : > { %v695_v40 = vsel %vm693_vm1, %v5086_v0, %v5087_v1  ;;  %v5088_v58 = vstv %s3082_s13  ;;  %vm902_vm11 = vcmp.lt.s32.totalorder %v3077_v24, 29  ;;  %v601_v37 = vrot.slane %v3528_v17, %v3127_v14  ;;  %s3673_s13 = sld [smem:[#allocation2 + $0x99]]  ;;  %vm3766_vm1 = vmand %vm247_vm7, %vm245_vm10 }
 0x146   : > { %1801 = vrot.lane.b32.xlu1 %v2812_v25, %s2727_s5  ;;  %1799 = vrot.lane.b32.xlu0 %v2808_v23, %s2727_s5  ;;  %v787_v52 = vmul.f32 %v5088_v58, %v779_v38  ;;  %v5089_v9 = vmov %v5088_v58  ;;  %v671_v18 = vcombine.low %v666_v27, %v667_v56  ;;  %v5092_v13 = vstv %s3072_s29  ;;  %s3639_s29 = sld [smem:[#allocation2 + $0x97]] }
 0x147   : > { %v788_v62 = vmul.f32 %v5089_v9, %v778_v35  ;;  %v706_v35 = vmul.f32 %v5092_v13, %v701_v5  ;;  %v5093_v38 = vmov %v5092_v13  ;;  %v755_v58 = vcombine.low %v750_v57, %v751_v60 }
 0x148   : > { %v3572_v32 = vpop.permute.xlu1 %1193  ;;  %v3581_v55 = vpop.permute.xlu0 %1191  ;;  %v707_v0 = vmul.f32 %v5093_v38, %v700_v4  ;;  %v792_v9 = vadd.f32 %v790_v61, %v787_v52  ;;  %v1361_v56 = vmul.f32 %v1359_v50, %v2804_v20  ;;  %v5097_v4 = vstv %s3066_s28  ;;  %s2728_s28 = smov 98  }
 0x149   : > { %5085 = vst [vmem:[#allocation37_spill] sm:$0xff] %v3581_v55  ;;  %v793_v17 = vadd.f32 %v791_v29, %v788_v62  ;;  %v703_v5 = vmul.f32 %v5097_v4, %v695_v40  ;;  %v5098_v13 = vmov %v5097_v4  ;;  %v1360_v39 = vmul.f32 %v1359_v50, %v2800_v19  ;;  %v5106_v4 = vld [vmem:[#allocation13_spill] sm:$0xff] }
 0x14a   : > { %1808 = vrot.lane.b32.xlu1 %v2804_v20, %s2727_s5  ;;  %1806 = vrot.lane.b32.xlu0 %v2800_v19, %s2727_s5  ;;  %v704_v38 = vmul.f32 %v5098_v13, %v694_v10  ;;  %v1357_v57 = vmul.f32 %v1356_v21, %v2808_v23  ;;  %v3650_v60 = vsel %vm251_vm5, %v517_v54, 0.0  ;;  %v561_v61 = vsel %vm3608_vm12, %v559_v2, 0.0  ;;  %s3690_s5 = sld [smem:[#allocation2 + $0x9a]]  ;;  %v5112_v54 = vld [vmem:[#allocation11_spill] sm:$0xff] }
 0x14b   : > { %v643_v29 = vrot.slane %v636_v3, %v3127_v14  ;;  %v603_v16 = vsel %vm3624_vm13, %v601_v37, 0.0  ;;  %v678_v21 = vrot.slane %v671_v18, %v3127_v14  ;;  %v708_v2 = vadd.f32 %v706_v35, %v703_v5  ;;  %v5108_v5 = vld [vmem:[#allocation23_spill] sm:$0xff] }
 0x14c   : > { %v3628_v27 = vpop.permute.xlu1 %1200  ;;  %v3637_v51 = vpop.permute.xlu0 %1198  ;;  %v709_v3 = vadd.f32 %v707_v0, %v704_v38  ;;  %v762_v10 = vrot.slane %v755_v58, %v3127_v14  ;;  %v796_v40 = vcombine.low %v792_v9, %v793_v17  ;;  %v3681_v63 = vadd.f32 %v1361_v56, %v1358_v26  ;;  %v5105_v17 = vld [vmem:[#allocation12_spill] sm:$0xff] }
 0x14d   : > { %5096 = vst [vmem:[#allocation8_spill] sm:$0xff] %v3628_v27  ;;  %5099 = vst [vmem:[#allocation9_spill] sm:$0xff] %v3637_v51  ;;  %v3684_v37 = vadd.f32 %v561_v61, %v3437_v33  ;;  %v3692_v1 = vadd.f32 %v1360_v39, %v1357_v57  ;;  %v604_v58 = vadd.f32 %v603_v16, %v3441_v41  ;;  %v645_v9 = vsel %vm3666_vm14, %v643_v29, 0.0  ;;  %v5107_v56 = vld [vmem:[#allocation22_spill] sm:$0xff]  ;;  %v5111_v16 = vld [vmem:[#allocation10_spill] sm:$0xff] }
 0x14e   : > { %1843 = vrot.lane.b32.xlu1 %v2812_v25, %s2728_s28  ;;  %1841 = vrot.lane.b32.xlu0 %v2808_v23, %s2728_s28  ;;  %5102 = vst [vmem:[#allocation38_spill] sm:$0xff] %v3681_v63  ;;  %v825_v26 = vsel %vm818_vm9, %v5106_v4, %v5105_v17  ;;  %v826_v33 = vsel %vm818_vm9, %v5105_v17, %v5106_v4  ;;  %vm860_vm5 = vcmp.lt.s32.totalorder %v3077_v24, 30  ;;  %vm986_vm0 = vcmp.lt.s32.totalorder %v3077_v24, 18 }
 0x14f   : > { %5103 = vst [vmem:[#allocation39_spill] sm:$0xff] %v3684_v37  ;;  %5104 = vst [vmem:[#allocation40_spill] sm:$0xff] %v3692_v1  ;;  %v685_v41 = vrot.slane %v678_v21, %v3127_v14  ;;  %v713_v39 = vcombine.low %v708_v2, %v709_v3  ;;  %v909_v13 = vsel %vm902_vm11, %v5108_v5, %v5107_v56  ;;  %v5122_v62 = vstv %s3090_s0  ;;  %s2730_s0 = smov 96  }
 0x150   : > { %v3676_v52 = vpop.permute.xlu1 %1235  ;;  %v3686_v18 = vpop.permute.xlu0 %1233  ;;  %v910_v38 = vsel %vm902_vm11, %v5107_v56, %v5108_v5  ;;  %v769_v61 = vrot.slane %v762_v10, %v3127_v14  ;;  %v803_v29 = vrot.slane %v796_v40, %v3127_v14  ;;  %v819_v21 = vsel %vm818_vm9, %v5112_v54, %v5111_v16  ;;  %v5115_v56 = vld [vmem:[#allocation18_spill] sm:$0xff]  ;;  %v5116_v5 = vld [vmem:[#allocation19_spill] sm:$0xff] }
 0x151   : > { %v820_v2 = vsel %vm818_vm9, %v5111_v16, %v5112_v54  ;;  %v5113_v10 = vstv %s3098_s25  ;;  %v903_v0 = vsel %vm902_vm11, %v5116_v5, %v5115_v56  ;;  %v904_v16 = vsel %vm902_vm11, %v5115_v56, %v5116_v5  ;;  %s2729_s25 = smov 97  }
 0x152   : > { %1850 = vrot.lane.b32.xlu1 %v2804_v20, %s2728_s28  ;;  %1848 = vrot.lane.b32.xlu0 %v2800_v19, %s2728_s28  ;;  %s3744_s28 = sld [smem:[#allocation2 + $0x1c]]  ;;  %v831_v40 = vmul.f32 %v5113_v10, %v826_v33  ;;  %v5114_v17 = vmov %v5113_v10  ;;  %v5119_v33 = vstv %s3132_s7  ;;  %v687_v28 = vsel %vm3727_vm15, %v685_v41, 0.0 }
 0x153   : > { %v832_v4 = vmul.f32 %v5114_v17, %v825_v26  ;;  %v915_v10 = vmul.f32 %v5119_v33, %v910_v38  ;;  %v5120_v17 = vmov %v5119_v33  ;;  %v3780_v50 = vrot.slane %v713_v39, %v3127_v14  ;;  %v5131_v26 = vld [vmem:[#allocation17_spill] sm:$0xff]  ;;  %s3993_s7 = sld [smem:[#allocation2 + $0x1e]] }
 0x154   : > { %v3742_v3 = vpop.permute.xlu1 %1242  ;;  %v3758_v54 = vpop.permute.xlu0 %1240  ;;  %v916_v35 = vmul.f32 %v5120_v17, %v909_v13  ;;  %v828_v8 = vmul.f32 %v5122_v62, %v820_v2  ;;  %v5123_v43 = vmov %v5122_v62  ;;  %vm944_vm9 = vcmp.lt.s32.totalorder %v3077_v24, 19 }
 0x155   : > { %5121 = vst [vmem:[#allocation12_spill] sm:$0xff] %v3780_v50  ;;  %v829_v1 = vmul.f32 %v5123_v43, %v819_v21  ;;  %v646_v13 = vadd.f32 %v645_v9, %v3459_v34  ;;  %v810_v38 = vrot.slane %v803_v29, %v3127_v14  ;;  %v5124_v33 = vstv %s3122_s6  ;;  %s3874_s6 = sld [smem:[#allocation2 + $0x1d]] }
 0x156   : > { %1885 = vrot.lane.b32.xlu1 %v2812_v25, %s2729_s25  ;;  %1883 = vrot.lane.b32.xlu0 %v2808_v23, %s2729_s25  ;;  %v912_v57 = vmul.f32 %v5124_v33, %v904_v16  ;;  %v5125_v41 = vmov %v5124_v33  ;;  %v771_v43 = vsel %vm3766_vm1, %v769_v61, 0.0  ;;  %v833_v62 = vadd.f32 %v831_v40, %v828_v8  ;;  %v5126_v33 = vld [vmem:[#allocation34_spill] sm:$0xff]  ;;  %v5129_v8 = vld [vmem:[#allocation14_spill] sm:$0xff]  ;;  %v5133_v61 = vld [vmem:[#allocation32_spill] sm:$0xff] }
 0x157   : > { %v913_v17 = vmul.f32 %v5125_v41, %v903_v0  ;;  %v834_v21 = vadd.f32 %v832_v4, %v829_v1  ;;  %vm1319_vm11 = vcmp.lt.s32.totalorder %v3077_v24, 1  ;;  %v3803_v9 = vadd.f32 %v687_v28, %v3650_v60  ;;  %v5134_v1 = vld [vmem:[#allocation33_spill] sm:$0xff] }
 0x158   : > { %v3794_v39 = vpop.permute.xlu1 %1276  ;;  %v3798_v2 = vpop.permute.xlu0 %1274  ;;  %v917_v0 = vadd.f32 %v915_v10, %v912_v57  ;;  %v3813_v4 = vadd.f32 %v771_v43, %v604_v58  ;;  %v812_v28 = vsel %vm247_vm7, %v810_v38, 0.0  ;;  %v5127_v57 = vld [vmem:[#allocation35_spill] sm:$0xff]  ;;  %v5128_v38 = vld [vmem:[#allocation15_spill] sm:$0xff]  ;;  %v987_v16 = vsel %vm986_vm0, %v5134_v1, %v5133_v61 }
 0x159   : > { %v918_v29 = vadd.f32 %v916_v35, %v913_v17  ;;  %v838_v10 = vcombine.low %v833_v62, %v834_v21  ;;  %v993_v41 = vsel %vm986_vm0, %v5127_v57, %v5126_v33  ;;  %v994_v17 = vsel %vm986_vm0, %v5126_v33, %v5127_v57  ;;  %v5130_v21 = vld [vmem:[#allocation16_spill] sm:$0xff] }
 0x15a   : > { %1892 = vrot.lane.b32.xlu1 %v2804_v20, %s2729_s25  ;;  %1890 = vrot.lane.b32.xlu0 %v2800_v19, %s2729_s25  ;;  %v862_v62 = vsel %vm860_vm5, %v5129_v8, %v5128_v38  ;;  %v867_v35 = vsel %vm860_vm5, %v5131_v26, %v5130_v21  ;;  %v868_v33 = vsel %vm860_vm5, %v5130_v21, %v5131_v26  ;;  %vm1387_vm12 = vcmp.lt.s32.totalorder %v3077_v24, 127  ;;  %s4587_s25 = sld [smem:[#allocation2 + $0xa3]] }
 0x15b   : > { %v922_v57 = vcombine.low %v917_v0, %v918_v29  ;;  %v3845_v43 = vadd.f32 %v812_v28, %v646_v13  ;;  %v861_v40 = vsel %vm860_vm5, %v5128_v38, %v5129_v8  ;;  %v988_v0 = vsel %vm986_vm0, %v5133_v61, %v5134_v1  ;;  %v5135_v13 = vld [vmem:[#allocation29_spill] sm:$0xff]  ;;  %v5136_v29 = vld [vmem:[#allocation30_spill] sm:$0xff]  ;;  %vm3929_vm5 = vmand %vm247_vm7, %vm244_vm2 }
 0x15c   : > { %v3817_v60 = vpop.permute.xlu1 %1283  ;;  %v3829_v58 = vpop.permute.xlu0 %1281  ;;  %v951_v8 = vsel %vm944_vm9, %v5136_v29, %v5135_v13  ;;  %v952_v28 = vsel %vm944_vm9, %v5135_v13, %v5136_v29  ;;  %v5137_v26 = vstv %s3197_s11  ;;  %vm1153_vm13 = vcmp.lt.s32.totalorder %v3077_v24, 14  ;;  %vm3948_vm0 = vmand %vm247_vm7, %vm252_vm4  ;;  %s5197_s11 = sld [smem:[#allocation36_spill]] }
 0x15d   : > { %5132 = vst [vmem:[#allocation13_spill] sm:$0xff] %v3845_v43  ;;  %v999_v38 = vmul.f32 %v5137_v26, %v994_v17  ;;  %v5138_v21 = vmov %v5137_v26  ;;  %v845_v34 = vrot.slane %v838_v10, %v3127_v14  ;;  %v5139_v5 = vstv %s3106_s15  ;;  %v5142_v26 = vld [vmem:[#allocation28_spill] sm:$0xff]  ;;  %s3977_s15 = sld [smem:[#allocation2 + $0x9d]] }
 0x15e   : > { %1927 = vrot.lane.b32.xlu1 %v2812_v25, %s2730_s0  ;;  %1925 = vrot.lane.b32.xlu0 %v2808_v23, %s2730_s0  ;;  %v1000_v1 = vmul.f32 %v5138_v21, %v993_v41  ;;  %v870_v56 = vmul.f32 %v5139_v5, %v862_v62  ;;  %v5140_v63 = vstv %s3116_s4  ;;  %v929_v17 = vrot.slane %v922_v57, %v3127_v14  ;;  %v5143_v41 = vld [vmem:[#allocation27_spill] sm:$0xff]  ;;  %s2731_s4 = smov 95  }
 0x15f   : > { %v873_v37 = vmul.f32 %v5140_v63, %v868_v33  ;;  %v5141_v50 = vmov %v5140_v63  ;;  %v946_v21 = vsel %vm944_vm9, %v5143_v41, %v5142_v26  ;;  %v5144_v43 = vstv %s3193_s9  ;;  %s2734_s9 = smov 83  }
 0x160   : > { %v1318_v61 = vpop.permute.xlu1 %1317  ;;  %v874_v13 = vmul.f32 %v5141_v50, %v867_v35  ;;  %v1316_v29 = vpop.permute.xlu0 %1315  ;;  %v996_v51 = vmul.f32 %v5144_v43, %v988_v0  ;;  %v5145_v27 = vmov %v5144_v43  ;;  %vm1070_vm14 = vcmp.lt.s32.totalorder %v3077_v24, 16 }
 0x161   : > { %v997_v55 = vmul.f32 %v5145_v27, %v987_v16  ;;  %v5146_v63 = vmov %v5139_v5  ;;  %v945_v50 = vsel %vm944_vm9, %v5142_v26, %v5143_v41  ;;  %v5147_v35 = vstv %s3174_s8  ;;  %s2732_s8 = smov 94  }
 0x162   : > { %1934 = vrot.lane.b32.xlu1 %v2804_v20, %s2730_s0  ;;  %v871_v5 = vmul.f32 %v5146_v63, %v861_v40  ;;  %v957_v10 = vmul.f32 %v5147_v35, %v952_v28  ;;  %v5148_v62 = vmov %v5147_v35  ;;  %1932 = vrot.lane.b32.xlu0 %v2800_v19, %s2730_s0  ;;  %v1001_v27 = vadd.f32 %v999_v38, %v996_v51  ;;  %s4608_s0 = sld [smem:[#allocation2 + $0x24]] }
 0x163   : > { %v958_v33 = vmul.f32 %v5148_v62, %v951_v8  ;;  %v1002_v16 = vadd.f32 %v1000_v1, %v997_v55  ;;  %v1320_v43 = vsel %vm1319_vm11, %v1316_v29, %v1318_v61  ;;  %v1321_v40 = vsel %vm1319_vm11, %v1318_v61, %v1316_v29 }
 0x164   : > { %v1325_v57 = vpop.permute.xlu1 %1324  ;;  %v852_v0 = vrot.slane %v845_v34, %v3127_v14  ;;  %v3910_v28 = vadd.f32 %v873_v37, %v870_v56  ;;  %v3912_v8 = vadd.f32 %v874_v13, %v871_v5  ;;  %v5149_v26 = vstv %s3152_s1  ;;  %v1323_v55 = vpop.permute.xlu0 %1322  ;;  %s4017_s1 = sld [smem:[#allocation2 + $0x9e]] }
 0x165   : > { %v954_v51 = vmul.f32 %v5149_v26, %v946_v21  ;;  %v936_v38 = vrot.slane %v929_v17, %v3127_v14  ;;  %v5150_v1 = vmov %v5149_v26  ;;  %v1326_v63 = vsel %vm1319_vm11, %v1323_v55, %v1325_v57 }
 0x166   : > { %v955_v41 = vmul.f32 %v5150_v1, %v945_v50  ;;  %v1327_v61 = vsel %vm1319_vm11, %v1325_v57, %v1323_v55  ;;  %1968 = vrot.lane.b32.xlu1 %v2812_v25, %s2731_s4  ;;  %v5153_v56 = vstv %s3630_s23  ;;  %v5155_v17 = vstv %s3639_s29  ;;  %1966 = vrot.lane.b32.xlu0 %v2808_v23, %s2731_s4  ;;  %s4518_s23 = sld [smem:[#allocation2 + $0x21]] }
 0x167   : > { %v1329_v34 = vmul.f32 %v5153_v56, %v1321_v40  ;;  %v5154_v13 = vmov %v5153_v56  ;;  %v1332_v21 = vmul.f32 %v5155_v17, %v1327_v61  ;;  %v5156_v5 = vmov %v5155_v17  ;;  %s4522_s29 = sld [smem:[#allocation2 + $0xa1]] }
 0x168   : > { %v1330_v29 = vmul.f32 %v5154_v13, %v1320_v43  ;;  %v1333_v50 = vmul.f32 %v5156_v5, %v1326_v63  ;;  %vm1428_vm15 = vcmp.lt.s32.totalorder %v3077_v24, 126  ;;  %v959_v62 = vadd.f32 %v957_v10, %v954_v51  ;;  %v1386_v57 = vpop.permute.xlu1 %1385  ;;  %v1384_v56 = vpop.permute.xlu0 %1383 }
 0x169   : > { %v960_v40 = vadd.f32 %v958_v33, %v955_v41  ;;  %v1006_v43 = vcombine.low %v1001_v27, %v1002_v16  ;;  %v1561_v26 = vstv %s3874_s6  ;;  %v1160_v55 = vsel %vm1153_vm13, %v3538_v47, %v3525_v46  ;;  %s4611_s6 = sld [smem:[#allocation2 + $0xa4]] }
 0x16a   : > { %v1161_v1 = vsel %vm1153_vm13, %v3525_v46, %v3538_v47  ;;  %v3961_v63 = vadd.f32 %v1332_v21, %v1329_v34  ;;  %v3963_v61 = vadd.f32 %v1333_v50, %v1330_v29  ;;  %v854_v10 = vsel %vm3929_vm5, %v852_v0, 0.0  ;;  %1975 = vrot.lane.b32.xlu1 %v2804_v20, %s2731_s4  ;;  %1973 = vrot.lane.b32.xlu0 %v2800_v19, %s2731_s4  ;;  %s4633_s4 = sld [smem:[#allocation2 + $0x25]] }
 0x16b   : > { %v880_v33 = vcombine.low %v3910_v28, %v3912_v8  ;;  %vm243_vm1 = vcmp.ge.s32.totalorder %v3214_v22, 1  ;;  %vm1028_vm9 = vcmp.lt.s32.totalorder %v3077_v24, 17  ;;  %v1388_v46 = vsel %vm1387_vm12, %v1384_v56, %v1386_v57 }
 0x16c   : > { %v1389_v47 = vsel %vm1387_vm12, %v1386_v57, %v1384_v56  ;;  %v938_v27 = vsel %vm3948_vm0, %v936_v38, 0.0  ;;  %v1154_v16 = vsel %vm1153_vm13, %v3491_v49, %v3471_v53  ;;  %v1155_v0 = vsel %vm1153_vm13, %v3471_v53, %v3491_v49  ;;  %v1393_v53 = vpop.permute.xlu1 %1392  ;;  %v1391_v21 = vpop.permute.xlu0 %1390 }
 0x16d   : > { %v1338_v28 = vcombine.low %v3961_v63, %v3963_v61  ;;  %v964_v8 = vcombine.low %v959_v62, %v960_v40  ;;  %v1013_v51 = vrot.slane %v1006_v43, %v3127_v14  ;;  %v5159_v38 = vstv %s3339_s10  ;;  %s4378_s10 = sld [smem:[#allocation2 + $0x1f]] }
 0x16e   : > { %v1166_v41 = vmul.f32 %v5159_v38, %v1161_v1  ;;  %v5160_v37 = vmov %v5159_v38  ;;  %v1071_v49 = vsel %vm1070_vm14, %v3278_v11, %v3266_v36  ;;  %v1072_v13 = vsel %vm1070_vm14, %v3266_v36, %v3278_v11  ;;  %2010 = vrot.lane.b32.xlu1 %v2812_v25, %s2732_s8  ;;  %2008 = vrot.lane.b32.xlu0 %v2808_v23, %s2732_s8 }
 0x16f   : > { %v1167_v34 = vmul.f32 %v5160_v37, %v1160_v55  ;;  %v1077_v29 = vsel %vm1070_vm14, %v3323_v44, %v3308_v59  ;;  %v1078_v17 = vsel %vm1070_vm14, %v3308_v59, %v3323_v44  ;;  %vm1111_vm11 = vcmp.lt.s32.totalorder %v3077_v24, 15  ;;  %vm1003_vm14 = vmand %vm243_vm1, %vm249_vm8 }
 0x170   : > { %v5161_v5 = vstv %s3326_s12  ;;  %v1394_v35 = vsel %vm1387_vm12, %v1391_v21, %v1393_v53  ;;  %v1395_v62 = vsel %vm1387_vm12, %v1393_v53, %v1391_v21  ;;  %v5163_v59 = vstv %s3658_s3  ;;  %s2736_s12 = smov 81   ;;  %s2739_s3 = smov 78  }
 0x171   : > { %v1163_v50 = vmul.f32 %v5161_v5, %v1155_v0  ;;  %v5162_v36 = vmov %v5161_v5  ;;  %v1397_v44 = vmul.f32 %v5163_v59, %v1388_v46  ;;  %v5164_v40 = vmov %v5163_v59  ;;  %v1427_v46 = vpop.permute.xlu1 %1426 }
 0x172   : > { %v1164_v11 = vmul.f32 %v5162_v36, %v1154_v16  ;;  %v1398_v43 = vmul.f32 %v5164_v40, %v1389_v47  ;;  %v5165_v57 = vstv %s3673_s13  ;;  %vm1469_vm13 = vcmp.lt.s32.totalorder %v3077_v24, 125  ;;  %2017 = vrot.lane.b32.xlu1 %v2804_v20, %s2732_s8  ;;  %2015 = vrot.lane.b32.xlu0 %v2800_v19, %s2732_s8  ;;  %s4557_s13 = sld [smem:[#allocation2 + $0x22]] }
 0x173   : > { %v1400_v55 = vmul.f32 %v5165_v57, %v1394_v35  ;;  %v5166_v1 = vmov %v5165_v57  ;;  %v5167_v16 = vstv %s3230_s21  ;;  %v1168_v53 = vadd.f32 %v1166_v41, %v1163_v50  ;;  %s5205_s21 = sld [smem:[#allocation43_spill]] }
 0x174   : > { %v1401_v56 = vmul.f32 %v5166_v1, %v1395_v62  ;;  %v1083_v0 = vmul.f32 %v5167_v16, %v1078_v17  ;;  %v5168_v38 = vmov %v5167_v16  ;;  %v1169_v21 = vadd.f32 %v1167_v34, %v1164_v11  ;;  %v1425_v62 = vpop.permute.xlu0 %1424  ;;  %s4681_s8 = sld [smem:[#allocation2 + $0x27]] }
 0x175   : > { %v1084_v37 = vmul.f32 %v5168_v38, %v1077_v29  ;;  %vm1237_vm12 = vcmp.lt.s32.totalorder %v3077_v24, 3  ;;  %v4044_v47 = vrot.slane %v964_v8, %v3127_v14  ;;  %v1020_v5 = vrot.slane %v1013_v51, %v3127_v14 }
 0x176   : > { %v4047_v36 = vadd.f32 %v1400_v55, %v1397_v44  ;;  %v4049_v35 = vadd.f32 %v1401_v56, %v1398_v43  ;;  %v5169_v17 = vstv %s3220_s27  ;;  %v1429_v34 = vsel %vm1428_vm15, %v1425_v62, %v1427_v46  ;;  %s2733_s27 = smov 93  }
 0x177   : > { %v1080_v59 = vmul.f32 %v5169_v17, %v1072_v13  ;;  %v5170_v29 = vmov %v5169_v17  ;;  %v1430_v50 = vsel %vm1428_vm15, %v1427_v46, %v1425_v62  ;;  %v855_v8 = vadd.f32 %v854_v10, %v3803_v9  ;;  %v1434_v10 = vpop.permute.xlu1 %1433  ;;  %2052 = vrot.lane.b32.xlu1 %v2812_v25, %s2733_s27  ;;  %2050 = vrot.lane.b32.xlu0 %v2808_v23, %s2733_s27 }
 0x178   : > { %v1081_v41 = vmul.f32 %v5170_v29, %v1071_v49  ;;  %v1406_v51 = vcombine.low %v4047_v36, %v4049_v35  ;;  %v1564_v49 = vstv %s3977_s15  ;;  %v1603_v13 = vstv %s3993_s7  ;;  %v1432_v55 = vpop.permute.xlu0 %1431  ;;  %s4636_s15 = sld [smem:[#allocation2 + $0xa5]] }
 0x179   : > { %v4071_v11 = vrot.slane %v880_v33, %v3127_v14  ;;  %v1085_v44 = vadd.f32 %v1083_v0, %v1080_v59  ;;  %v1173_v9 = vcombine.low %v1168_v53, %v1169_v21  ;;  %v4074_v43 = vadd.f32 %v938_v27, %v3813_v4  ;;  %s4657_s7 = sld [smem:[#allocation2 + $0x26]] }
 0x17a   : > { %v1086_v40 = vadd.f32 %v1084_v37, %v1081_v41  ;;  %v978_v57 = vrot.slane %v4044_v47, %v3127_v14  ;;  %v4082_v33 = vsel %vm1028_vm9, %v3207_v15, %v3203_v12  ;;  %v1606_v1 = vstv %s4017_s1  ;;  %s4660_s1 = sld [smem:[#allocation2 + $0xa6]] }
 0x17b   : > { %v1022_v56 = vsel %vm1003_vm14, %v1020_v5, 0.0  ;;  %v4089_v16 = vsel %vm1028_vm9, %v3203_v12, %v3207_v15  ;;  %v1435_v4 = vsel %vm1428_vm15, %v1432_v55, %v1434_v10  ;;  %v1436_v27 = vsel %vm1428_vm15, %v1434_v10, %v1432_v55  ;;  %v1468_v29 = vpop.permute.xlu1 %1467  ;;  %2059 = vrot.lane.b32.xlu1 %v2804_v20, %s2733_s27  ;;  %2057 = vrot.lane.b32.xlu0 %v2800_v19, %s2733_s27  ;;  %vm4182_vm15 = vmand %vm243_vm1, %vm248_vm3  ;;  %s4684_s27 = sld [smem:[#allocation2 + $0xa7]] }
 0x17c   : > { %vm1278_vm5 = vcmp.lt.s32.totalorder %v3077_v24, 2  ;;  %v5171_v0 = vstv %s3679_s22  ;;  %v5173_v21 = vstv %s3690_s5  ;;  %vm1510_vm0 = vcmp.lt.s32.totalorder %v3077_v24, 115  ;;  %s4560_s22 = sld [smem:[#allocation2 + $0xa2]]  ;;  %s2740_s5 = smov 77  }
 0x17d   : > { %v1438_v38 = vmul.f32 %v5171_v0, %v1429_v34  ;;  %v5172_v37 = vmov %v5171_v0  ;;  %v1441_v46 = vmul.f32 %v5173_v21, %v1435_v4  ;;  %v5174_v5 = vmov %v5173_v21 }
 0x17e   : > { %v1439_v53 = vmul.f32 %v5172_v37, %v1430_v50  ;;  %v1442_v12 = vmul.f32 %v5174_v5, %v1436_v27  ;;  %v1089_v15 = vcombine.low %v1085_v44, %v1086_v40  ;;  %v1112_v62 = vsel %vm1111_vm11, %v3388_v48, %v3364_v6 }
 0x17f   : > { %v1113_v17 = vsel %vm1111_vm11, %v3364_v6, %v3388_v48  ;;  %v1180_v59 = vrot.slane %v1173_v9, %v3127_v14  ;;  %v1244_v41 = vsel %vm1237_vm12, %v3758_v54, %v3742_v3  ;;  %v1245_v34 = vsel %vm1237_vm12, %v3742_v3, %v3758_v54  ;;  %v1466_v48 = vpop.permute.xlu0 %1465  ;;  %2094 = vrot.lane.b32.xlu1 %v2812_v25, %s2734_s9 }
 0x180   : > { %v4124_v50 = vadd.f32 %v1441_v46, %v1438_v38  ;;  %v4126_v6 = vadd.f32 %v1442_v12, %v1439_v53  ;;  %v4132_v44 = vsel %vm1028_vm9, %v3240_v30, %v3236_v31  ;;  %v4138_v40 = vsel %vm1028_vm9, %v3236_v31, %v3240_v30  ;;  %v1475_v53 = vpop.permute.xlu1 %1474  ;;  %2092 = vrot.lane.b32.xlu0 %v2808_v23, %s2734_s9 }
 0x181   : > { %v1470_v3 = vsel %vm1469_vm13, %v1466_v48, %v1468_v29  ;;  %v1471_v54 = vsel %vm1469_vm13, %v1468_v29, %v1466_v48  ;;  %v1023_v9 = vadd.f32 %v1022_v56, %v855_v8  ;;  %v1238_v10 = vsel %vm1237_vm12, %v3686_v18, %v3676_v52 }
 0x182   : > { %v1239_v31 = vsel %vm1237_vm12, %v3676_v52, %v3686_v18  ;;  %v1447_v30 = vcombine.low %v4124_v50, %v4126_v6  ;;  %v5175_v55 = vstv %s3242_s19  ;;  %v5177_v27 = vstv %s3566_s30  ;;  %s5206_s19 = sld [smem:[#allocation20_spill]] }
 0x183   : > { %v1121_v4 = vmul.f32 %v5175_v55, %v1113_v17  ;;  %v5176_v8 = vmov %v5175_v55  ;;  %v1250_v0 = vmul.f32 %v5177_v27, %v1245_v34  ;;  %v5178_v38 = vmov %v5177_v27  ;;  %v1473_v5 = vpop.permute.xlu0 %1472  ;;  %2101 = vrot.lane.b32.xlu1 %v2804_v20, %s2734_s9  ;;  %s4452_s30 = sld [smem:[#allocation2 + $0x20]] }
 0x184   : > { %v4160_v56 = vmul.f32 %v5176_v8, %v1112_v62  ;;  %v1251_v37 = vmul.f32 %v5178_v38, %v1244_v41  ;;  %v4167_v52 = vrot.slane %v1089_v15, %v3127_v14  ;;  %v1119_v18 = vsel %vm1111_vm11, %v3433_v42, %v3444_v45  ;;  %2099 = vrot.lane.b32.xlu0 %v2800_v19, %s2734_s9  ;;  %s4705_s9 = sld [smem:[#allocation2 + $0x28]] }
 0x185   : > { %v1187_v21 = vrot.slane %v1180_v59, %v3127_v14  ;;  %v1345_v46 = vrot.slane %v1338_v28, %v3127_v14  ;;  %v5181_v15 = vstv %s3546_s24  ;;  %v1476_v59 = vsel %vm1469_vm13, %v1473_v5, %v1475_v53  ;;  %s2737_s24 = smov 80  }
 0x186   : > { %v1247_v62 = vmul.f32 %v5181_v15, %v1239_v31  ;;  %v5182_v17 = vmov %v5181_v15  ;;  %v1477_v63 = vsel %vm1469_vm13, %v1475_v53, %v1473_v5  ;;  %v5183_v61 = vstv %s3707_s20  ;;  %v1509_v5 = vpop.permute.xlu1 %1508  ;;  %s4381_s20 = sld [smem:[#allocation2 + $0x9f]] }
 0x187   : > { %v1248_v29 = vmul.f32 %v5182_v17, %v1238_v10  ;;  %v1479_v28 = vmul.f32 %v5183_v61, %v1470_v3  ;;  %v5184_v41 = vmov %v5183_v61  ;;  %v5185_v48 = vstv %s3721_s2  ;;  %s2735_s2 = smov 82  }
 0x188   : > { %v1480_v34 = vmul.f32 %v5184_v41, %v1471_v54  ;;  %v1482_v55 = vmul.f32 %v5185_v48, %v1476_v59  ;;  %v5186_v8 = vmov %v5185_v48  ;;  %vm1552_vm9 = vcmp.lt.s32.totalorder %v3077_v24, 114  ;;  %2136 = vrot.lane.b32.xlu1 %v2812_v25, %s2735_s2  ;;  %2134 = vrot.lane.b32.xlu0 %v2808_v23, %s2735_s2 }
 0x189   : > { %v1483_v27 = vmul.f32 %v5186_v8, %v1477_v63  ;;  %v1118_v10 = vsel %vm1111_vm11, %v3444_v45, %v3433_v42  ;;  %v5187_v31 = vstv %s3310_s14  ;;  %v1252_v53 = vadd.f32 %v1250_v0, %v1247_v62  ;;  %v1507_v63 = vpop.permute.xlu0 %1506  ;;  %s5207_s14 = sld [smem:[#allocation24_spill]] }
 0x18a   : > { %v1124_v38 = vmul.f32 %v5187_v31, %v1119_v18  ;;  %v1253_v3 = vadd.f32 %v1251_v37, %v1248_v29  ;;  %v1189_v54 = vsel %vm4182_vm15, %v1187_v21, 0.0  ;;  %vm1195_vm13 = vcmp.lt.s32.totalorder %v3077_v24, 13  ;;  %v1516_v41 = vpop.permute.xlu1 %1515 }
 0x18b   : > { %v1352_v15 = vrot.slane %v1345_v46, %v3127_v14  ;;  %v1484_v17 = vadd.f32 %v1482_v55, %v1479_v28  ;;  %v1485_v59 = vadd.f32 %v1483_v27, %v1480_v34  ;;  %v1280_v42 = vsel %vm1278_vm5, %v3794_v39, %v3798_v2 }
 0x18c   : > { %v1286_v45 = vsel %vm1278_vm5, %v3817_v60, %v3829_v58  ;;  %v1511_v0 = vsel %vm1510_vm0, %v1507_v63, %v1509_v5  ;;  %v1512_v37 = vsel %vm1510_vm0, %v1509_v5, %v1507_v63  ;;  %v1103_v18 = vrot.slane %v4167_v52, %v3127_v14  ;;  %2143 = vrot.lane.b32.xlu1 %v2804_v20, %s2735_s2 }
 0x18d   : > { %v5188_v21 = vmov %v5187_v31  ;;  %v1285_v12 = vsel %vm1278_vm5, %v3829_v58, %v3817_v60  ;;  %v1488_v62 = vcombine.low %v1484_v17, %v1485_v59  ;;  %v4237_v29 = vadd.f32 %v1124_v38, %v1121_v4  ;;  %2141 = vrot.lane.b32.xlu0 %v2800_v19, %s2735_s2  ;;  %s4708_s2 = sld [smem:[#allocation2 + $0xa8]] }
 0x18e   : > { %v1125_v46 = vmul.f32 %v5188_v21, %v1118_v10  ;;  %v1190_v61 = vadd.f32 %v1189_v54, %v1023_v9  ;;  %v1256_v28 = vcombine.low %v1252_v53, %v1253_v3  ;;  %v1279_v52 = vsel %vm1278_vm5, %v3798_v2, %v3794_v39  ;;  %v1514_v9 = vpop.permute.xlu0 %1513  ;;  %v1551_v21 = vpop.permute.xlu1 %1550  ;;  %vm4349_vm5 = vmand %vm243_vm1, %vm253_vm6 }
 0x18f   : > { %v5189_v34 = vstv %s3574_s17  ;;  %v5190_v55 = vstv %s3583_s18  ;;  %v1354_v58 = vsel %vm245_vm10, %v1352_v15, 0.0  ;;  %v1495_v4 = vrot.slane %v1488_v62, %v3127_v14  ;;  %s4458_s17 = sld [smem:[#allocation2 + $0xa0]]  ;;  %s2738_s18 = smov 79  }
 0x190   : > { %v1288_v48 = vmul.f32 %v5189_v34, %v1280_v42  ;;  %v1291_v60 = vmul.f32 %v5190_v55, %v1286_v45  ;;  %v5191_v8 = vmov %v5190_v55  ;;  %v5192_v10 = vstv %s3744_s28  ;;  %2178 = vrot.lane.b32.xlu1 %v2812_v25, %s2736_s12  ;;  %s4584_s28 = sld [smem:[#allocation2 + $0x23]] }
 0x191   : > { %v1292_v27 = vmul.f32 %v5191_v8, %v1285_v12  ;;  %v1520_v31 = vmul.f32 %v5192_v10, %v1511_v0  ;;  %v1517_v39 = vsel %vm1510_vm0, %v1514_v9, %v1516_v41  ;;  %v1518_v2 = vsel %vm1510_vm0, %v1516_v41, %v1514_v9  ;;  %2176 = vrot.lane.b32.xlu0 %v2808_v23, %s2736_s12  ;;  %vm4387_vm0 = vmand %vm243_vm1, %vm244_vm2 }
 0x192   : > { %v1502_v38 = vrot.slane %v1495_v4, %v3127_v14  ;;  %v5193_v53 = vmov %v5192_v10  ;;  %v5194_v5 = vstv %s3760_s16  ;;  %vm1594_vm11 = vcmp.lt.s32.totalorder %v3077_v24, 113  ;;  %s4760_s16 = sld [smem:[#allocation2 + $0xa9]] }
 0x193   : > { %v1521_v3 = vmul.f32 %v5193_v53, %v1512_v37  ;;  %v1523_v54 = vmul.f32 %v5194_v5, %v1517_v39  ;;  %v5195_v15 = vmov %v5194_v5  ;;  %v1127_v59 = vadd.f32 %v1125_v46, %v4160_v56 }
 0x194   : > { %v1524_v17 = vmul.f32 %v5195_v15, %v1518_v2  ;;  %v1263_v63 = vrot.slane %v1256_v28, %v3127_v14  ;;  %v5196_v42 = vmov %v5189_v34  ;;  %v1355_v0 = vadd.f32 %v1354_v58, %v1190_v61  ;;  %v1549_v34 = vpop.permute.xlu0 %1548  ;;  %v5204_v2 = vld [vmem:[#allocation9_spill] sm:$0xff]  ;;  %2185 = vrot.lane.b32.xlu1 %v2804_v20, %s2736_s12 }
 0x195   : > { %v1289_v45 = vmul.f32 %v5196_v42, %v1279_v52  ;;  %v1293_v37 = vadd.f32 %v1291_v60, %v1288_v48  ;;  %v1504_v12 = vsel %vm252_vm4, %v1502_v38, 0.0  ;;  %v4274_v62 = vadd.f32 %v1523_v54, %v1520_v31  ;;  %2183 = vrot.lane.b32.xlu0 %v2800_v19, %s2736_s12  ;;  %s4774_s12 = sld [smem:[#allocation2 + $0x2c]] }
 0x196   : > { %v4276_v41 = vadd.f32 %v1524_v17, %v1521_v3  ;;  %v4278_v56 = vadd.f32 %v1504_v12, %v1355_v0  ;;  %v1553_v46 = vsel %vm1552_vm9, %v1549_v34, %v1551_v21  ;;  %v1554_v61 = vsel %vm1552_vm9, %v1551_v21, %v1549_v34 }
 0x197   : > { %v1294_v55 = vadd.f32 %v1292_v27, %v1289_v45  ;;  %v5198_v28 = vstv %s3205_s26  ;;  %v5200_v58 = vstv %s5197_s11  ;;  %v1105_v10 = vsel %vm243_vm1, %v1103_v18, 0.0  ;;  %s4758_s11 = sld [smem:[#allocation2 + $0x29]] }
 0x198   : > { %v1038_v52 = vmul.f32 %v5198_v28, %v4089_v16  ;;  %v5199_v48 = vmov %v5198_v28  ;;  %v1041_v4 = vmul.f32 %v5200_v58, %v4138_v40  ;;  %v1530_v9 = vcombine.low %v4274_v62, %v4276_v41  ;;  %v5202_v16 = vld [vmem:[#allocation37_spill] sm:$0xff]  ;;  %v1558_v40 = vpop.permute.xlu1 %1557  ;;  %v1556_v53 = vpop.permute.xlu0 %1555  ;;  %2220 = vrot.lane.b32.xlu1 %v2812_v25, %s2737_s24  ;;  %s4762_s26 = sld [smem:[#allocation2 + $0x2a]] }
 0x199   : > { %v1039_v60 = vmul.f32 %v5199_v48, %v4082_v33  ;;  %v5201_v8 = vmov %v5200_v58  ;;  %v1131_v31 = vcombine.low %v4237_v29, %v1127_v59  ;;  %v1196_v33 = vsel %vm1195_vm13, %v5202_v16, %v3572_v32  ;;  %2218 = vrot.lane.b32.xlu0 %v2808_v23, %s2737_s24 }
 0x19a   : > { %v1042_v27 = vmul.f32 %v5201_v8, %v4132_v44  ;;  %v1197_v39 = vsel %vm1195_vm13, %v3572_v32, %v5202_v16  ;;  %v5203_v44 = vld [vmem:[#allocation8_spill] sm:$0xff]  ;;  %v1413_v38 = vrot.slane %v1406_v51, %v3127_v14  ;;  %v1270_v3 = vrot.slane %v1263_v63, %v3127_v14 }
 0x19b   : > { %v1202_v18 = vsel %vm1195_vm13, %v5204_v2, %v5203_v44  ;;  %v1203_v29 = vsel %vm1195_vm13, %v5203_v44, %v5204_v2  ;;  %v4326_v32 = vld [vmem:[%s5205_s21] sm:$0x3]  ;;  %v1297_v5 = vcombine.low %v1293_v37, %v1294_v55  ;;  %v1559_v54 = vsel %vm1552_vm9, %v1556_v53, %v1558_v40  ;;  %s4766_s21 = sld [smem:[#allocation2 + $0xaa]] }
 0x19c   : > { %vm242_vm12 = vcmp.lt.s32.totalorder %v4326_v32, 15  ;;  %v1560_v36 = vsel %vm1552_vm9, %v1558_v40, %v1556_v53  ;;  %v1562_v35 = vmul.f32 %v1561_v26, %v1553_v46  ;;  %v1563_v51 = vmul.f32 %v1561_v26, %v1554_v61  ;;  %v1593_v37 = vpop.permute.xlu1 %1592  ;;  %v1591_v28 = vpop.permute.xlu0 %1590  ;;  %vm4426_vm9 = vmand %vm247_vm7, %vm249_vm8  ;;  %2227 = vrot.lane.b32.xlu1 %v2804_v20, %s2737_s24 }
 0x19d   : > { %v1565_v15 = vmul.f32 %v1564_v49, %v1559_v54  ;;  %v1566_v17 = vmul.f32 %v1564_v49, %v1560_v36  ;;  %vm1636_vm14 = vcmp.lt.s32.totalorder %v3077_v24, 112  ;;  %v1138_v63 = vrot.slane %v1131_v31, %v3127_v14  ;;  %vm4403_vm15 = vmand %vm242_vm12, %vm249_vm8  ;;  %2225 = vrot.lane.b32.xlu0 %v2800_v19, %s2737_s24  ;;  %s4784_s24 = sld [smem:[#allocation2 + $0xad]] }
 0x19e   : > { %v5210_v42 = vstv %s5206_s19  ;;  %v5211_v45 = vstv %s5207_s14  ;;  %v1420_v55 = vrot.slane %v1413_v38, %v3127_v14  ;;  %v1272_v48 = vsel %vm253_vm6, %v1270_v3, 0.0  ;;  %s4770_s19 = sld [smem:[#allocation2 + $0xab]] }
 0x19f   : > { %v1205_v26 = vmul.f32 %v5210_v42, %v1197_v39  ;;  %v1208_v0 = vmul.f32 %v5211_v45, %v1203_v29  ;;  %v5212_v21 = vmov %v5211_v45  ;;  %v5213_v12 = vmov %v5210_v42  ;;  %v5220_v45 = vld [vmem:[#allocation13_spill] sm:$0xff]  ;;  %s4772_s14 = sld [smem:[#allocation2 + $0x2b]] }
 0x1a0   : > { %v1209_v49 = vmul.f32 %v5212_v21, %v1202_v18  ;;  %v1206_v34 = vmul.f32 %v5213_v12, %v1196_v33  ;;  %v1567_v46 = vadd.f32 %v1565_v15, %v1562_v35  ;;  %v1568_v61 = vadd.f32 %v1566_v17, %v1563_v51  ;;  %v1600_v38 = vpop.permute.xlu1 %1599  ;;  %v5221_v12 = vld [vmem:[#allocation12_spill] sm:$0xff]  ;;  %2261 = vrot.lane.b32.xlu1 %v2812_v25, %s2738_s18 }
 0x1a1   : > { %v1304_v58 = vrot.slane %v1297_v5, %v3127_v14  ;;  %v1595_v8 = vsel %vm1594_vm11, %v1591_v28, %v1593_v37  ;;  %v1596_v31 = vsel %vm1594_vm11, %v1593_v37, %v1591_v28  ;;  %v980_v16 = vsel %vm4349_vm5, %v978_v57, 0.0  ;;  %vm4477_vm5 = vmand %vm242_vm12, %vm245_vm10  ;;  %2259 = vrot.lane.b32.xlu0 %v2808_v23, %s2738_s18 }
 0x1a2   : > { %v1043_v33 = vadd.f32 %v1041_v4, %v1038_v52  ;;  %v1106_v40 = vadd.f32 %v1105_v10, %v4074_v43  ;;  %v1572_v39 = vcombine.low %v1567_v46, %v1568_v61  ;;  %v1044_v44 = vadd.f32 %v1042_v27, %v1039_v60  ;;  %v1598_v4 = vpop.permute.xlu0 %1597 }
 0x1a3   : > { %v1145_v2 = vrot.slane %v1138_v63, %v3127_v14  ;;  %v1210_v18 = vadd.f32 %v1208_v0, %v1205_v26  ;;  %v1211_v29 = vadd.f32 %v1209_v49, %v1206_v34  ;;  %v1422_v57 = vsel %vm244_vm2, %v1420_v55, 0.0 }
 0x1a4   : > { %v1273_v43 = vadd.f32 %v1272_v48, %v1106_v40  ;;  %v1454_v52 = vrot.slane %v1447_v30, %v3127_v14  ;;  %v1579_v60 = vrot.slane %v1572_v39, %v3127_v14  ;;  %v1311_v27 = vrot.slane %v1304_v58, %v3127_v14  ;;  %v1635_v17 = vpop.permute.xlu1 %1634  ;;  %2268 = vrot.lane.b32.xlu1 %v2804_v20, %s2738_s18 }
 0x1a5   : > { %v1604_v53 = vmul.f32 %v1603_v13, %v1595_v8  ;;  %v1601_v3 = vsel %vm1594_vm11, %v1598_v4, %v1600_v38  ;;  %v1602_v50 = vsel %vm1594_vm11, %v1600_v38, %v1598_v4  ;;  %v1605_v30 = vmul.f32 %v1603_v13, %v1596_v31  ;;  %vm4464_vm11 = vmand %vm247_vm7, %vm248_vm3  ;;  %v5227_v4 = vld [vmem:[#allocation39_spill] sm:$0xff]  ;;  %2266 = vrot.lane.b32.xlu0 %v2800_v19, %s2738_s18  ;;  %s4802_s18 = sld [smem:[#allocation2 + $0x2f]] }
 0x1a6   : > { %v1586_v6 = vrot.slane %v1579_v60, %v3127_v14  ;;  %v1607_v5 = vmul.f32 %v1606_v1, %v1601_v3  ;;  %v1608_v54 = vmul.f32 %v1606_v1, %v1602_v50  ;;  %v1048_v35 = vcombine.low %v1043_v33, %v1044_v44  ;;  %v1633_v26 = vpop.permute.xlu0 %1632  ;;  %v5228_v3 = vld [vmem:[#allocation38_spill] sm:$0xff]  ;;  %v5229_v50 = vld [vmem:[#allocation40_spill] sm:$0xff]  ;;  %vm4500_vm7 = vmand %vm243_vm1, %vm245_vm10 }
 0x1a7   : > { %v1147_v51 = vsel %vm4387_vm0, %v1145_v2, 0.0  ;;  %v1215_v15 = vcombine.low %v1210_v18, %v1211_v29  ;;  %v1423_v13 = vadd.f32 %v1422_v57, %v1273_v43  ;;  %v1461_v1 = vrot.slane %v1454_v52, %v3127_v14  ;;  %vm1527_vm0 = vmand %vm242_vm12, %vm253_vm6 }
 0x1a8   : > { %v1588_v59 = vsel %vm4403_vm15, %v1586_v6, 0.0  ;;  %v1609_v63 = vadd.f32 %v1607_v5, %v1604_v53  ;;  %v1610_v42 = vadd.f32 %v1608_v54, %v1605_v30  ;;  %v981_v0 = vadd.f32 %v980_v16, %v5220_v45  ;;  %v1642_v8 = vpop.permute.xlu1 %1641  ;;  %2303 = vrot.lane.b32.xlu1 %v2812_v25, %s2739_s3 }
 0x1a9   : > { %v4436_v21 = vadd.f32 %v1588_v59, %v1423_v13  ;;  %v1637_v49 = vsel %vm1636_vm14, %v1633_v26, %v1635_v17  ;;  %v1638_v37 = vsel %vm1636_vm14, %v1635_v17, %v1633_v26  ;;  %v5222_v34 = vrot.slane %v5221_v12, %v3127_v14  ;;  %2301 = vrot.lane.b32.xlu0 %v2808_v23, %s2739_s3 }
 0x1aa   : > { %v1313_v46 = vsel %vm249_vm8, %v1311_v27, 0.0  ;;  %v1614_v61 = vcombine.low %v1609_v63, %v1610_v42  ;;  %v1645_v28 = vstv %s4378_s10  ;;  %v894_v48 = vrot.slane %v4071_v11, %v3127_v14  ;;  %v1640_v44 = vpop.permute.xlu0 %1639  ;;  %s4778_s10 = sld [smem:[#allocation2 + $0xac]] }
 0x1ab   : > { %v729_v55 = vsel %vm4426_vm9, %v5222_v34, 0.0  ;;  %v1148_v58 = vadd.f32 %v1147_v51, %v981_v0  ;;  %v1648_v31 = vstv %s4381_s20  ;;  %vm1677_vm13 = vcmp.lt.s32.totalorder %v3077_v24, 111  ;;  %vm1694_vm9 = vmand %vm242_vm12, %vm244_vm2  ;;  %s4782_s20 = sld [smem:[#allocation2 + $0x2d]] }
 0x1ac   : > { %v1055_v33 = vrot.slane %v1048_v35, %v3127_v14  ;;  %v1222_v40 = vrot.slane %v1215_v15, %v3127_v14  ;;  %v1463_v11 = vsel %vm248_vm3, %v1461_v1, 0.0  ;;  %v1621_v39 = vrot.slane %v1614_v61, %v3127_v14  ;;  %v1676_v30 = vpop.permute.xlu1 %1675  ;;  %2310 = vrot.lane.b32.xlu1 %v2804_v20, %s2739_s3 }
 0x1ad   : > { %v1314_v2 = vadd.f32 %v1313_v46, %v1148_v58  ;;  %v1646_v29 = vmul.f32 %v1645_v28, %v1637_v49  ;;  %v1643_v38 = vsel %vm1636_vm14, %v1640_v44, %v1642_v8  ;;  %v1644_v47 = vsel %vm1636_vm14, %v1642_v8, %v1640_v44  ;;  %vm1212_vm14 = vmand %vm243_vm1, %vm252_vm4  ;;  %2308 = vrot.lane.b32.xlu0 %v2800_v19, %s2739_s3  ;;  %s4879_s3 = sld [smem:[#allocation2 + $0xb0]] }
 0x1ae   : > { %v1628_v43 = vrot.slane %v1621_v39, %v3127_v14  ;;  %v1647_v57 = vmul.f32 %v1645_v28, %v1638_v37  ;;  %v1649_v52 = vmul.f32 %v1648_v31, %v1643_v38  ;;  %v1650_v60 = vmul.f32 %v1648_v31, %v1644_v47  ;;  %v1674_v51 = vpop.permute.xlu0 %1673 }
 0x1af   : > { %v730_v27 = vadd.f32 %v729_v55, %v5227_v4  ;;  %v896_v10 = vsel %vm4464_vm11, %v894_v48, 0.0  ;;  %v1464_v53 = vadd.f32 %v1463_v11, %v1314_v2  ;;  %v1366_v6 = vcombine.low %v5229_v50, %v5228_v3 }
 0x1b0   : > { %v1062_v5 = vrot.slane %v1055_v33, %v3127_v14  ;;  %v1630_v54 = vsel %vm4477_vm5, %v1628_v43, 0.0  ;;  %v1651_v36 = vadd.f32 %v1649_v52, %v1646_v29  ;;  %v1652_v35 = vadd.f32 %v1650_v60, %v1647_v57  ;;  %v1683_v0 = vpop.permute.xlu1 %1682  ;;  %2345 = vrot.lane.b32.xlu1 %v2812_v25, %s2740_s5  ;;  %vm1778_vm5 = vmand %vm242_vm12, %vm252_vm4 }
 0x1b1   : > { %v1229_v13 = vrot.slane %v1222_v40, %v3127_v14  ;;  %v4505_v17 = vadd.f32 %v1630_v54, %v1464_v53  ;;  %v1678_v1 = vsel %vm1677_vm13, %v1674_v51, %v1676_v30  ;;  %v1679_v59 = vsel %vm1677_vm13, %v1676_v30, %v1674_v51  ;;  %2343 = vrot.lane.b32.xlu0 %v2808_v23, %s2740_s5 }
 0x1b2   : > { %v1655_v63 = vcombine.low %v1651_v36, %v1652_v35  ;;  %v1686_v42 = vstv %s4452_s30  ;;  %v897_v26 = vadd.f32 %v896_v10, %v730_v27  ;;  %v1373_v45 = vrot.slane %v1366_v6, %v3127_v14  ;;  %v1681_v34 = vpop.permute.xlu0 %1680  ;;  %s4792_s30 = sld [smem:[#allocation2 + $0x2e]] }
 0x1b3   : > { %v1689_v49 = vstv %s4458_s17  ;;  %v1064_v37 = vsel %vm4500_vm7, %v1062_v5, 0.0  ;;  %v1537_v22 = vrot.slane %v1530_v9, %v3127_v14  ;;  %vm1719_vm1 = vcmp.lt.s32.totalorder %v3077_v24, 110  ;;  %s4798_s17 = sld [smem:[#allocation2 + $0xae]] }
 0x1b4   : > { %v1662_v12 = vrot.slane %v1655_v63, %v3127_v14  ;;  %v1231_v55 = vsel %vm1212_vm14, %v1229_v13, 0.0  ;;  %v1687_v46 = vmul.f32 %v1686_v42, %v1678_v1  ;;  %v1684_v61 = vsel %vm1677_vm13, %v1681_v34, %v1683_v0  ;;  %v1718_v31 = vpop.permute.xlu1 %1717  ;;  %2352 = vrot.lane.b32.xlu1 %v2804_v20, %s2740_s5 }
 0x1b5   : > { %v1685_v28 = vsel %vm1677_vm13, %v1683_v0, %v1681_v34  ;;  %v1688_v62 = vmul.f32 %v1686_v42, %v1679_v59  ;;  %v1690_v41 = vmul.f32 %v1689_v49, %v1684_v61  ;;  %v1065_v58 = vadd.f32 %v1064_v37, %v897_v26  ;;  %2350 = vrot.lane.b32.xlu0 %v2800_v19, %s2740_s5  ;;  %vm1736_vm13 = vmand %vm242_vm12, %vm248_vm3 }
 0x1b6   : > { %v1669_v48 = vrot.slane %v1662_v12, %v3127_v14  ;;  %v1691_v9 = vmul.f32 %v1689_v49, %v1685_v28  ;;  %v1380_v8 = vrot.slane %v1373_v45, %v3127_v14  ;;  %v1544_v16 = vrot.slane %v1537_v22, %v3127_v14  ;;  %v1716_v39 = vpop.permute.xlu0 %1715 }
 0x1b7   : > { %v1692_v40 = vadd.f32 %v1690_v41, %v1687_v46  ;;  %v1232_v44 = vadd.f32 %v1231_v55, %v1065_v58  ;;  %v1720_v18 = vsel %vm1719_vm1, %v1716_v39, %v1718_v31  ;;  %v1721_v29 = vsel %vm1719_vm1, %v1718_v31, %v1716_v39 }
 0x1b8   : > { %v1671_v33 = vsel %vm242_vm12, %v1669_v48, 0.0  ;;  %v1693_v11 = vadd.f32 %v1691_v9, %v1688_v62  ;;  %v1728_v47 = vstv %s4518_s23  ;;  %v1725_v43 = vpop.permute.xlu1 %1724  ;;  %v1731_v57 = vstv %s4522_s29  ;;  %s4832_s23 = sld [smem:[#allocation2 + $0xaf]] }
 0x1b9   : > { %v4548_v2 = vadd.f32 %v1671_v33, %v4278_v56  ;;  %v1546_v56 = vsel %vm1527_vm0, %v1544_v16, 0.0  ;;  %vm1761_vm15 = vcmp.lt.s32.totalorder %v3077_v24, 109  ;;  %v1382_v4 = vadd.f32 %v1380_v8, %v1232_v44  ;;  %s4871_s29 = sld [smem:[#allocation2 + $0x30]] }
 0x1ba   : > { %v1697_v38 = vcombine.low %v1692_v40, %v1693_v11  ;;  %v1723_v60 = vpop.permute.xlu0 %1722  ;;  %v1729_v27 = vmul.f32 %v1728_v47, %v1720_v18  ;;  %v1730_v50 = vmul.f32 %v1728_v47, %v1721_v29  ;;  %v1770_v63 = vstv %s4557_s13  ;;  %s5232_s13 = sld [smem:[#allocation6_spill]] }
 0x1bb   : > { %v1726_v10 = vsel %vm1719_vm1, %v1723_v60, %v1725_v43  ;;  %v1727_v53 = vsel %vm1719_vm1, %v1725_v43, %v1723_v60  ;;  %v1547_v5 = vadd.f32 %v1546_v56, %v1382_v4  ;;  %v1773_v42 = vstv %s4560_s22  ;;  %s5233_s22 = sld [smem:[#allocation7_spill]] }
 0x1bc   : > { %v1704_v52 = vrot.slane %v1697_v38, %v3127_v14  ;;  %v1732_v6 = vmul.f32 %v1731_v57, %v1726_v10  ;;  %v1733_v30 = vmul.f32 %v1731_v57, %v1727_v53  ;;  %v1760_v54 = vpop.permute.xlu1 %1759  ;;  %vm1803_vm11 = vcmp.lt.s32.totalorder %v3077_v24, 99 }
 0x1bd   : > { %v1812_v58 = vstv %s4584_s28  ;;  %v1815_v31 = vstv %s4587_s25  ;;  %vm1845_vm7 = vcmp.lt.s32.totalorder %v3077_v24, 98  ;;  %vm246_vm12 = vcmp.lt.s32.totalorder %v4326_v32, 14 }
 0x1be   : > { %v1711_v3 = vrot.slane %v1704_v52, %v3127_v14  ;;  %v1734_v35 = vadd.f32 %v1732_v6, %v1729_v27  ;;  %v1735_v51 = vadd.f32 %v1733_v30, %v1730_v50  ;;  %v1758_v15 = vpop.permute.xlu0 %1757  ;;  %v1854_v10 = vstv %s4608_s0  ;;  %vm1820_vm14 = vmand %vm246_vm12, %vm253_vm6  ;;  %s5236_s0 = sld [smem:[#allocation45_spill]] }
 0x1bf   : > { %v1762_v25 = vsel %vm1761_vm15, %v1758_v15, %v1760_v54  ;;  %v1763_v1 = vsel %vm1761_vm15, %v1760_v54, %v1758_v15  ;;  %vm1887_vm1 = vcmp.lt.s32.totalorder %v3077_v24, 97  ;;  %vm1862_vm0 = vmand %vm246_vm12, %vm249_vm8 }
 0x1c0   : > { %v1713_v36 = vsel %vm1694_vm9, %v1711_v3, 0.0  ;;  %v1739_v59 = vcombine.low %v1734_v35, %v1735_v51  ;;  %v1767_v23 = vpop.permute.xlu1 %1766  ;;  %v1771_v0 = vmul.f32 %v1770_v63, %v1762_v25  ;;  %v1772_v37 = vmul.f32 %v1770_v63, %v1763_v1  ;;  %vm1904_vm9 = vmand %vm246_vm12, %vm245_vm10  ;;  %s5235_s5 = sshll.u32 %s5232_s13, 4 }
 0x1c1   : > { %v4575_v13 = vadd.f32 %v1713_v36, %v1547_v5  ;;  %v1857_v3 = vstv %s4611_s6 }
 0x1c2   : > { %v1746_v26 = vrot.slane %v1739_v59, %v3127_v14  ;;  %v1765_v45 = vpop.permute.xlu0 %1764 }
 0x1c3   : > { %v1768_v20 = vsel %vm1761_vm15, %v1765_v45, %v1767_v23  ;;  %v1769_v19 = vsel %vm1761_vm15, %v1767_v23, %v1765_v45  ;;  %vm1929_vm15 = vcmp.lt.s32.totalorder %v3077_v24, 96 }
 0x1c4   : > { %v1753_v49 = vrot.slane %v1746_v26, %v3127_v14  ;;  %v1774_v22 = vmul.f32 %v1773_v42, %v1768_v20  ;;  %v1775_v12 = vmul.f32 %v1773_v42, %v1769_v19  ;;  %v1802_v34 = vpop.permute.xlu1 %1801  ;;  %v1899_v19 = vstv %s4636_s15  ;;  %s211_s6 = scalar_lea.vmem %s5236_s0, %s5235_s5 }
 0x1c6   : > { %v1755_v55 = vsel %vm1736_vm13, %v1753_v49, 0.0  ;;  %v1776_v46 = vadd.f32 %v1774_v22, %v1771_v0  ;;  %v1777_v61 = vadd.f32 %v1775_v12, %v1772_v37  ;;  %v1800_v28 = vpop.permute.xlu0 %1799  ;;  %v1896_v0 = vstv %s4633_s4 }
 0x1c7   : > { %v4601_v48 = vadd.f32 %v1755_v55, %v4436_v21  ;;  %v1804_v62 = vsel %vm1803_vm11, %v1800_v28, %v1802_v34  ;;  %v1805_v41 = vsel %vm1803_vm11, %v1802_v34, %v1800_v28  ;;  %vm1970_vm13 = vcmp.lt.s32.totalorder %v3077_v24, 95 }
 0x1c8   : > { %v1781_v9 = vcombine.low %v1776_v46, %v1777_v61  ;;  %v1809_v8 = vpop.permute.xlu1 %1808  ;;  %v1813_v21 = vmul.f32 %v1812_v58, %v1804_v62  ;;  %v1814_v44 = vmul.f32 %v1812_v58, %v1805_v41 }
 0x1ca   : > { %v1788_v16 = vrot.slane %v1781_v9, %v3127_v14  ;;  %v1807_v33 = vpop.permute.xlu0 %1806 }
 0x1cb   : > { %v1810_v40 = vsel %vm1803_vm11, %v1807_v33, %v1809_v8  ;;  %v1811_v11 = vsel %vm1803_vm11, %v1809_v8, %v1807_v33  ;;  %vm2012_vm11 = vcmp.lt.s32.totalorder %v3077_v24, 94 }
 0x1cc   : > { %v1795_v39 = vrot.slane %v1788_v16, %v3127_v14  ;;  %v1816_v18 = vmul.f32 %v1815_v31, %v1810_v40  ;;  %v1817_v29 = vmul.f32 %v1815_v31, %v1811_v11  ;;  %v1844_v38 = vpop.permute.xlu1 %1843  ;;  %v1941_v11 = vstv %s4660_s1 }
 0x1ce   : > { %v1797_v47 = vsel %vm1778_vm5, %v1795_v39, 0.0  ;;  %v1818_v43 = vadd.f32 %v1816_v18, %v1813_v21  ;;  %v1819_v57 = vadd.f32 %v1817_v29, %v1814_v44  ;;  %v1842_v56 = vpop.permute.xlu0 %1841  ;;  %v1938_v21 = vstv %s4657_s7  ;;  %vm1987_vm5 = vmand %vm246_vm12, %vm244_vm2 }
 0x1cf   : > { %v4625_v52 = vadd.f32 %v1797_v47, %v4505_v17  ;;  %v1846_v60 = vsel %vm1845_vm7, %v1842_v56, %v1844_v38  ;;  %v1847_v4 = vsel %vm1845_vm7, %v1844_v38, %v1842_v56 }
 0x1d0   : > { %v1823_v27 = vcombine.low %v1818_v43, %v1819_v57  ;;  %v1851_v53 = vpop.permute.xlu1 %1850  ;;  %v1855_v6 = vmul.f32 %v1854_v10, %v1846_v60  ;;  %v1856_v36 = vmul.f32 %v1854_v10, %v1847_v4 }
 0x1d2   : > { %v1830_v50 = vrot.slane %v1823_v27, %v3127_v14  ;;  %v1849_v17 = vpop.permute.xlu0 %1848 }
 0x1d3   : > { %v1852_v30 = vsel %vm1845_vm7, %v1849_v17, %v1851_v53  ;;  %v1853_v5 = vsel %vm1845_vm7, %v1851_v53, %v1849_v17  ;;  %vm2029_vm7 = vmand %vm246_vm12, %vm248_vm3 }
 0x1d4   : > { %v1837_v54 = vrot.slane %v1830_v50, %v3127_v14  ;;  %v1858_v35 = vmul.f32 %v1857_v3, %v1852_v30  ;;  %v1859_v51 = vmul.f32 %v1857_v3, %v1853_v5  ;;  %v1886_v15 = vpop.permute.xlu1 %1885  ;;  %v1982_v5 = vstv %s4684_s27 }
 0x1d6   : > { %v1839_v25 = vsel %vm1820_vm14, %v1837_v54, 0.0  ;;  %v1860_v1 = vadd.f32 %v1858_v35, %v1855_v6  ;;  %v1861_v59 = vadd.f32 %v1859_v51, %v1856_v36  ;;  %v1884_v63 = vpop.permute.xlu0 %1883  ;;  %v1979_v6 = vstv %s4681_s8 }
 0x1d7   : > { %v4650_v23 = vadd.f32 %v1839_v25, %v4548_v2  ;;  %v1888_v42 = vsel %vm1887_vm1, %v1884_v63, %v1886_v15  ;;  %v1889_v26 = vsel %vm1887_vm1, %v1886_v15, %v1884_v63  ;;  %vm2054_vm14 = vcmp.lt.s32.totalorder %v3077_v24, 93 }
 0x1d8   : > { %v1865_v45 = vcombine.low %v1860_v1, %v1861_v59  ;;  %v1893_v20 = vpop.permute.xlu1 %1892  ;;  %v1897_v2 = vmul.f32 %v1896_v0, %v1888_v42  ;;  %v1898_v55 = vmul.f32 %v1896_v0, %v1889_v26 }
 0x1da   : > { %v1872_v49 = vrot.slane %v1865_v45, %v3127_v14  ;;  %v1891_v37 = vpop.permute.xlu0 %1890 }
 0x1db   : > { %v1894_v22 = vsel %vm1887_vm1, %v1891_v37, %v1893_v20  ;;  %v1895_v12 = vsel %vm1887_vm1, %v1893_v20, %v1891_v37  ;;  %vm2096_vm1 = vcmp.lt.s32.totalorder %v3077_v24, 83 }
 0x1dc   : > { %v1879_v34 = vrot.slane %v1872_v49, %v3127_v14  ;;  %v1900_v46 = vmul.f32 %v1899_v19, %v1894_v22  ;;  %v1901_v61 = vmul.f32 %v1899_v19, %v1895_v12  ;;  %v1928_v28 = vpop.permute.xlu1 %1927  ;;  %v2024_v12 = vstv %s4708_s2 }
 0x1de   : > { %v1881_v62 = vsel %vm1862_vm0, %v1879_v34, 0.0  ;;  %v1902_v41 = vadd.f32 %v1900_v46, %v1897_v2  ;;  %v1903_v9 = vadd.f32 %v1901_v61, %v1898_v55  ;;  %v1926_v58 = vpop.permute.xlu0 %1925  ;;  %v2021_v2 = vstv %s4705_s9 }
 0x1df   : > { %v4674_v8 = vadd.f32 %v1881_v62, %v4575_v13  ;;  %v1930_v31 = vsel %vm1929_vm15, %v1926_v58, %v1928_v28  ;;  %v1931_v16 = vsel %vm1929_vm15, %v1928_v28, %v1926_v58  ;;  %vm2138_vm0 = vcmp.lt.s32.totalorder %v3077_v24, 82 }
 0x1e0   : > { %v1907_v33 = vcombine.low %v1902_v41, %v1903_v9  ;;  %v1935_v40 = vpop.permute.xlu1 %1934  ;;  %v1939_v13 = vmul.f32 %v1938_v21, %v1930_v31  ;;  %v1940_v47 = vmul.f32 %v1938_v21, %v1931_v16 }
 0x1e2   : > { %v1914_v39 = vrot.slane %v1907_v33, %v3127_v14  ;;  %v1933_v44 = vpop.permute.xlu0 %1932 }
 0x1e3   : > { %v1936_v18 = vsel %vm1929_vm15, %v1933_v44, %v1935_v40  ;;  %v1937_v29 = vsel %vm1929_vm15, %v1935_v40, %v1933_v44  ;;  %vm2180_vm15 = vcmp.lt.s32.totalorder %v3077_v24, 81 }
 0x1e4   : > { %v1921_v38 = vrot.slane %v1914_v39, %v3127_v14  ;;  %v1942_v43 = vmul.f32 %v1941_v11, %v1936_v18  ;;  %v1943_v57 = vmul.f32 %v1941_v11, %v1937_v29  ;;  %v1969_v56 = vpop.permute.xlu1 %1968 }
 0x1e6   : > { %v1923_v60 = vsel %vm1904_vm9, %v1921_v38, 0.0  ;;  %v1944_v4 = vadd.f32 %v1942_v43, %v1939_v13  ;;  %v1945_v27 = vadd.f32 %v1943_v57, %v1940_v47  ;;  %v1967_v10 = vpop.permute.xlu0 %1966  ;;  %vm2222_vm9 = vcmp.lt.s32.totalorder %v3077_v24, 80 }
 0x1e7   : > { %v4698_v53 = vadd.f32 %v1923_v60, %v4601_v48  ;;  %v1971_v3 = vsel %vm1970_vm13, %v1967_v10, %v1969_v56  ;;  %v1972_v50 = vsel %vm1970_vm13, %v1969_v56, %v1967_v10 }
 0x1e8   : > { %v1948_v17 = vcombine.low %v1944_v4, %v1945_v27  ;;  %v1976_v30 = vpop.permute.xlu1 %1975  ;;  %v1980_v35 = vmul.f32 %v1979_v6, %v1971_v3  ;;  %v1981_v25 = vmul.f32 %v1979_v6, %v1972_v50  ;;  %v2066_v6 = vstv %s4760_s16 }
 0x1ea   : > { %v1955_v54 = vrot.slane %v1948_v17, %v3127_v14  ;;  %v1974_v36 = vpop.permute.xlu0 %1973  ;;  %v2063_v17 = vstv %s4758_s11 }
 0x1eb   : > { %v1977_v48 = vsel %vm1970_vm13, %v1974_v36, %v1976_v30  ;;  %v1978_v51 = vsel %vm1970_vm13, %v1976_v30, %v1974_v36  ;;  %vm2263_vm13 = vcmp.lt.s32.totalorder %v3077_v24, 79 }
 0x1ec   : > { %v1962_v15 = vrot.slane %v1955_v54, %v3127_v14  ;;  %v1983_v1 = vmul.f32 %v1982_v5, %v1977_v48  ;;  %v1984_v59 = vmul.f32 %v1982_v5, %v1978_v51  ;;  %v2011_v63 = vpop.permute.xlu1 %2010  ;;  %v2108_v5 = vstv %s4766_s21 }
 0x1ed   : > { %v2105_v48 = vstv %s4762_s26  ;;  %v2150_v51 = vstv %s4770_s19 }
 0x1ee   : > { %v1964_v42 = vsel %vm246_vm12, %v1962_v15, 0.0  ;;  %v1985_v26 = vadd.f32 %v1983_v1, %v1980_v35  ;;  %v1986_v45 = vadd.f32 %v1984_v59, %v1981_v25  ;;  %v2009_v0 = vpop.permute.xlu0 %2008 }
 0x1ef   : > { %v4720_v20 = vadd.f32 %v1964_v42, %v4625_v52  ;;  %v2013_v19 = vsel %vm2012_vm11, %v2009_v0, %v2011_v63  ;;  %v2014_v49 = vsel %vm2012_vm11, %v2011_v63, %v2009_v0  ;;  %v2147_v63 = vstv %s4772_s14 }
 0x1f0   : > { %v1990_v37 = vcombine.low %v1985_v26, %v1986_v45  ;;  %v2018_v22 = vpop.permute.xlu1 %2017  ;;  %v2022_v52 = vmul.f32 %v2021_v2, %v2013_v19  ;;  %v2023_v62 = vmul.f32 %v2021_v2, %v2014_v49  ;;  %v2189_v2 = vstv %s4774_s12 }
 0x1f2   : > { %v1997_v34 = vrot.slane %v1990_v37, %v3127_v14  ;;  %v2016_v55 = vpop.permute.xlu0 %2015 }
 0x1f3   : > { %v2019_v46 = vsel %vm2012_vm11, %v2016_v55, %v2018_v22  ;;  %v2020_v61 = vsel %vm2012_vm11, %v2018_v22, %v2016_v55  ;;  %v2192_v22 = vstv %s4778_s10  ;;  %vm2305_vm11 = vcmp.lt.s32.totalorder %v3077_v24, 78 }
 0x1f4   : > { %v2004_v28 = vrot.slane %v1997_v34, %v3127_v14  ;;  %v2025_v41 = vmul.f32 %v2024_v12, %v2019_v46  ;;  %v2026_v9 = vmul.f32 %v2024_v12, %v2020_v61  ;;  %v4738_v58 = vpop.permute.xlu1 %2052 }
 0x1f6   : > { %v2006_v31 = vsel %vm1987_vm5, %v2004_v28, 0.0  ;;  %v2027_v16 = vadd.f32 %v2025_v41, %v2022_v52  ;;  %v2028_v33 = vadd.f32 %v2026_v9, %v2023_v62  ;;  %v4740_v21 = vpop.permute.xlu0 %2050  ;;  %v2231_v52 = vstv %s4782_s20 }
 0x1f7   : > { %v4743_v40 = vadd.f32 %v2006_v31, %v4650_v23  ;;  %v2055_v46 = vsel %vm2054_vm14, %v4740_v21, %v4738_v58  ;;  %v2056_v61 = vsel %vm2054_vm14, %v4738_v58, %v4740_v21  ;;  %v2272_v21 = vstv %s4792_s30 }
 0x1f8   : > { %v2032_v11 = vcombine.low %v2027_v16, %v2028_v33  ;;  %v4745_v39 = vpop.permute.xlu1 %2059  ;;  %vm250_vm5 = vcmp.lt.s32.totalorder %v4326_v32, 13  ;;  %v5234_v32 = vld [vmem:[#allocation31_spill] sm:$0xff] }
 0x1fa   : > { %v2039_v44 = vrot.slane %v2032_v11, %v3127_v14  ;;  %v4748_v13 = vpop.permute.xlu0 %2057 }
 0x1fb   : > { %v2061_v41 = vsel %vm2054_vm14, %v4748_v13, %v4745_v39  ;;  %v2062_v9 = vsel %vm2054_vm14, %v4745_v39, %v4748_v13  ;;  %vm2113_vm14 = vmand %vm250_vm5, %vm253_vm6 }
 0x1fc   : > { %v2046_v18 = vrot.slane %v2039_v44, %v3127_v14  ;;  %v2095_v29 = vpop.permute.xlu1 %2094  ;;  %v2068_v39 = vmul.f32 %v2066_v6, %v2062_v9  ;;  %vm2322_vm6 = vmand %vm250_vm5, %vm248_vm3 }
 0x1fd   : > { %vm2364_vm3 = vmand %vm250_vm5, %vm252_vm4 }
 0x1fe   : > { %v2048_v38 = vsel %vm2029_vm7, %v2046_v18, 0.0  ;;  %v2093_v47 = vpop.permute.xlu0 %2092  ;;  %v2234_v18 = vstv %s4784_s24  ;;  %vm2347_vm7 = vcmp.lt.s32.totalorder %v3077_v24, 77 }
 0x1ff   : > { %v4756_v23 = vadd.f32 %v2048_v38, %v4674_v8  ;;  %v2097_v1 = vsel %vm2096_vm1, %v2093_v47, %v2095_v29  ;;  %v2098_v59 = vsel %vm2096_vm1, %v2095_v29, %v2093_v47  ;;  %v2275_v29 = vstv %s4798_s17 }
 0x200   : > { %v2102_v43 = vpop.permute.xlu1 %2101  ;;  %v2106_v34 = vmul.f32 %v2105_v48, %v2097_v1  ;;  %v2107_v55 = vmul.f32 %v2105_v48, %v2098_v59  ;;  %v2314_v38 = vstv %s4802_s18  ;;  %v2064_v47 = vmul.f32 %v2063_v17, %v2055_v46 }
 0x202   : > { %v2100_v57 = vpop.permute.xlu0 %2099 }
 0x203   : > { %v2103_v54 = vsel %vm2096_vm1, %v2100_v57, %v2102_v43  ;;  %v2104_v36 = vsel %vm2096_vm1, %v2102_v43, %v2100_v57  ;;  %v2065_v43 = vmul.f32 %v2063_v17, %v2056_v61  ;;  %v2067_v57 = vmul.f32 %v2066_v6, %v2061_v41  ;;  %vm2155_vm1 = vmand %vm250_vm5, %vm249_vm8 }
 0x204   : > { %v2137_v56 = vpop.permute.xlu1 %2136  ;;  %v2109_v42 = vmul.f32 %v2108_v5, %v2103_v54  ;;  %v2110_v26 = vmul.f32 %v2108_v5, %v2104_v36  ;;  %vm2071_vm8 = vmand %vm246_vm12, %vm252_vm4 }
 0x206   : > { %v2135_v60 = vpop.permute.xlu0 %2134  ;;  %v2111_v31 = vadd.f32 %v2109_v42, %v2106_v34  ;;  %v2112_v16 = vadd.f32 %v2110_v26, %v2107_v55  ;;  %v2070_v34 = vadd.f32 %v2068_v39, %v2065_v43 }
 0x207   : > { %v2139_v45 = vsel %vm2138_vm0, %v2135_v60, %v2137_v56  ;;  %v2140_v0 = vsel %vm2138_vm0, %v2137_v56, %v2135_v60 }
 0x208   : > { %v2144_v4 = vpop.permute.xlu1 %2143  ;;  %v2148_v28 = vmul.f32 %v2147_v63, %v2139_v45  ;;  %v2149_v62 = vmul.f32 %v2147_v63, %v2140_v0  ;;  %v2116_v13 = vcombine.low %v2111_v31, %v2112_v16 }
 0x20a   : > { %v2142_v27 = vpop.permute.xlu0 %2141  ;;  %v2123_v41 = vrot.slane %v2116_v13, %v3127_v14 }
 0x20b   : > { %v2145_v15 = vsel %vm2138_vm0, %v2142_v27, %v2144_v4  ;;  %v2146_v25 = vsel %vm2138_vm0, %v2144_v4, %v2142_v27  ;;  %vm2280_vm0 = vmand %vm250_vm5, %vm244_vm2 }
 0x20c   : > { %v4764_v10 = vpop.permute.xlu1 %2178  ;;  %v2151_v49 = vmul.f32 %v2150_v51, %v2145_v15  ;;  %v2152_v37 = vmul.f32 %v2150_v51, %v2146_v25  ;;  %v2130_v39 = vrot.slane %v2123_v41, %v3127_v14  ;;  %vm2197_vm2 = vmand %vm250_vm5, %vm245_vm10 }
 0x20e   : > { %v4768_v8 = vpop.permute.xlu0 %2176  ;;  %v2153_v11 = vadd.f32 %v2151_v49, %v2148_v28  ;;  %v2154_v44 = vadd.f32 %v2152_v37, %v2149_v62 }
 0x20f   : > { %v2181_v56 = vsel %vm2180_vm15, %v4768_v8, %v4764_v10  ;;  %v2182_v17 = vsel %vm2180_vm15, %v4764_v10, %v4768_v8 }
 0x210   : > { %v4776_v3 = vpop.permute.xlu1 %2185  ;;  %v2158_v5 = vcombine.low %v2153_v11, %v2154_v44  ;;  %v2190_v55 = vmul.f32 %v2189_v2, %v2181_v56  ;;  %v2191_v46 = vmul.f32 %v2189_v2, %v2182_v17 }
 0x212   : > { %v4780_v50 = vpop.permute.xlu0 %2183 }
 0x213   : > { %v2187_v6 = vsel %vm2180_vm15, %v4780_v50, %v4776_v3  ;;  %v2188_v54 = vsel %vm2180_vm15, %v4776_v3, %v4780_v50 }
 0x214   : > { %v4790_v30 = vpop.permute.xlu1 %2220  ;;  %v2193_v63 = vmul.f32 %v2192_v22, %v2187_v6  ;;  %v2194_v3 = vmul.f32 %v2192_v22, %v2188_v54  ;;  %v2317_v22 = vstv %s4832_s23  ;;  %v2356_v54 = vstv %s4871_s29 }
 0x216   : > { %v4796_v35 = vpop.permute.xlu0 %2218  ;;  %v2195_v16 = vadd.f32 %v2193_v63, %v2190_v55  ;;  %v2196_v2 = vadd.f32 %v2194_v3, %v2191_v46 }
 0x217   : > { %v2223_v50 = vsel %vm2222_vm9, %v4796_v35, %v4790_v30  ;;  %v2224_v42 = vsel %vm2222_vm9, %v4790_v30, %v4796_v35  ;;  %v2165_v30 = vrot.slane %v2158_v5, %v3127_v14 }
 0x218   : > { %v2228_v19 = vpop.permute.xlu1 %2227  ;;  %v2232_v61 = vmul.f32 %v2231_v52, %v2223_v50  ;;  %v2233_v28 = vmul.f32 %v2231_v52, %v2224_v42 }
 0x219   : > { %v2172_v13 = vrot.slane %v2165_v30, %v3127_v14 }
 0x21a   : > { %v2226_v12 = vpop.permute.xlu0 %2225 }
 0x21b   : > { %v2229_v48 = vsel %vm2222_vm9, %v2226_v12, %v2228_v19  ;;  %v2230_v51 = vsel %vm2222_vm9, %v2228_v19, %v2226_v12  ;;  %v2069_v12 = vadd.f32 %v2067_v57, %v2064_v47 }
 0x21c   : > { %v2262_v33 = vpop.permute.xlu1 %2261  ;;  %v2235_v45 = vmul.f32 %v2234_v18, %v2229_v48  ;;  %v2236_v0 = vmul.f32 %v2234_v18, %v2230_v51  ;;  %v2132_v51 = vsel %vm2113_vm14, %v2130_v39, 0.0 }
 0x21d   : > { %v2074_v57 = vcombine.low %v2069_v12, %v2070_v34  ;;  %v2133_v34 = vadd.f32 %v2132_v51, %v4720_v20 }
 0x21e   : > { %v2260_v58 = vpop.permute.xlu0 %2259  ;;  %v2238_v52 = vadd.f32 %v2236_v0, %v2233_v28 }
 0x21f   : > { %v2264_v60 = vsel %vm2263_vm13, %v2260_v58, %v2262_v33  ;;  %v2265_v4 = vsel %vm2263_vm13, %v2262_v33, %v2260_v58  ;;  %v2237_v33 = vadd.f32 %v2235_v45, %v2232_v61  ;;  %v2081_v48 = vrot.slane %v2074_v57, %v3127_v14  ;;  %v2662_v57 = vld [vmem:[%s5233_s22] sm:$0xff] }
 0x220   : > { %v2269_v27 = vpop.permute.xlu1 %2268  ;;  %v2273_v15 = vmul.f32 %v2272_v21, %v2264_v60  ;;  %v2274_v25 = vmul.f32 %v2272_v21, %v2265_v4  ;;  %v2200_v60 = vcombine.low %v2195_v16, %v2196_v2 }
 0x221   : > { %v2241_v4 = vcombine.low %v2237_v33, %v2238_v52  ;;  %v2088_v12 = vrot.slane %v2081_v48, %v3127_v14 }
 0x222   : > { %v2267_v36 = vpop.permute.xlu0 %2266 }
 0x223   : > { %v2270_v10 = vsel %vm2263_vm13, %v2267_v36, %v2269_v27  ;;  %v2271_v8 = vsel %vm2263_vm13, %v2269_v27, %v2267_v36  ;;  %v2090_v30 = vsel %vm2071_vm8, %v2088_v12, 0.0 }
 0x224   : > { %v2276_v1 = vmul.f32 %v2275_v29, %v2270_v10  ;;  %v2277_v59 = vmul.f32 %v2275_v29, %v2271_v8  ;;  %v2304_v26 = vpop.permute.xlu1 %2303  ;;  %v2091_v2 = vadd.f32 %v2090_v30, %v4698_v53 }
 0x226   : > { %v2278_v19 = vadd.f32 %v2276_v1, %v2273_v15  ;;  %v2279_v49 = vadd.f32 %v2277_v59, %v2274_v25  ;;  %v2302_v37 = vpop.permute.xlu0 %2301  ;;  %v2359_v15 = vstv %s4879_s3  ;;  %v2174_v25 = vsel %vm2155_vm1, %v2172_v13, 0.0  ;;  %v2663_v13 = vld [vmem:[%s5233_s22 + $0x8] sm:$0xff] }
 0x227   : > { %v2306_v35 = vsel %vm2305_vm11, %v2302_v37, %v2304_v26  ;;  %v2307_v9 = vsel %vm2305_vm11, %v2304_v26, %v2302_v37  ;;  %v2207_v1 = vrot.slane %v2200_v60, %v3127_v14  ;;  %v2248_v59 = vrot.slane %v2241_v4, %v3127_v14 }
 0x228   : > { %v2283_v62 = vcombine.low %v2278_v19, %v2279_v49  ;;  %v2311_v31 = vpop.permute.xlu1 %2310  ;;  %v2315_v21 = vmul.f32 %v2314_v38, %v2306_v35  ;;  %v2316_v29 = vmul.f32 %v2314_v38, %v2307_v9  ;;  %v2175_v55 = vadd.f32 %v2174_v25, %v4743_v40 }
 0x229   : > { %v2255_v20 = vrot.slane %v2248_v59, %v3127_v14 }
 0x22a   : > { %v2309_v11 = vpop.permute.xlu0 %2308  ;;  %v2290_v44 = vrot.slane %v2283_v62, %v3127_v14 }
 0x22b   : > { %v2312_v18 = vsel %vm2305_vm11, %v2309_v11, %v2311_v31  ;;  %v2313_v58 = vsel %vm2305_vm11, %v2311_v31, %v2309_v11  ;;  %v2257_v31 = vsel %vm250_vm5, %v2255_v20, 0.0 }
 0x22c   : > { %v2318_v47 = vmul.f32 %v2317_v22, %v2312_v18  ;;  %v2319_v43 = vmul.f32 %v2317_v22, %v2313_v58  ;;  %v2346_v56 = vpop.permute.xlu1 %2345  ;;  %v2297_v17 = vrot.slane %v2290_v44, %v3127_v14  ;;  %v2214_v22 = vrot.slane %v2207_v1, %v3127_v14 }
 0x22d   : > { %v2258_v11 = vadd.f32 %v2257_v31, %v2091_v2 }
 0x22e   : > { %v2320_v38 = vadd.f32 %v2318_v47, %v2315_v21  ;;  %v2321_v27 = vadd.f32 %v2319_v43, %v2316_v29  ;;  %v2344_v5 = vpop.permute.xlu0 %2343  ;;  %v2299_v50 = vsel %vm2280_vm0, %v2297_v17, 0.0  ;;  %v2216_v35 = vsel %vm2197_vm2, %v2214_v22, 0.0 }
 0x22f   : > { %v2348_v36 = vsel %vm2347_vm7, %v2344_v5, %v2346_v56  ;;  %v2349_v10 = vsel %vm2347_vm7, %v2346_v56, %v2344_v5  ;;  %v2300_v28 = vadd.f32 %v2299_v50, %v2133_v34  ;;  %v2217_v33 = vadd.f32 %v2216_v35, %v4756_v23 }
 0x230   : > { %v2325_v6 = vcombine.low %v2320_v38, %v2321_v27  ;;  %v2353_v8 = vpop.permute.xlu1 %2352  ;;  %v2357_v42 = vmul.f32 %v2356_v54, %v2348_v36  ;;  %v2358_v19 = vmul.f32 %v2356_v54, %v2349_v10  ;;  %v2397_v47 = vsub.s32 0, %v5234_v32 }
 0x232   : > { %v2332_v63 = vrot.slane %v2325_v6, %v3127_v14  ;;  %v2351_v3 = vpop.permute.xlu0 %2350 }
 0x233   : > { %v2354_v26 = vsel %vm2347_vm7, %v2351_v3, %v2353_v8  ;;  %v2355_v45 = vsel %vm2347_vm7, %v2353_v8, %v2351_v3 }
 0x234   : > { %v2339_v0 = vrot.slane %v2332_v63, %v3127_v14  ;;  %v2360_v49 = vmul.f32 %v2359_v15, %v2354_v26  ;;  %v2361_v37 = vmul.f32 %v2359_v15, %v2355_v45 }
 0x236   : > { %v2341_v24 = vsel %vm2322_vm6, %v2339_v0, 0.0  ;;  %v2362_v46 = vadd.f32 %v2360_v49, %v2357_v42  ;;  %v2363_v61 = vadd.f32 %v2361_v37, %v2358_v19 }
 0x237   : > { %v2342_v62 = vadd.f32 %v2341_v24, %v2175_v55 }
 0x238   : > { %v2367_v40 = vcombine.low %v2362_v46, %v2363_v61 }
 0x239   : > { %v2386_v41 = vadd.f32 %v2342_v62, %v2300_v28 }
 0x23a   : > { %v2374_v9 = vrot.slane %v2367_v40, %v3127_v14 }
 0x23c   : > { %v2381_v16 = vrot.slane %v2374_v9, %v3127_v14  ;;  %v2401_v14 = vsub.s32 1, %v5234_v32 }
 0x23e   : > { %v2383_v52 = vsel %vm2364_vm3, %v2381_v16, 0.0 }
 0x23f   : > { %v2384_v44 = vadd.f32 %v2383_v52, %v2217_v33 }
 0x241   : > { %v2385_v18 = vadd.f32 %v2384_v44, %v2258_v11 }
 0x243   : > { %v2387_v7 = vadd.f32 %v2386_v41, %v2385_v18 }
 0x245   : > { %v2584_v58 = vmul.f32 -1.442695, %v2387_v7 }
 0x247   : > { %2657 = vpow2.f32 %v2584_v58 }
 0x254   : > { %v2658_v21 = vpop.eup %2657 }
 0x255   : > { %v2391_v29 = vadd.f32 1.0, %v2658_v21 }
 0x257   : > { %2659 = vrcp.f32 %v2391_v29 }
 0x264   : > { %v2660_v53 = vpop.eup %2659 }
 0x265   : > { %v2398_v43 = vrot.slane %v2660_v53, %v2397_v47  ;;  %v2402_v23 = vrot.slane %v2660_v53, %v2401_v14 }
 0x267   : > { %v2405_v39 = vmul.f32 %v2662_v57, %v2398_v43  ;;  %v2406_v56 = vmul.f32 %v2663_v13, %v2402_v23 }
 0x269   : > { %2407 = vst [vmem:[%s211_s6] sm:$0xff] %v2405_v39  ;;  %2408 = vst [vmem:[%s211_s6 + $0x8] sm:$0xff] %v2406_v56 }
 0x26a PF: > { %s5237_s4 = sld [smem:[#allocation5_spill]] }
 0x270   : > { %s15_s15 = sadd.s32 1, %s5237_s4  }
 0x271   : > { %p12_p1 = scmp.ge.s32.totalorder %s15_s15, 4  }
 0x273   :  { %14 = sbr.rel (!%p12_p1) target bundleno = 7 (0x7), region = 71 }
 0x278   :  { %2430 = vsyncpa [#allocation3], 1 }
 0x279   :  { %2432 = vsyncpa [#allocation3 + $0x1], 1 }

</bundles_post_ra>
